<compile_context>
chip_gen: v5e
topology: v5e:2x2
jax: 0.10.0
libtpu: 0.0.40
codegen_flags: <defaults>
</compile_context>

<pallas_src>
import functools

import jax
import jax.numpy as jnp
from jax import lax
from jax.experimental import pallas as pl
from jax.experimental.pallas import tpu as pltpu


BN_EPS = 1e-5


def _conv_bn_relu_kernel(a_ref, w_ref, valid_ref, gamma_ref, beta_ref, o_ref,
                         *, kh, kw, wp, m_valid):
    """One K(=Cin)-slab step.

    a_ref:     (N, TCIN, MPI)   bf16  padded input slab, channels on sublanes, spatial on lanes
    w_ref:     (KH*KW*Cout, TCIN) bf16  taps on sublanes
    valid_ref: (Cout, M)        f32   1.0 for real conv output positions, 0.0 for halo
    gamma/beta:(Cout, 1)        f32
    o_ref:     (N, Cout, M)     f32   pre-BN conv accumulator across steps; finalized last step
    """
    k = pl.program_id(0)
    n_img, cout, m_lanes = o_ref.shape

    @pl.when(k == 0)
    def _init():
        o_ref[...] = jnp.zeros(o_ref.shape, o_ref.dtype)

    # Per image: one lane-dense MXU matmul over this Cin slab, then fold the kh*kw taps with
    # sublane-aligned, full-lane-width shifted slices (VPU adds; shift handled by the window).
    for n in range(n_img):
        p = jnp.dot(w_ref[...], a_ref[n],
                    preferred_element_type=jnp.float32)          # (kh*kw*cout, MPI), MXU
        acc = o_ref[n]                                           # (cout, m_lanes)
        for t in range(kh * kw):
            i, j = divmod(t, kw)
            off = i * wp + j
            acc = acc + p[t * cout:(t + 1) * cout, off:off + m_lanes]
        o_ref[n] = acc

    # Last step: BatchNorm (training-mode batch stats over valid positions only) + ReLU.
    @pl.when(k == pl.num_programs(0) - 1)
    def _finalize():
        valid = valid_ref[...]                                   # (cout, m_lanes)
        inv_m = 1.0 / m_valid
        s = jnp.zeros((cout, 1), jnp.float32)
        for n in range(n_img):
            s = s + jnp.sum(o_ref[n] * valid, axis=1, keepdims=True)
        mean = s * inv_m
        sq = jnp.zeros((cout, 1), jnp.float32)
        for n in range(n_img):
            c = (o_ref[n] - mean) * valid
            sq = sq + jnp.sum(c * c, axis=1, keepdims=True)
        var = sq * inv_m                                         # biased variance
        scale = lax.rsqrt(var + BN_EPS) * gamma_ref[...]         # (cout, 1)
        shift = beta_ref[...] - mean * scale
        for n in range(n_img):
            o_ref[n] = jnp.maximum(o_ref[n] * scale + shift, 0.0)


@functools.partial(jax.jit, static_argnames=("kh", "kw", "pad"))
def unet_conv_bn_relu(x, w, bias, gamma, beta, *, kh=4, kw=4, pad=1):
    """x: (N, Cin, H, W) f32 NCHW. w: (Cout, Cin, KH, KW). Returns NCHW f32."""
    del bias  # per-channel constant before training-mode BatchNorm is cancelled exactly

    n, cin, h, wdt = x.shape
    cout = w.shape[0]
    ho = h + 2 * pad - kh + 1
    wo = wdt + 2 * pad - kw + 1
    hp, wp = h + 2 * pad, wdt + 2 * pad
    m_lanes = hp * wp                                    # per-image base positions (incl. halo)
    max_off = (kh - 1) * wp + (kw - 1)                   # largest tap lane offset
    mpi = ((m_lanes + max_off + 127) // 128) * 128       # lane-padded matmul width

    # Cin tiling: K-steps with a lane-aligned (multiple of 128) slab so the W BlockSpec is legal.
    ksteps = max(1, (cin + 383) // 384)
    tcin = (((cin + ksteps - 1) // ksteps) + 127) // 128 * 128
    cin_p = ksteps * tcin

    # ---- glue (no transpose): A[n, c, m] = padded x, bf16 ------------------------------------
    a = jnp.pad(x.astype(jnp.bfloat16),
                ((0, 0), (0, cin_p - cin), (pad, pad), (pad, pad)))
    a = a.reshape(n, cin_p, m_lanes)
    a = jnp.pad(a, ((0, 0), (0, 0), (0, mpi - m_lanes)))

    # Weights: W_T[(i*KW+j)*Cout + co, cin], channel-padded, bf16.
    w_t = jnp.transpose(w, (2, 3, 0, 1)).reshape(kh * kw * cout, cin)
    w_t = jnp.pad(w_t, ((0, 0), (0, cin_p - cin))).astype(jnp.bfloat16)

    # Validity mask over the (hp, wp) base grid: halo rows/cols excluded from BN statistics.
    row_ok = jnp.arange(hp) < ho
    col_ok = jnp.arange(wp) < wo
    valid = (row_ok[:, None] & col_ok[None, :]).reshape(1, m_lanes)
    valid = jnp.broadcast_to(valid, (cout, m_lanes)).astype(jnp.float32)

    gamma2 = gamma.reshape(cout, 1).astype(jnp.float32)
    beta2 = beta.reshape(cout, 1).astype(jnp.float32)

    kernel = functools.partial(_conv_bn_relu_kernel, kh=kh, kw=kw, wp=wp,
                               m_valid=float(n * ho * wo))

    out_rows = pl.pallas_call(
        kernel,
        out_shape=jax.ShapeDtypeStruct((n, cout, m_lanes), jnp.float32),
        grid_spec=pltpu.PrefetchScalarGridSpec(
            num_scalar_prefetch=0,
            grid=(ksteps,),                                   # Cin reduction -> "arbitrary"
            in_specs=[
                pl.BlockSpec((n, tcin, mpi), lambda k: (0, k, 0)),            # A slab (pipelined)
                pl.BlockSpec((kh * kw * cout, tcin), lambda k: (0, k)),       # W slab (pipelined)
                pl.BlockSpec((cout, m_lanes), lambda k: (0, 0)),              # valid (invariant)
                pl.BlockSpec((cout, 1), lambda k: (0, 0)),                    # gamma (invariant)
                pl.BlockSpec((cout, 1), lambda k: (0, 0)),                    # beta  (invariant)
            ],
            out_specs=pl.BlockSpec((n, cout, m_lanes), lambda k: (0, 0, 0)),  # resident accumulator
        ),
        compiler_params=pltpu.CompilerParams(
            dimension_semantics=("arbitrary",),
            # ~2 MB actually needed; 32 MiB raises v5e's 16 MiB scoped default, fits all gens.
            vmem_limit_bytes=32 * 1024 * 1024,
        ),
    )(a, w_t, valid, gamma2, beta2)

    # Already NCHW (channels on the second axis): just drop halo positions.
    return out_rows.reshape(n, cout, hp, wp)[:, :, :ho, :wo]


def _reference(x, w, bias, gamma, beta, *, pad=1):
    y = lax.conv_general_dilated(
        x, w, window_strides=(1, 1), padding=((pad, pad), (pad, pad)),
        dimension_numbers=("NCHW", "OIHW", "NCHW"),
    ) + bias.reshape(1, -1, 1, 1)
    mean = jnp.mean(y, axis=(0, 2, 3), keepdims=True)
    var = jnp.mean((y - mean) ** 2, axis=(0, 2, 3), keepdims=True)
    y = (y - mean) * lax.rsqrt(var + BN_EPS) * gamma.reshape(1, -1, 1, 1) + beta.reshape(1, -1, 1, 1)
    return jnp.maximum(y, 0.0)


if __name__ == "__main__":
    # Module: Conv2d(in_channels + 1024 -> out_channels, k=(4,4), s=1, p=1)
    in_channels = 4
    out_channels = 8
    cin_total = in_channels + 1024            # 1028, as in the PyTorch __init__
    batch, spatial = 2, 16
    kh, kw = 4, 4

    key = jax.random.PRNGKey(0)
    kx, kw_, kb, kg, kbt = jax.random.split(key, 5)

    x = jax.random.normal(kx, (batch, cin_total, spatial, spatial), dtype=jnp.float32)
    fan_in = cin_total * kh * kw
    w = jax.random.normal(kw_, (out_channels, cin_total, kh, kw), dtype=jnp.float32) / jnp.sqrt(fan_in)
    bias = jax.random.normal(kb, (out_channels,), dtype=jnp.float32) * 0.1
    gamma = 1.0 + 0.1 * jax.random.normal(kg, (out_channels,), dtype=jnp.float32)
    beta = 0.1 * jax.random.normal(kbt, (out_channels,), dtype=jnp.float32)

    out = unet_conv_bn_relu(x, w, bias, gamma, beta, kh=kh, kw=kw, pad=1)
    out = jax.block_until_ready(out)

    ref = _reference(x, w, bias, gamma, beta, pad=1)
    assert out.shape == (batch, out_channels, spatial - 1, spatial - 1), out.shape
    # Tolerance accounts for bf16 matmul operands (f32 accumulation); reference is full f32.
    max_err = float(jnp.max(jnp.abs(out - ref)))
    assert jnp.allclose(out, ref, atol=2e-2, rtol=2e-2), max_err

    print("KERNEL_OK")
</pallas_src>

<mosaic_0001>
module attributes {stable_mosaic.version = 11 : i64} {
  func.func @_conv_bn_relu_kernel(%arg0: i32, %arg1: memref<2x384x384xbf16, #tpu.memory_space<vmem>>, %arg2: memref<128x384xbf16, #tpu.memory_space<vmem>>, %arg3: memref<8x324xf32, #tpu.memory_space<vmem>>, %arg4: memref<8x1xf32, #tpu.memory_space<vmem>>, %arg5: memref<8x1xf32, #tpu.memory_space<vmem>>, %arg6: memref<2x8x324xf32, #tpu.memory_space<vmem>>) attributes {dimension_semantics = [#tpu.dimension_semantics<arbitrary>], iteration_bounds = array<i64: 3>, scalar_prefetch = 0 : i64, scratch_operands = 0 : i64, tpu.core_type = #tpu.core_type<tc>, window_params = [{transform_indices = @transform_0, window_bounds = array<i64: 2, 384, 384>}, {transform_indices = @transform_1, window_bounds = array<i64: 128, 384>}, {pipeline_mode = #tpu.pipeline_mode<synchronous>, transform_indices = @transform_2, window_bounds = array<i64: 8, 324>}, {pipeline_mode = #tpu.pipeline_mode<synchronous>, transform_indices = @transform_3, window_bounds = array<i64: 8, 1>}, {pipeline_mode = #tpu.pipeline_mode<synchronous>, transform_indices = @transform_4, window_bounds = array<i64: 8, 1>}, {pipeline_mode = #tpu.pipeline_mode<synchronous>, transform_indices = @transform_5, window_bounds = array<i64: 2, 8, 324>}]} {
    %c0_i32 = arith.constant 0 : i32
    %0 = arith.cmpi eq, %arg0, %c0_i32 : i32
    %1 = arith.extui %0 : i1 to i32
    %c0_i32_0 = arith.constant 0 : i32
    %2 = arith.cmpi ne, %1, %c0_i32_0 : i32
    scf.if %2 {
      %cst_23 = arith.constant 0.000000e+00 : f32
      %88 = vector.broadcast %cst_23 : f32 to vector<2x8x324xf32>
      %c0_24 = arith.constant 0 : index
      %c0_25 = arith.constant 0 : index
      %c0_26 = arith.constant 0 : index
      %89 = vector.load %arg6[%c0_24, %c0_25, %c0_26] : memref<2x8x324xf32, #tpu.memory_space<vmem>>, vector<2x8x324xf32>
      tpu.vector_store %arg6[%c0_24, %c0_25, %c0_26], %88 {strides = array<i32>} : memref<2x8x324xf32, #tpu.memory_space<vmem>>, vector<2x8x324xf32>,
    } else {
    }
    %c0 = arith.constant 0 : index
    %c0_1 = arith.constant 0 : index
    %3 = vector.load %arg2[%c0, %c0_1] : memref<128x384xbf16, #tpu.memory_space<vmem>>, vector<128x384xbf16>
    %c0_2 = arith.constant 0 : index
    %c0_3 = arith.constant 0 : index
    %c0_4 = arith.constant 0 : index
    %4 = vector.load %arg1[%c0_2, %c0_3, %c0_4] : memref<2x384x384xbf16, #tpu.memory_space<vmem>>, vector<1x384x384xbf16>
    %5 = vector.shape_cast %4 : vector<1x384x384xbf16> to vector<384x384xbf16>
    %cst = arith.constant dense<0.000000e+00> : vector<128x384xf32>
    %6 = tpu.matmul %3, %5, %cst {dimension_numbers = #tpu.dot_dimension_numbers<[1], [0], [0], [1], [0, 0, 1, 1], [], []>} : vector<128x384xbf16>, vector<384x384xbf16>, vector<128x384xf32> -> vector<128x384xf32>
    %c0_5 = arith.constant 0 : index
    %c0_6 = arith.constant 0 : index
    %c0_7 = arith.constant 0 : index
    %7 = vector.load %arg6[%c0_5, %c0_6, %c0_7] : memref<2x8x324xf32, #tpu.memory_space<vmem>>, vector<1x8x324xf32>
    %8 = vector.shape_cast %7 : vector<1x8x324xf32> to vector<8x324xf32>
    %9 = vector.extract_strided_slice %6 {offsets = [0, 0], sizes = [8, 324], strides = [1, 1]} : vector<128x384xf32> to vector<8x324xf32>
    %10 = arith.addf %8, %9 : vector<8x324xf32>
    %11 = vector.extract_strided_slice %6 {offsets = [8, 1], sizes = [8, 324], strides = [1, 1]} : vector<128x384xf32> to vector<8x324xf32>
    %12 = arith.addf %10, %11 : vector<8x324xf32>
    %13 = vector.extract_strided_slice %6 {offsets = [16, 2], sizes = [8, 324], strides = [1, 1]} : vector<128x384xf32> to vector<8x324xf32>
    %14 = arith.addf %12, %13 : vector<8x324xf32>
    %15 = vector.extract_strided_slice %6 {offsets = [24, 3], sizes = [8, 324], strides = [1, 1]} : vector<128x384xf32> to vector<8x324xf32>
    %16 = arith.addf %14, %15 : vector<8x324xf32>
    %17 = vector.extract_strided_slice %6 {offsets = [32, 18], sizes = [8, 324], strides = [1, 1]} : vector<128x384xf32> to vector<8x324xf32>
    %18 = arith.addf %16, %17 : vector<8x324xf32>
    %19 = vector.extract_strided_slice %6 {offsets = [40, 19], sizes = [8, 324], strides = [1, 1]} : vector<128x384xf32> to vector<8x324xf32>
    %20 = arith.addf %18, %19 : vector<8x324xf32>
    %21 = vector.extract_strided_slice %6 {offsets = [48, 20], sizes = [8, 324], strides = [1, 1]} : vector<128x384xf32> to vector<8x324xf32>
    %22 = arith.addf %20, %21 : vector<8x324xf32>
    %23 = vector.extract_strided_slice %6 {offsets = [56, 21], sizes = [8, 324], strides = [1, 1]} : vector<128x384xf32> to vector<8x324xf32>
    %24 = arith.addf %22, %23 : vector<8x324xf32>
    %25 = vector.extract_strided_slice %6 {offsets = [64, 36], sizes = [8, 324], strides = [1, 1]} : vector<128x384xf32> to vector<8x324xf32>
    %26 = arith.addf %24, %25 : vector<8x324xf32>
    %27 = vector.extract_strided_slice %6 {offsets = [72, 37], sizes = [8, 324], strides = [1, 1]} : vector<128x384xf32> to vector<8x324xf32>
    %28 = arith.addf %26, %27 : vector<8x324xf32>
    %29 = vector.extract_strided_slice %6 {offsets = [80, 38], sizes = [8, 324], strides = [1, 1]} : vector<128x384xf32> to vector<8x324xf32>
    %30 = arith.addf %28, %29 : vector<8x324xf32>
    %31 = vector.extract_strided_slice %6 {offsets = [88, 39], sizes = [8, 324], strides = [1, 1]} : vector<128x384xf32> to vector<8x324xf32>
    %32 = arith.addf %30, %31 : vector<8x324xf32>
    %33 = vector.extract_strided_slice %6 {offsets = [96, 54], sizes = [8, 324], strides = [1, 1]} : vector<128x384xf32> to vector<8x324xf32>
    %34 = arith.addf %32, %33 : vector<8x324xf32>
    %35 = vector.extract_strided_slice %6 {offsets = [104, 55], sizes = [8, 324], strides = [1, 1]} : vector<128x384xf32> to vector<8x324xf32>
    %36 = arith.addf %34, %35 : vector<8x324xf32>
    %37 = vector.extract_strided_slice %6 {offsets = [112, 56], sizes = [8, 324], strides = [1, 1]} : vector<128x384xf32> to vector<8x324xf32>
    %38 = arith.addf %36, %37 : vector<8x324xf32>
    %39 = vector.extract_strided_slice %6 {offsets = [120, 57], sizes = [8, 324], strides = [1, 1]} : vector<128x384xf32> to vector<8x324xf32>
    %40 = arith.addf %38, %39 : vector<8x324xf32>
    %c0_8 = arith.constant 0 : index
    %c0_9 = arith.constant 0 : index
    %c0_10 = arith.constant 0 : index
    %41 = vector.load %arg6[%c0_8, %c0_9, %c0_10] : memref<2x8x324xf32, #tpu.memory_space<vmem>>, vector<1x8x324xf32>
    %42 = vector.shape_cast %41 : vector<1x8x324xf32> to vector<8x324xf32>
    %43 = vector.shape_cast %40 : vector<8x324xf32> to vector<1x8x324xf32>
    tpu.vector_store %arg6[%c0_8, %c0_9, %c0_10], %43 {strides = array<i32>} : memref<2x8x324xf32, #tpu.memory_space<vmem>>, vector<1x8x324xf32>,
    %c0_11 = arith.constant 0 : index
    %c0_12 = arith.constant 0 : index
    %44 = vector.load %arg2[%c0_11, %c0_12] : memref<128x384xbf16, #tpu.memory_space<vmem>>, vector<128x384xbf16>
    %c1 = arith.constant 1 : index
    %c0_13 = arith.constant 0 : index
    %c0_14 = arith.constant 0 : index
    %45 = vector.load %arg1[%c1, %c0_13, %c0_14] : memref<2x384x384xbf16, #tpu.memory_space<vmem>>, vector<1x384x384xbf16>
    %46 = vector.shape_cast %45 : vector<1x384x384xbf16> to vector<384x384xbf16>
    %cst_15 = arith.constant dense<0.000000e+00> : vector<128x384xf32>
    %47 = tpu.matmul %44, %46, %cst_15 {dimension_numbers = #tpu.dot_dimension_numbers<[1], [0], [0], [1], [0, 0, 1, 1], [], []>} : vector<128x384xbf16>, vector<384x384xbf16>, vector<128x384xf32> -> vector<128x384xf32>
    %c1_16 = arith.constant 1 : index
    %c0_17 = arith.constant 0 : index
    %c0_18 = arith.constant 0 : index
    %48 = vector.load %arg6[%c1_16, %c0_17, %c0_18] : memref<2x8x324xf32, #tpu.memory_space<vmem>>, vector<1x8x324xf32>
    %49 = vector.shape_cast %48 : vector<1x8x324xf32> to vector<8x324xf32>
    %50 = vector.extract_strided_slice %47 {offsets = [0, 0], sizes = [8, 324], strides = [1, 1]} : vector<128x384xf32> to vector<8x324xf32>
    %51 = arith.addf %49, %50 : vector<8x324xf32>
    %52 = vector.extract_strided_slice %47 {offsets = [8, 1], sizes = [8, 324], strides = [1, 1]} : vector<128x384xf32> to vector<8x324xf32>
    %53 = arith.addf %51, %52 : vector<8x324xf32>
    %54 = vector.extract_strided_slice %47 {offsets = [16, 2], sizes = [8, 324], strides = [1, 1]} : vector<128x384xf32> to vector<8x324xf32>
    %55 = arith.addf %53, %54 : vector<8x324xf32>
    %56 = vector.extract_strided_slice %47 {offsets = [24, 3], sizes = [8, 324], strides = [1, 1]} : vector<128x384xf32> to vector<8x324xf32>
    %57 = arith.addf %55, %56 : vector<8x324xf32>
    %58 = vector.extract_strided_slice %47 {offsets = [32, 18], sizes = [8, 324], strides = [1, 1]} : vector<128x384xf32> to vector<8x324xf32>
    %59 = arith.addf %57, %58 : vector<8x324xf32>
    %60 = vector.extract_strided_slice %47 {offsets = [40, 19], sizes = [8, 324], strides = [1, 1]} : vector<128x384xf32> to vector<8x324xf32>
    %61 = arith.addf %59, %60 : vector<8x324xf32>
    %62 = vector.extract_strided_slice %47 {offsets = [48, 20], sizes = [8, 324], strides = [1, 1]} : vector<128x384xf32> to vector<8x324xf32>
    %63 = arith.addf %61, %62 : vector<8x324xf32>
    %64 = vector.extract_strided_slice %47 {offsets = [56, 21], sizes = [8, 324], strides = [1, 1]} : vector<128x384xf32> to vector<8x324xf32>
    %65 = arith.addf %63, %64 : vector<8x324xf32>
    %66 = vector.extract_strided_slice %47 {offsets = [64, 36], sizes = [8, 324], strides = [1, 1]} : vector<128x384xf32> to vector<8x324xf32>
    %67 = arith.addf %65, %66 : vector<8x324xf32>
    %68 = vector.extract_strided_slice %47 {offsets = [72, 37], sizes = [8, 324], strides = [1, 1]} : vector<128x384xf32> to vector<8x324xf32>
    %69 = arith.addf %67, %68 : vector<8x324xf32>
    %70 = vector.extract_strided_slice %47 {offsets = [80, 38], sizes = [8, 324], strides = [1, 1]} : vector<128x384xf32> to vector<8x324xf32>
    %71 = arith.addf %69, %70 : vector<8x324xf32>
    %72 = vector.extract_strided_slice %47 {offsets = [88, 39], sizes = [8, 324], strides = [1, 1]} : vector<128x384xf32> to vector<8x324xf32>
    %73 = arith.addf %71, %72 : vector<8x324xf32>
    %74 = vector.extract_strided_slice %47 {offsets = [96, 54], sizes = [8, 324], strides = [1, 1]} : vector<128x384xf32> to vector<8x324xf32>
    %75 = arith.addf %73, %74 : vector<8x324xf32>
    %76 = vector.extract_strided_slice %47 {offsets = [104, 55], sizes = [8, 324], strides = [1, 1]} : vector<128x384xf32> to vector<8x324xf32>
    %77 = arith.addf %75, %76 : vector<8x324xf32>
    %78 = vector.extract_strided_slice %47 {offsets = [112, 56], sizes = [8, 324], strides = [1, 1]} : vector<128x384xf32> to vector<8x324xf32>
    %79 = arith.addf %77, %78 : vector<8x324xf32>
    %80 = vector.extract_strided_slice %47 {offsets = [120, 57], sizes = [8, 324], strides = [1, 1]} : vector<128x384xf32> to vector<8x324xf32>
    %81 = arith.addf %79, %80 : vector<8x324xf32>
    %c1_19 = arith.constant 1 : index
    %c0_20 = arith.constant 0 : index
    %c0_21 = arith.constant 0 : index
    %82 = vector.load %arg6[%c1_19, %c0_20, %c0_21] : memref<2x8x324xf32, #tpu.memory_space<vmem>>, vector<1x8x324xf32>
    %83 = vector.shape_cast %82 : vector<1x8x324xf32> to vector<8x324xf32>
    %84 = vector.shape_cast %81 : vector<8x324xf32> to vector<1x8x324xf32>
    tpu.vector_store %arg6[%c1_19, %c0_20, %c0_21], %84 {strides = array<i32>} : memref<2x8x324xf32, #tpu.memory_space<vmem>>, vector<1x8x324xf32>,
    %c2_i32 = arith.constant 2 : i32
    %85 = arith.cmpi eq, %arg0, %c2_i32 : i32
    %86 = arith.extui %85 : i1 to i32
    %c0_i32_22 = arith.constant 0 : i32
    %87 = arith.cmpi ne, %86, %c0_i32_22 : i32
    scf.if %87 {
      %c0_23 = arith.constant 0 : index
      %c0_24 = arith.constant 0 : index
      %88 = vector.load %arg3[%c0_23, %c0_24] : memref<8x324xf32, #tpu.memory_space<vmem>>, vector<8x324xf32>
      %cst_25 = arith.constant 0.000000e+00 : f32
      %89 = vector.broadcast %cst_25 : f32 to vector<8x1xf32>
      %c0_26 = arith.constant 0 : index
      %c0_27 = arith.constant 0 : index
      %c0_28 = arith.constant 0 : index
      %90 = vector.load %arg6[%c0_26, %c0_27, %c0_28] : memref<2x8x324xf32, #tpu.memory_space<vmem>>, vector<1x8x324xf32>
      %91 = vector.shape_cast %90 : vector<1x8x324xf32> to vector<8x324xf32>
      %92 = arith.mulf %91, %88 : vector<8x324xf32>
      %cst_29 = arith.constant dense<0.000000e+00> : vector<8xf32>
      %93 = vector.multi_reduction <add>, %92, %cst_29 [1] : vector<8x324xf32> to vector<8xf32>
      %94 = vector.shape_cast %93 : vector<8xf32> to vector<8x1xf32>
      %95 = arith.addf %89, %94 : vector<8x1xf32>
      %c1_30 = arith.constant 1 : index
      %c0_31 = arith.constant 0 : index
      %c0_32 = arith.constant 0 : index
      %96 = vector.load %arg6[%c1_30, %c0_31, %c0_32] : memref<2x8x324xf32, #tpu.memory_space<vmem>>, vector<1x8x324xf32>
      %97 = vector.shape_cast %96 : vector<1x8x324xf32> to vector<8x324xf32>
      %98 = arith.mulf %97, %88 : vector<8x324xf32>
      %cst_33 = arith.constant dense<0.000000e+00> : vector<8xf32>
      %99 = vector.multi_reduction <add>, %98, %cst_33 [1] : vector<8x324xf32> to vector<8xf32>
      %100 = vector.shape_cast %99 : vector<8xf32> to vector<8x1xf32>
      %101 = arith.addf %95, %100 : vector<8x1xf32>
      %cst_34 = arith.constant 0.00222222228 : f32
      %102 = vector.broadcast %cst_34 : f32 to vector<8x1xf32>
      %103 = arith.mulf %101, %102 : vector<8x1xf32>
      %cst_35 = arith.constant 0.000000e+00 : f32
      %104 = vector.broadcast %cst_35 : f32 to vector<8x1xf32>
      %c0_36 = arith.constant 0 : index
      %c0_37 = arith.constant 0 : index
      %c0_38 = arith.constant 0 : index
      %105 = vector.load %arg6[%c0_36, %c0_37, %c0_38] : memref<2x8x324xf32, #tpu.memory_space<vmem>>, vector<1x8x324xf32>
      %106 = vector.shape_cast %105 : vector<1x8x324xf32> to vector<8x324xf32>
      %107 = vector.broadcast %103 : vector<8x1xf32> to vector<8x324xf32>
      %108 = arith.subf %106, %107 : vector<8x324xf32>
      %109 = arith.mulf %108, %88 : vector<8x324xf32>
      %110 = arith.mulf %109, %109 : vector<8x324xf32>
      %cst_39 = arith.constant dense<0.000000e+00> : vector<8xf32>
      %111 = vector.multi_reduction <add>, %110, %cst_39 [1] : vector<8x324xf32> to vector<8xf32>
      %112 = vector.shape_cast %111 : vector<8xf32> to vector<8x1xf32>
      %113 = arith.addf %104, %112 : vector<8x1xf32>
      %c1_40 = arith.constant 1 : index
      %c0_41 = arith.constant 0 : index
      %c0_42 = arith.constant 0 : index
      %114 = vector.load %arg6[%c1_40, %c0_41, %c0_42] : memref<2x8x324xf32, #tpu.memory_space<vmem>>, vector<1x8x324xf32>
      %115 = vector.shape_cast %114 : vector<1x8x324xf32> to vector<8x324xf32>
      %116 = vector.broadcast %103 : vector<8x1xf32> to vector<8x324xf32>
      %117 = arith.subf %115, %116 : vector<8x324xf32>
      %118 = arith.mulf %117, %88 : vector<8x324xf32>
      %119 = arith.mulf %118, %118 : vector<8x324xf32>
      %cst_43 = arith.constant dense<0.000000e+00> : vector<8xf32>
      %120 = vector.multi_reduction <add>, %119, %cst_43 [1] : vector<8x324xf32> to vector<8xf32>
      %121 = vector.shape_cast %120 : vector<8xf32> to vector<8x1xf32>
      %122 = arith.addf %113, %121 : vector<8x1xf32>
      %cst_44 = arith.constant 0.00222222228 : f32
      %123 = vector.broadcast %cst_44 : f32 to vector<8x1xf32>
      %124 = arith.mulf %122, %123 : vector<8x1xf32>
      %cst_45 = arith.constant 9.99999974E-6 : f32
      %125 = vector.broadcast %cst_45 : f32 to vector<8x1xf32>
      %126 = arith.addf %124, %125 : vector<8x1xf32>
      %127 = math.rsqrt %126 : vector<8x1xf32>
      %c0_46 = arith.constant 0 : index
      %c0_47 = arith.constant 0 : index
      %128 = vector.load %arg4[%c0_46, %c0_47] : memref<8x1xf32, #tpu.memory_space<vmem>>, vector<8x1xf32>
      %129 = arith.mulf %127, %128 : vector<8x1xf32>
      %c0_48 = arith.constant 0 : index
      %c0_49 = arith.constant 0 : index
      %130 = vector.load %arg5[%c0_48, %c0_49] : memref<8x1xf32, #tpu.memory_space<vmem>>, vector<8x1xf32>
      %131 = arith.mulf %103, %129 : vector<8x1xf32>
      %132 = arith.subf %130, %131 : vector<8x1xf32>
      %c0_50 = arith.constant 0 : index
      %c0_51 = arith.constant 0 : index
      %c0_52 = arith.constant 0 : index
      %133 = vector.load %arg6[%c0_50, %c0_51, %c0_52] : memref<2x8x324xf32, #tpu.memory_space<vmem>>, vector<1x8x324xf32>
      %134 = vector.shape_cast %133 : vector<1x8x324xf32> to vector<8x324xf32>
      %135 = vector.broadcast %129 : vector<8x1xf32> to vector<8x324xf32>
      %136 = arith.mulf %134, %135 : vector<8x324xf32>
      %137 = vector.broadcast %132 : vector<8x1xf32> to vector<8x324xf32>
      %138 = arith.addf %136, %137 : vector<8x324xf32>
      %cst_53 = arith.constant 0.000000e+00 : f32
      %139 = vector.broadcast %cst_53 : f32 to vector<8x324xf32>
      %140 = arith.maximumf %138, %139 : vector<8x324xf32>
      %c0_54 = arith.constant 0 : index
      %c0_55 = arith.constant 0 : index
      %c0_56 = arith.constant 0 : index
      %141 = vector.load %arg6[%c0_54, %c0_55, %c0_56] : memref<2x8x324xf32, #tpu.memory_space<vmem>>, vector<1x8x324xf32>
      %142 = vector.shape_cast %141 : vector<1x8x324xf32> to vector<8x324xf32>
      %143 = vector.shape_cast %140 : vector<8x324xf32> to vector<1x8x324xf32>
      tpu.vector_store %arg6[%c0_54, %c0_55, %c0_56], %143 {strides = array<i32>} : memref<2x8x324xf32, #tpu.memory_space<vmem>>, vector<1x8x324xf32>,
      %c1_57 = arith.constant 1 : index
      %c0_58 = arith.constant 0 : index
      %c0_59 = arith.constant 0 : index
      %144 = vector.load %arg6[%c1_57, %c0_58, %c0_59] : memref<2x8x324xf32, #tpu.memory_space<vmem>>, vector<1x8x324xf32>
      %145 = vector.shape_cast %144 : vector<1x8x324xf32> to vector<8x324xf32>
      %146 = vector.broadcast %129 : vector<8x1xf32> to vector<8x324xf32>
      %147 = arith.mulf %145, %146 : vector<8x324xf32>
      %148 = vector.broadcast %132 : vector<8x1xf32> to vector<8x324xf32>
      %149 = arith.addf %147, %148 : vector<8x324xf32>
      %cst_60 = arith.constant 0.000000e+00 : f32
      %150 = vector.broadcast %cst_60 : f32 to vector<8x324xf32>
      %151 = arith.maximumf %149, %150 : vector<8x324xf32>
      %c1_61 = arith.constant 1 : index
      %c0_62 = arith.constant 0 : index
      %c0_63 = arith.constant 0 : index
      %152 = vector.load %arg6[%c1_61, %c0_62, %c0_63] : memref<2x8x324xf32, #tpu.memory_space<vmem>>, vector<1x8x324xf32>
      %153 = vector.shape_cast %152 : vector<1x8x324xf32> to vector<8x324xf32>
      %154 = vector.shape_cast %151 : vector<8x324xf32> to vector<1x8x324xf32>
      tpu.vector_store %arg6[%c1_61, %c0_62, %c0_63], %154 {strides = array<i32>} : memref<2x8x324xf32, #tpu.memory_space<vmem>>, vector<1x8x324xf32>,
    } else {
    }
    return
  }
  func.func @transform_0(%arg0: i32) -> (i32, i32, i32) {
    %c0_i32 = arith.constant 0 : i32
    %c0_i32_0 = arith.constant 0 : i32
    %c0_i32_1 = arith.constant 0 : i32
    return %c0_i32, %arg0, %c0_i32_0 : i32, i32, i32
  }
  func.func @transform_1(%arg0: i32) -> (i32, i32) {
    %c0_i32 = arith.constant 0 : i32
    %c0_i32_0 = arith.constant 0 : i32
    return %c0_i32, %arg0 : i32, i32
  }
  func.func @transform_2(%arg0: i32) -> (i32, i32) {
    %c0_i32 = arith.constant 0 : i32
    %c0_i32_0 = arith.constant 0 : i32
    %c0_i32_1 = arith.constant 0 : i32
    return %c0_i32, %c0_i32_0 : i32, i32
  }
  func.func @transform_3(%arg0: i32) -> (i32, i32) {
    %c0_i32 = arith.constant 0 : i32
    %c0_i32_0 = arith.constant 0 : i32
    %c0_i32_1 = arith.constant 0 : i32
    return %c0_i32, %c0_i32_0 : i32, i32
  }
  func.func @transform_4(%arg0: i32) -> (i32, i32) {
    %c0_i32 = arith.constant 0 : i32
    %c0_i32_0 = arith.constant 0 : i32
    %c0_i32_1 = arith.constant 0 : i32
    return %c0_i32, %c0_i32_0 : i32, i32
  }
  func.func @transform_5(%arg0: i32) -> (i32, i32, i32) {
    %c0_i32 = arith.constant 0 : i32
    %c0_i32_0 = arith.constant 0 : i32
    %c0_i32_1 = arith.constant 0 : i32
    %c0_i32_2 = arith.constant 0 : i32
    return %c0_i32, %c0_i32_0, %c0_i32_1 : i32, i32, i32
  }
}

</mosaic_0001>

<bundles_post_ra>
// kernel: unet_conv_bn_relu.1
= control target key start
LH: loop header
LB: loop body
LE: loop exit
PB: predicated region body
PF: predicated region fallthrough
CT: control target
= control target key end

     0   :  { %s5076_s18 = smov 0   ;;  %s5078_s19 = smov 0   ;;  %s6813_s0 = inlined_call_operand.vmem [shape: bf16[2,1152,384], index: 0, kind: input, shape index: {}]   ;;  %s6814_s1 = inlined_call_operand.vmem [shape: bf16[128,1152], index: 1, kind: input, shape index: {}]   ;;  %s6815_s2 = inlined_call_operand.vmem [shape: f32[8,324], index: 2, kind: input, shape index: {}]   ;;  %s6816_s3 = inlined_call_operand.vmem [shape: f32[8,1], index: 3, kind: input, shape index: {}]   ;;  %s6817_s4 = inlined_call_operand.vmem [shape: f32[8,1], index: 4, kind: input, shape index: {}]   ;;  %s6818_s5 = inlined_call_operand.vmem [shape: f32[2,8,324], index: 5, kind: output, shape index: {}]  }
   0x1   :  { %s5080_s20 = smov 0  }
   0x2 LB: > { %s6827_s21 = sadd.s32 4294967295, %s5027_s20   ;;  %s5093_s22 = sadd.s32 1, %s5027_s20   ;;  %s5027_s20 = sphi %s5080_s20, %s6854_s20   ;;  %s5023_s19 = sphi %s5078_s19, %s6853_s19   ;;  %s5019_s18 = sphi %s5076_s18, %s6852_s18  }
   0x3   : > { %s19_s23 = ssub.s32 %s5027_s20, %s5093_s22  ;;  %s22_s24 = sadd.s32 1, %s5023_s19 }
   0x4   : > { %p20_p0 = scmp.eq.s32.totalorder %s19_s23, 0  ;;  %p29_p1 = scmp.ne.s32.totalorder %s5023_s19, %s5019_s18 }
   0x5   : > { %p30_p2 = scmp.eq.s32.totalorder %s5027_s20, 0  ;;  %p3634_p4 = scmp.ge.s32.totalorder %s5027_s20, 3 }
   0x6   : > { %s5102_s25 = scalar_select %p20_p0, %s5023_s19, %s22_s24  }
   0x7   : > { %p5104_p3 = por %p30_p2, %p29_p1  ;;  %174 = sbr.rel (%p3634_p4) target bundleno = 247 (0xf7), region = 28 }
   0xc   : > { %177 = sbr.rel (!%p5104_p3) target bundleno = 210 (0xd2), region = 32  ;;  %s179_s27 = sand.u32 (%p5104_p3), 1, %s5023_s19  }
   0xd   : > { %s4954_s28 = smul.u32 (%p5104_p3), 1152, %s179_s27 }
   0xe   : > { %s4959_s29 = smul.u32 (%p5104_p3), 576, %s5027_s20 }
   0xf   : > { %s5121_s8 = scalar_lea.vmem (%p5104_p3), [#allocation2], %s4954_s28 }
  0x10   : > { %s5116_s7 = scalar_lea.vmem (%p5104_p3), %s6813_s0, %s4959_s29 }
  0x11   : > { %v200_v0 = vld [vmem:[%s5116_s7] sm:$0xff]  ;;  %v202_v1 = vld [vmem:[%s5116_s7 + $0xc] sm:$0xff]  ;;  %v204_v2 = vld [vmem:[%s5116_s7 + $0x18] sm:$0xff] }
  0x12   : > { %201 = vst [vmem:[%s5121_s8] sm:$0xff] %v200_v0  ;;  %v206_v3 = vld [vmem:[%s5116_s7 + $0x24] sm:$0xff]  ;;  %v208_v4 = vld [vmem:[%s5116_s7 + $0x30] sm:$0xff]  ;;  %v210_v5 = vld [vmem:[%s5116_s7 + $0x3c] sm:$0xff] }
  0x13   : > { %203 = vst [vmem:[%s5121_s8 + $0xc] sm:$0xff] %v202_v1  ;;  %v212_v6 = vld [vmem:[%s5116_s7 + $0x48] sm:$0xff]  ;;  %v214_v7 = vld [vmem:[%s5116_s7 + $0x54] sm:$0xff]  ;;  %v216_v8 = vld [vmem:[%s5116_s7 + $0x60] sm:$0xff] }
  0x14   : > { %205 = vst [vmem:[%s5121_s8 + $0x18] sm:$0xff] %v204_v2  ;;  %v218_v9 = vld [vmem:[%s5116_s7 + $0x6c] sm:$0xff]  ;;  %v220_v10 = vld [vmem:[%s5116_s7 + $0x78] sm:$0xff]  ;;  %v222_v11 = vld [vmem:[%s5116_s7 + $0x84] sm:$0xff] }
  0x15   : > { %207 = vst [vmem:[%s5121_s8 + $0x24] sm:$0xff] %v206_v3  ;;  %v224_v12 = vld [vmem:[%s5116_s7 + $0x90] sm:$0xff]  ;;  %v226_v13 = vld [vmem:[%s5116_s7 + $0x9c] sm:$0xff]  ;;  %v228_v14 = vld [vmem:[%s5116_s7 + $0xa8] sm:$0xff] }
  0x16   : > { %209 = vst [vmem:[%s5121_s8 + $0x30] sm:$0xff] %v208_v4  ;;  %v230_v15 = vld [vmem:[%s5116_s7 + $0xb4] sm:$0xff]  ;;  %v232_v16 = vld [vmem:[%s5116_s7 + $0xc0] sm:$0xff]  ;;  %v234_v17 = vld [vmem:[%s5116_s7 + $0xcc] sm:$0xff] }
  0x17   : > { %211 = vst [vmem:[%s5121_s8 + $0x3c] sm:$0xff] %v210_v5  ;;  %v236_v18 = vld [vmem:[%s5116_s7 + $0xd8] sm:$0xff]  ;;  %v238_v19 = vld [vmem:[%s5116_s7 + $0xe4] sm:$0xff]  ;;  %v240_v20 = vld [vmem:[%s5116_s7 + $0xf0] sm:$0xff] }
  0x18   : > { %213 = vst [vmem:[%s5121_s8 + $0x48] sm:$0xff] %v212_v6  ;;  %v242_v21 = vld [vmem:[%s5116_s7 + $0xfc] sm:$0xff]  ;;  %v244_v22 = vld [vmem:[%s5116_s7 + $0x108] sm:$0xff]  ;;  %v246_v23 = vld [vmem:[%s5116_s7 + $0x114] sm:$0xff] }
  0x19   : > { %215 = vst [vmem:[%s5121_s8 + $0x54] sm:$0xff] %v214_v7  ;;  %v248_v24 = vld [vmem:[%s5116_s7 + $0x120] sm:$0xff]  ;;  %v250_v25 = vld [vmem:[%s5116_s7 + $0x12c] sm:$0xff]  ;;  %v252_v26 = vld [vmem:[%s5116_s7 + $0x138] sm:$0xff] }
  0x1a   : > { %217 = vst [vmem:[%s5121_s8 + $0x60] sm:$0xff] %v216_v8  ;;  %v254_v27 = vld [vmem:[%s5116_s7 + $0x144] sm:$0xff]  ;;  %v256_v28 = vld [vmem:[%s5116_s7 + $0x150] sm:$0xff]  ;;  %v258_v29 = vld [vmem:[%s5116_s7 + $0x15c] sm:$0xff] }
  0x1b   : > { %219 = vst [vmem:[%s5121_s8 + $0x6c] sm:$0xff] %v218_v9  ;;  %v260_v30 = vld [vmem:[%s5116_s7 + $0x168] sm:$0xff]  ;;  %v262_v31 = vld [vmem:[%s5116_s7 + $0x174] sm:$0xff]  ;;  %v264_v32 = vld [vmem:[%s5116_s7 + $0x180] sm:$0xff] }
  0x1c   : > { %221 = vst [vmem:[%s5121_s8 + $0x78] sm:$0xff] %v220_v10  ;;  %v266_v33 = vld [vmem:[%s5116_s7 + $0x18c] sm:$0xff]  ;;  %v268_v34 = vld [vmem:[%s5116_s7 + $0x198] sm:$0xff]  ;;  %v270_v35 = vld [vmem:[%s5116_s7 + $0x1a4] sm:$0xff] }
  0x1d   : > { %223 = vst [vmem:[%s5121_s8 + $0x84] sm:$0xff] %v222_v11  ;;  %v272_v36 = vld [vmem:[%s5116_s7 + $0x1b0] sm:$0xff]  ;;  %v274_v37 = vld [vmem:[%s5116_s7 + $0x1bc] sm:$0xff]  ;;  %v276_v38 = vld [vmem:[%s5116_s7 + $0x1c8] sm:$0xff] }
  0x1e   : > { %225 = vst [vmem:[%s5121_s8 + $0x90] sm:$0xff] %v224_v12  ;;  %v278_v39 = vld [vmem:[%s5116_s7 + $0x1d4] sm:$0xff]  ;;  %v280_v40 = vld [vmem:[%s5116_s7 + $0x1e0] sm:$0xff]  ;;  %v282_v41 = vld [vmem:[%s5116_s7 + $0x1ec] sm:$0xff] }
  0x1f   : > { %227 = vst [vmem:[%s5121_s8 + $0x9c] sm:$0xff] %v226_v13  ;;  %v284_v42 = vld [vmem:[%s5116_s7 + $0x1f8] sm:$0xff]  ;;  %v286_v43 = vld [vmem:[%s5116_s7 + $0x204] sm:$0xff]  ;;  %v288_v44 = vld [vmem:[%s5116_s7 + $0x210] sm:$0xff] }
  0x20   : > { %229 = vst [vmem:[%s5121_s8 + $0xa8] sm:$0xff] %v228_v14  ;;  %v290_v45 = vld [vmem:[%s5116_s7 + $0x21c] sm:$0xff]  ;;  %v292_v46 = vld [vmem:[%s5116_s7 + $0x228] sm:$0xff]  ;;  %v294_v47 = vld [vmem:[%s5116_s7 + $0x234] sm:$0xff] }
  0x21   : > { %231 = vst [vmem:[%s5121_s8 + $0xb4] sm:$0xff] %v230_v15  ;;  %v296_v48 = vld [vmem:[%s5116_s7 + $0x6c0] sm:$0xff]  ;;  %v298_v49 = vld [vmem:[%s5116_s7 + $0x6cc] sm:$0xff]  ;;  %v300_v50 = vld [vmem:[%s5116_s7 + $0x6d8] sm:$0xff] }
  0x22   : > { %233 = vst [vmem:[%s5121_s8 + $0xc0] sm:$0xff] %v232_v16  ;;  %v302_v51 = vld [vmem:[%s5116_s7 + $0x6e4] sm:$0xff]  ;;  %v304_v52 = vld [vmem:[%s5116_s7 + $0x6f0] sm:$0xff]  ;;  %v306_v53 = vld [vmem:[%s5116_s7 + $0x6fc] sm:$0xff] }
  0x23   : > { %235 = vst [vmem:[%s5121_s8 + $0xcc] sm:$0xff] %v234_v17  ;;  %v308_v54 = vld [vmem:[%s5116_s7 + $0x708] sm:$0xff]  ;;  %v310_v55 = vld [vmem:[%s5116_s7 + $0x714] sm:$0xff]  ;;  %v312_v56 = vld [vmem:[%s5116_s7 + $0x720] sm:$0xff] }
  0x24   : > { %237 = vst [vmem:[%s5121_s8 + $0xd8] sm:$0xff] %v236_v18  ;;  %v314_v57 = vld [vmem:[%s5116_s7 + $0x72c] sm:$0xff]  ;;  %v316_v58 = vld [vmem:[%s5116_s7 + $0x738] sm:$0xff]  ;;  %v318_v59 = vld [vmem:[%s5116_s7 + $0x744] sm:$0xff] }
  0x25   : > { %239 = vst [vmem:[%s5121_s8 + $0xe4] sm:$0xff] %v238_v19  ;;  %v320_v60 = vld [vmem:[%s5116_s7 + $0x750] sm:$0xff]  ;;  %v322_v61 = vld [vmem:[%s5116_s7 + $0x75c] sm:$0xff]  ;;  %v324_v62 = vld [vmem:[%s5116_s7 + $0x768] sm:$0xff] }
  0x26   : > { %241 = vst [vmem:[%s5121_s8 + $0xf0] sm:$0xff] %v240_v20  ;;  %v326_v63 = vld [vmem:[%s5116_s7 + $0x774] sm:$0xff]  ;;  %v328_v0 = vld [vmem:[%s5116_s7 + $0x780] sm:$0xff]  ;;  %v330_v1 = vld [vmem:[%s5116_s7 + $0x78c] sm:$0xff] }
  0x27   : > { %243 = vst [vmem:[%s5121_s8 + $0xfc] sm:$0xff] %v242_v21  ;;  %v332_v2 = vld [vmem:[%s5116_s7 + $0x798] sm:$0xff]  ;;  %v334_v3 = vld [vmem:[%s5116_s7 + $0x7a4] sm:$0xff]  ;;  %v336_v4 = vld [vmem:[%s5116_s7 + $0x7b0] sm:$0xff] }
  0x28   : > { %245 = vst [vmem:[%s5121_s8 + $0x108] sm:$0xff] %v244_v22  ;;  %v338_v5 = vld [vmem:[%s5116_s7 + $0x7bc] sm:$0xff]  ;;  %v340_v6 = vld [vmem:[%s5116_s7 + $0x7c8] sm:$0xff]  ;;  %v342_v7 = vld [vmem:[%s5116_s7 + $0x7d4] sm:$0xff] }
  0x29   : > { %247 = vst [vmem:[%s5121_s8 + $0x114] sm:$0xff] %v246_v23  ;;  %v344_v8 = vld [vmem:[%s5116_s7 + $0x7e0] sm:$0xff]  ;;  %v346_v9 = vld [vmem:[%s5116_s7 + $0x7ec] sm:$0xff]  ;;  %v348_v10 = vld [vmem:[%s5116_s7 + $0x7f8] sm:$0xff] }
  0x2a   : > { %249 = vst [vmem:[%s5121_s8 + $0x120] sm:$0xff] %v248_v24  ;;  %v350_v11 = vld [vmem:[%s5116_s7 + $0x804] sm:$0xff]  ;;  %v352_v12 = vld [vmem:[%s5116_s7 + $0x810] sm:$0xff]  ;;  %v354_v13 = vld [vmem:[%s5116_s7 + $0x81c] sm:$0xff] }
  0x2b   : > { %251 = vst [vmem:[%s5121_s8 + $0x12c] sm:$0xff] %v250_v25  ;;  %v356_v14 = vld [vmem:[%s5116_s7 + $0x828] sm:$0xff]  ;;  %v358_v15 = vld [vmem:[%s5116_s7 + $0x834] sm:$0xff]  ;;  %v360_v16 = vld [vmem:[%s5116_s7 + $0x840] sm:$0xff] }
  0x2c   : > { %253 = vst [vmem:[%s5121_s8 + $0x138] sm:$0xff] %v252_v26  ;;  %v362_v17 = vld [vmem:[%s5116_s7 + $0x84c] sm:$0xff]  ;;  %v364_v18 = vld [vmem:[%s5116_s7 + $0x858] sm:$0xff]  ;;  %v366_v19 = vld [vmem:[%s5116_s7 + $0x864] sm:$0xff] }
  0x2d   : > { %255 = vst [vmem:[%s5121_s8 + $0x144] sm:$0xff] %v254_v27  ;;  %v368_v20 = vld [vmem:[%s5116_s7 + $0x870] sm:$0xff]  ;;  %v370_v21 = vld [vmem:[%s5116_s7 + $0x87c] sm:$0xff]  ;;  %v372_v22 = vld [vmem:[%s5116_s7 + $0x888] sm:$0xff] }
  0x2e   : > { %257 = vst [vmem:[%s5121_s8 + $0x150] sm:$0xff] %v256_v28  ;;  %v374_v23 = vld [vmem:[%s5116_s7 + $0x894] sm:$0xff]  ;;  %v376_v24 = vld [vmem:[%s5116_s7 + $0x8a0] sm:$0xff]  ;;  %v378_v25 = vld [vmem:[%s5116_s7 + $0x8ac] sm:$0xff] }
  0x2f   : > { %259 = vst [vmem:[%s5121_s8 + $0x15c] sm:$0xff] %v258_v29  ;;  %v380_v26 = vld [vmem:[%s5116_s7 + $0x8b8] sm:$0xff]  ;;  %v382_v27 = vld [vmem:[%s5116_s7 + $0x8c4] sm:$0xff]  ;;  %v384_v28 = vld [vmem:[%s5116_s7 + $0x8d0] sm:$0xff] }
  0x30   : > { %261 = vst [vmem:[%s5121_s8 + $0x168] sm:$0xff] %v260_v30  ;;  %v386_v29 = vld [vmem:[%s5116_s7 + $0x8dc] sm:$0xff]  ;;  %v388_v30 = vld [vmem:[%s5116_s7 + $0x8e8] sm:$0xff] }
  0x31   : > { %263 = vst [vmem:[%s5121_s8 + $0x174] sm:$0xff] %v262_v31  ;;  %v390_v31 = vld [vmem:[%s5116_s7 + $0x8f4] sm:$0xff] }
  0x32   : > { %265 = vst [vmem:[%s5121_s8 + $0x180] sm:$0xff] %v264_v32  ;;  %v3636_v32 = vld [vmem:[%s5116_s7 + $0x8] sm:$0xf] }
  0x33   : > { %267 = vst [vmem:[%s5121_s8 + $0x18c] sm:$0xff] %v266_v33  ;;  %v3638_v33 = vld [vmem:[%s5116_s7 + $0x14] sm:$0xf] }
  0x34   : > { %269 = vst [vmem:[%s5121_s8 + $0x198] sm:$0xff] %v268_v34  ;;  %v3640_v34 = vld [vmem:[%s5116_s7 + $0x20] sm:$0xf] }
  0x35   : > { %271 = vst [vmem:[%s5121_s8 + $0x1a4] sm:$0xff] %v270_v35  ;;  %v3642_v35 = vld [vmem:[%s5116_s7 + $0x2c] sm:$0xf] }
  0x36   : > { %273 = vst [vmem:[%s5121_s8 + $0x1b0] sm:$0xff] %v272_v36  ;;  %v3644_v36 = vld [vmem:[%s5116_s7 + $0x38] sm:$0xf] }
  0x37   : > { %275 = vst [vmem:[%s5121_s8 + $0x1bc] sm:$0xff] %v274_v37  ;;  %v3646_v37 = vld [vmem:[%s5116_s7 + $0x44] sm:$0xf] }
  0x38   : > { %277 = vst [vmem:[%s5121_s8 + $0x1c8] sm:$0xff] %v276_v38  ;;  %v3648_v38 = vld [vmem:[%s5116_s7 + $0x50] sm:$0xf] }
  0x39   : > { %279 = vst [vmem:[%s5121_s8 + $0x1d4] sm:$0xff] %v278_v39  ;;  %v3650_v39 = vld [vmem:[%s5116_s7 + $0x5c] sm:$0xf] }
  0x3a   : > { %281 = vst [vmem:[%s5121_s8 + $0x1e0] sm:$0xff] %v280_v40  ;;  %v3652_v40 = vld [vmem:[%s5116_s7 + $0x68] sm:$0xf] }
  0x3b   : > { %283 = vst [vmem:[%s5121_s8 + $0x1ec] sm:$0xff] %v282_v41  ;;  %v3654_v41 = vld [vmem:[%s5116_s7 + $0x74] sm:$0xf] }
  0x3c   : > { %285 = vst [vmem:[%s5121_s8 + $0x1f8] sm:$0xff] %v284_v42  ;;  %v3656_v42 = vld [vmem:[%s5116_s7 + $0x80] sm:$0xf] }
  0x3d   : > { %287 = vst [vmem:[%s5121_s8 + $0x204] sm:$0xff] %v286_v43  ;;  %v3658_v43 = vld [vmem:[%s5116_s7 + $0x8c] sm:$0xf] }
  0x3e   : > { %289 = vst [vmem:[%s5121_s8 + $0x210] sm:$0xff] %v288_v44  ;;  %v3660_v44 = vld [vmem:[%s5116_s7 + $0x98] sm:$0xf] }
  0x3f   : > { %291 = vst [vmem:[%s5121_s8 + $0x21c] sm:$0xff] %v290_v45  ;;  %v3662_v45 = vld [vmem:[%s5116_s7 + $0xa4] sm:$0xf] }
  0x40   : > { %293 = vst [vmem:[%s5121_s8 + $0x228] sm:$0xff] %v292_v46  ;;  %v3664_v46 = vld [vmem:[%s5116_s7 + $0xb0] sm:$0xf] }
  0x41   : > { %295 = vst [vmem:[%s5121_s8 + $0x234] sm:$0xff] %v294_v47  ;;  %v3666_v47 = vld [vmem:[%s5116_s7 + $0xbc] sm:$0xf] }
  0x42   : > { %297 = vst [vmem:[%s5121_s8 + $0x240] sm:$0xff] %v296_v48  ;;  %v3668_v48 = vld [vmem:[%s5116_s7 + $0xc8] sm:$0xf] }
  0x43   : > { %299 = vst [vmem:[%s5121_s8 + $0x24c] sm:$0xff] %v298_v49  ;;  %v3670_v49 = vld [vmem:[%s5116_s7 + $0xd4] sm:$0xf] }
  0x44   : > { %301 = vst [vmem:[%s5121_s8 + $0x258] sm:$0xff] %v300_v50  ;;  %v3672_v50 = vld [vmem:[%s5116_s7 + $0xe0] sm:$0xf] }
  0x45   : > { %303 = vst [vmem:[%s5121_s8 + $0x264] sm:$0xff] %v302_v51  ;;  %v3674_v51 = vld [vmem:[%s5116_s7 + $0xec] sm:$0xf] }
  0x46   : > { %305 = vst [vmem:[%s5121_s8 + $0x270] sm:$0xff] %v304_v52  ;;  %v3676_v52 = vld [vmem:[%s5116_s7 + $0xf8] sm:$0xf] }
  0x47   : > { %307 = vst [vmem:[%s5121_s8 + $0x27c] sm:$0xff] %v306_v53  ;;  %v3678_v53 = vld [vmem:[%s5116_s7 + $0x104] sm:$0xf] }
  0x48   : > { %309 = vst [vmem:[%s5121_s8 + $0x288] sm:$0xff] %v308_v54  ;;  %v3680_v54 = vld [vmem:[%s5116_s7 + $0x110] sm:$0xf] }
  0x49   : > { %311 = vst [vmem:[%s5121_s8 + $0x294] sm:$0xff] %v310_v55  ;;  %v3682_v55 = vld [vmem:[%s5116_s7 + $0x11c] sm:$0xf] }
  0x4a   : > { %313 = vst [vmem:[%s5121_s8 + $0x2a0] sm:$0xff] %v312_v56  ;;  %v3684_v56 = vld [vmem:[%s5116_s7 + $0x128] sm:$0xf] }
  0x4b   : > { %315 = vst [vmem:[%s5121_s8 + $0x2ac] sm:$0xff] %v314_v57  ;;  %v3686_v57 = vld [vmem:[%s5116_s7 + $0x134] sm:$0xf] }
  0x4c   : > { %317 = vst [vmem:[%s5121_s8 + $0x2b8] sm:$0xff] %v316_v58  ;;  %v3688_v58 = vld [vmem:[%s5116_s7 + $0x140] sm:$0xf] }
  0x4d   : > { %319 = vst [vmem:[%s5121_s8 + $0x2c4] sm:$0xff] %v318_v59  ;;  %v3690_v59 = vld [vmem:[%s5116_s7 + $0x14c] sm:$0xf] }
  0x4e   : > { %321 = vst [vmem:[%s5121_s8 + $0x2d0] sm:$0xff] %v320_v60  ;;  %v3692_v60 = vld [vmem:[%s5116_s7 + $0x158] sm:$0xf] }
  0x4f   : > { %323 = vst [vmem:[%s5121_s8 + $0x2dc] sm:$0xff] %v322_v61  ;;  %v3694_v61 = vld [vmem:[%s5116_s7 + $0x164] sm:$0xf] }
  0x50   : > { %325 = vst [vmem:[%s5121_s8 + $0x2e8] sm:$0xff] %v324_v62  ;;  %v3696_v62 = vld [vmem:[%s5116_s7 + $0x170] sm:$0xf] }
  0x51   : > { %327 = vst [vmem:[%s5121_s8 + $0x2f4] sm:$0xff] %v326_v63  ;;  %v3698_v63 = vld [vmem:[%s5116_s7 + $0x17c] sm:$0xf] }
  0x52   : > { %329 = vst [vmem:[%s5121_s8 + $0x300] sm:$0xff] %v328_v0  ;;  %v3700_v0 = vld [vmem:[%s5116_s7 + $0x188] sm:$0xf] }
  0x53   : > { %331 = vst [vmem:[%s5121_s8 + $0x30c] sm:$0xff] %v330_v1  ;;  %v3702_v1 = vld [vmem:[%s5116_s7 + $0x194] sm:$0xf] }
  0x54   : > { %333 = vst [vmem:[%s5121_s8 + $0x318] sm:$0xff] %v332_v2  ;;  %v3704_v2 = vld [vmem:[%s5116_s7 + $0x1a0] sm:$0xf] }
  0x55   : > { %335 = vst [vmem:[%s5121_s8 + $0x324] sm:$0xff] %v334_v3  ;;  %v3706_v3 = vld [vmem:[%s5116_s7 + $0x1ac] sm:$0xf] }
  0x56   : > { %337 = vst [vmem:[%s5121_s8 + $0x330] sm:$0xff] %v336_v4  ;;  %v3708_v4 = vld [vmem:[%s5116_s7 + $0x1b8] sm:$0xf] }
  0x57   : > { %339 = vst [vmem:[%s5121_s8 + $0x33c] sm:$0xff] %v338_v5  ;;  %v3710_v5 = vld [vmem:[%s5116_s7 + $0x1c4] sm:$0xf] }
  0x58   : > { %341 = vst [vmem:[%s5121_s8 + $0x348] sm:$0xff] %v340_v6  ;;  %v3712_v6 = vld [vmem:[%s5116_s7 + $0x1d0] sm:$0xf] }
  0x59   : > { %343 = vst [vmem:[%s5121_s8 + $0x354] sm:$0xff] %v342_v7  ;;  %v3714_v7 = vld [vmem:[%s5116_s7 + $0x1dc] sm:$0xf] }
  0x5a   : > { %345 = vst [vmem:[%s5121_s8 + $0x360] sm:$0xff] %v344_v8  ;;  %v3716_v8 = vld [vmem:[%s5116_s7 + $0x1e8] sm:$0xf] }
  0x5b   : > { %347 = vst [vmem:[%s5121_s8 + $0x36c] sm:$0xff] %v346_v9  ;;  %v3718_v9 = vld [vmem:[%s5116_s7 + $0x1f4] sm:$0xf] }
  0x5c   : > { %349 = vst [vmem:[%s5121_s8 + $0x378] sm:$0xff] %v348_v10  ;;  %v3720_v10 = vld [vmem:[%s5116_s7 + $0x200] sm:$0xf] }
  0x5d   : > { %351 = vst [vmem:[%s5121_s8 + $0x384] sm:$0xff] %v350_v11  ;;  %v3722_v11 = vld [vmem:[%s5116_s7 + $0x20c] sm:$0xf] }
  0x5e   : > { %353 = vst [vmem:[%s5121_s8 + $0x390] sm:$0xff] %v352_v12  ;;  %v3724_v12 = vld [vmem:[%s5116_s7 + $0x218] sm:$0xf] }
  0x5f   : > { %355 = vst [vmem:[%s5121_s8 + $0x39c] sm:$0xff] %v354_v13  ;;  %v3726_v13 = vld [vmem:[%s5116_s7 + $0x224] sm:$0xf] }
  0x60   : > { %357 = vst [vmem:[%s5121_s8 + $0x3a8] sm:$0xff] %v356_v14  ;;  %v3728_v14 = vld [vmem:[%s5116_s7 + $0x230] sm:$0xf] }
  0x61   : > { %359 = vst [vmem:[%s5121_s8 + $0x3b4] sm:$0xff] %v358_v15  ;;  %v3730_v15 = vld [vmem:[%s5116_s7 + $0x23c] sm:$0xf] }
  0x62   : > { %361 = vst [vmem:[%s5121_s8 + $0x3c0] sm:$0xff] %v360_v16  ;;  %v3732_v16 = vld [vmem:[%s5116_s7 + $0x6c8] sm:$0xf] }
  0x63   : > { %363 = vst [vmem:[%s5121_s8 + $0x3cc] sm:$0xff] %v362_v17  ;;  %v3734_v17 = vld [vmem:[%s5116_s7 + $0x6d4] sm:$0xf] }
  0x64   : > { %365 = vst [vmem:[%s5121_s8 + $0x3d8] sm:$0xff] %v364_v18  ;;  %v3736_v18 = vld [vmem:[%s5116_s7 + $0x6e0] sm:$0xf] }
  0x65   : > { %367 = vst [vmem:[%s5121_s8 + $0x3e4] sm:$0xff] %v366_v19  ;;  %v3738_v19 = vld [vmem:[%s5116_s7 + $0x6ec] sm:$0xf] }
  0x66   : > { %369 = vst [vmem:[%s5121_s8 + $0x3f0] sm:$0xff] %v368_v20  ;;  %v3740_v20 = vld [vmem:[%s5116_s7 + $0x6f8] sm:$0xf] }
  0x67   : > { %371 = vst [vmem:[%s5121_s8 + $0x3fc] sm:$0xff] %v370_v21  ;;  %v3742_v21 = vld [vmem:[%s5116_s7 + $0x704] sm:$0xf] }
  0x68   : > { %373 = vst [vmem:[%s5121_s8 + $0x408] sm:$0xff] %v372_v22  ;;  %v3744_v22 = vld [vmem:[%s5116_s7 + $0x710] sm:$0xf] }
  0x69   : > { %375 = vst [vmem:[%s5121_s8 + $0x414] sm:$0xff] %v374_v23  ;;  %v3746_v23 = vld [vmem:[%s5116_s7 + $0x71c] sm:$0xf] }
  0x6a   : > { %377 = vst [vmem:[%s5121_s8 + $0x420] sm:$0xff] %v376_v24  ;;  %v3748_v24 = vld [vmem:[%s5116_s7 + $0x728] sm:$0xf] }
  0x6b   : > { %379 = vst [vmem:[%s5121_s8 + $0x42c] sm:$0xff] %v378_v25  ;;  %v3750_v25 = vld [vmem:[%s5116_s7 + $0x734] sm:$0xf] }
  0x6c   : > { %381 = vst [vmem:[%s5121_s8 + $0x438] sm:$0xff] %v380_v26  ;;  %v3752_v26 = vld [vmem:[%s5116_s7 + $0x740] sm:$0xf] }
  0x6d   : > { %383 = vst [vmem:[%s5121_s8 + $0x444] sm:$0xff] %v382_v27  ;;  %v3754_v27 = vld [vmem:[%s5116_s7 + $0x74c] sm:$0xf] }
  0x6e   : > { %385 = vst [vmem:[%s5121_s8 + $0x450] sm:$0xff] %v384_v28  ;;  %v3756_v28 = vld [vmem:[%s5116_s7 + $0x758] sm:$0xf] }
  0x6f   : > { %387 = vst [vmem:[%s5121_s8 + $0x45c] sm:$0xff] %v386_v29  ;;  %v3758_v29 = vld [vmem:[%s5116_s7 + $0x764] sm:$0xf] }
  0x70   : > { %389 = vst [vmem:[%s5121_s8 + $0x468] sm:$0xff] %v388_v30  ;;  %v3760_v30 = vld [vmem:[%s5116_s7 + $0x770] sm:$0xf] }
  0x71   : > { %391 = vst [vmem:[%s5121_s8 + $0x474] sm:$0xff] %v390_v31  ;;  %v3762_v31 = vld [vmem:[%s5116_s7 + $0x77c] sm:$0xf] }
  0x72   : > { %3637 = vst [vmem:[%s5121_s8 + $0x8] sm:$0xf] %v3636_v32  ;;  %v3764_v32 = vld [vmem:[%s5116_s7 + $0x788] sm:$0xf] }
  0x73   : > { %3639 = vst [vmem:[%s5121_s8 + $0x14] sm:$0xf] %v3638_v33  ;;  %v3766_v33 = vld [vmem:[%s5116_s7 + $0x794] sm:$0xf] }
  0x74   : > { %3641 = vst [vmem:[%s5121_s8 + $0x20] sm:$0xf] %v3640_v34  ;;  %v3768_v34 = vld [vmem:[%s5116_s7 + $0x7a0] sm:$0xf] }
  0x75   : > { %3643 = vst [vmem:[%s5121_s8 + $0x2c] sm:$0xf] %v3642_v35  ;;  %v3770_v35 = vld [vmem:[%s5116_s7 + $0x7ac] sm:$0xf] }
  0x76   : > { %3645 = vst [vmem:[%s5121_s8 + $0x38] sm:$0xf] %v3644_v36  ;;  %v3772_v36 = vld [vmem:[%s5116_s7 + $0x7b8] sm:$0xf] }
  0x77   : > { %3647 = vst [vmem:[%s5121_s8 + $0x44] sm:$0xf] %v3646_v37  ;;  %v3774_v37 = vld [vmem:[%s5116_s7 + $0x7c4] sm:$0xf] }
  0x78   : > { %3649 = vst [vmem:[%s5121_s8 + $0x50] sm:$0xf] %v3648_v38  ;;  %v3776_v38 = vld [vmem:[%s5116_s7 + $0x7d0] sm:$0xf] }
  0x79   : > { %3651 = vst [vmem:[%s5121_s8 + $0x5c] sm:$0xf] %v3650_v39  ;;  %v3778_v39 = vld [vmem:[%s5116_s7 + $0x7dc] sm:$0xf] }
  0x7a   : > { %3653 = vst [vmem:[%s5121_s8 + $0x68] sm:$0xf] %v3652_v40  ;;  %v3780_v40 = vld [vmem:[%s5116_s7 + $0x7e8] sm:$0xf] }
  0x7b   : > { %3655 = vst [vmem:[%s5121_s8 + $0x74] sm:$0xf] %v3654_v41  ;;  %v3782_v41 = vld [vmem:[%s5116_s7 + $0x7f4] sm:$0xf] }
  0x7c   : > { %3657 = vst [vmem:[%s5121_s8 + $0x80] sm:$0xf] %v3656_v42  ;;  %v3784_v42 = vld [vmem:[%s5116_s7 + $0x800] sm:$0xf] }
  0x7d   : > { %3659 = vst [vmem:[%s5121_s8 + $0x8c] sm:$0xf] %v3658_v43  ;;  %v3786_v43 = vld [vmem:[%s5116_s7 + $0x80c] sm:$0xf] }
  0x7e   : > { %3661 = vst [vmem:[%s5121_s8 + $0x98] sm:$0xf] %v3660_v44  ;;  %v3788_v44 = vld [vmem:[%s5116_s7 + $0x818] sm:$0xf] }
  0x7f   : > { %3663 = vst [vmem:[%s5121_s8 + $0xa4] sm:$0xf] %v3662_v45  ;;  %v3790_v45 = vld [vmem:[%s5116_s7 + $0x824] sm:$0xf] }
  0x80   : > { %3665 = vst [vmem:[%s5121_s8 + $0xb0] sm:$0xf] %v3664_v46  ;;  %v3792_v46 = vld [vmem:[%s5116_s7 + $0x830] sm:$0xf] }
  0x81   : > { %3667 = vst [vmem:[%s5121_s8 + $0xbc] sm:$0xf] %v3666_v47  ;;  %v3794_v47 = vld [vmem:[%s5116_s7 + $0x83c] sm:$0xf] }
  0x82   : > { %3669 = vst [vmem:[%s5121_s8 + $0xc8] sm:$0xf] %v3668_v48  ;;  %v3796_v48 = vld [vmem:[%s5116_s7 + $0x848] sm:$0xf] }
  0x83   : > { %3671 = vst [vmem:[%s5121_s8 + $0xd4] sm:$0xf] %v3670_v49  ;;  %v3798_v49 = vld [vmem:[%s5116_s7 + $0x854] sm:$0xf] }
  0x84   : > { %3673 = vst [vmem:[%s5121_s8 + $0xe0] sm:$0xf] %v3672_v50  ;;  %v3800_v50 = vld [vmem:[%s5116_s7 + $0x860] sm:$0xf] }
  0x85   : > { %3675 = vst [vmem:[%s5121_s8 + $0xec] sm:$0xf] %v3674_v51  ;;  %v3802_v51 = vld [vmem:[%s5116_s7 + $0x86c] sm:$0xf] }
  0x86   : > { %3677 = vst [vmem:[%s5121_s8 + $0xf8] sm:$0xf] %v3676_v52  ;;  %v3804_v52 = vld [vmem:[%s5116_s7 + $0x878] sm:$0xf] }
  0x87   : > { %3679 = vst [vmem:[%s5121_s8 + $0x104] sm:$0xf] %v3678_v53  ;;  %v3806_v53 = vld [vmem:[%s5116_s7 + $0x884] sm:$0xf] }
  0x88   : > { %3681 = vst [vmem:[%s5121_s8 + $0x110] sm:$0xf] %v3680_v54  ;;  %v3808_v54 = vld [vmem:[%s5116_s7 + $0x890] sm:$0xf] }
  0x89   : > { %3683 = vst [vmem:[%s5121_s8 + $0x11c] sm:$0xf] %v3682_v55  ;;  %v3810_v55 = vld [vmem:[%s5116_s7 + $0x89c] sm:$0xf] }
  0x8a   : > { %3685 = vst [vmem:[%s5121_s8 + $0x128] sm:$0xf] %v3684_v56  ;;  %v3812_v56 = vld [vmem:[%s5116_s7 + $0x8a8] sm:$0xf] }
  0x8b   : > { %3687 = vst [vmem:[%s5121_s8 + $0x134] sm:$0xf] %v3686_v57  ;;  %v3814_v57 = vld [vmem:[%s5116_s7 + $0x8b4] sm:$0xf] }
  0x8c   : > { %3689 = vst [vmem:[%s5121_s8 + $0x140] sm:$0xf] %v3688_v58  ;;  %v3816_v58 = vld [vmem:[%s5116_s7 + $0x8c0] sm:$0xf] }
  0x8d   : > { %3691 = vst [vmem:[%s5121_s8 + $0x14c] sm:$0xf] %v3690_v59  ;;  %v3818_v59 = vld [vmem:[%s5116_s7 + $0x8cc] sm:$0xf] }
  0x8e   : > { %3693 = vst [vmem:[%s5121_s8 + $0x158] sm:$0xf] %v3692_v60  ;;  %v3820_v60 = vld [vmem:[%s5116_s7 + $0x8d8] sm:$0xf] }
  0x8f   : > { %3695 = vst [vmem:[%s5121_s8 + $0x164] sm:$0xf] %v3694_v61  ;;  %v3822_v61 = vld [vmem:[%s5116_s7 + $0x8e4] sm:$0xf] }
  0x90   : > { %3697 = vst [vmem:[%s5121_s8 + $0x170] sm:$0xf] %v3696_v62  ;;  %v3824_v62 = vld [vmem:[%s5116_s7 + $0x8f0] sm:$0xf] }
  0x91   : > { %3699 = vst [vmem:[%s5121_s8 + $0x17c] sm:$0xf] %v3698_v63  ;;  %v3826_v63 = vld [vmem:[%s5116_s7 + $0x8fc] sm:$0xf] }
  0x92   : > { %3701 = vst [vmem:[%s5121_s8 + $0x188] sm:$0xf] %v3700_v0 }
  0x93   : > { %3703 = vst [vmem:[%s5121_s8 + $0x194] sm:$0xf] %v3702_v1 }
  0x94   : > { %3705 = vst [vmem:[%s5121_s8 + $0x1a0] sm:$0xf] %v3704_v2 }
  0x95   : > { %3707 = vst [vmem:[%s5121_s8 + $0x1ac] sm:$0xf] %v3706_v3 }
  0x96   : > { %3709 = vst [vmem:[%s5121_s8 + $0x1b8] sm:$0xf] %v3708_v4 }
  0x97   : > { %3711 = vst [vmem:[%s5121_s8 + $0x1c4] sm:$0xf] %v3710_v5 }
  0x98   : > { %3713 = vst [vmem:[%s5121_s8 + $0x1d0] sm:$0xf] %v3712_v6 }
  0x99   : > { %3715 = vst [vmem:[%s5121_s8 + $0x1dc] sm:$0xf] %v3714_v7 }
  0x9a   : > { %3717 = vst [vmem:[%s5121_s8 + $0x1e8] sm:$0xf] %v3716_v8 }
  0x9b   : > { %3719 = vst [vmem:[%s5121_s8 + $0x1f4] sm:$0xf] %v3718_v9 }
  0x9c   : > { %3721 = vst [vmem:[%s5121_s8 + $0x200] sm:$0xf] %v3720_v10 }
  0x9d   : > { %3723 = vst [vmem:[%s5121_s8 + $0x20c] sm:$0xf] %v3722_v11 }
  0x9e   : > { %3725 = vst [vmem:[%s5121_s8 + $0x218] sm:$0xf] %v3724_v12 }
  0x9f   : > { %3727 = vst [vmem:[%s5121_s8 + $0x224] sm:$0xf] %v3726_v13 }
  0xa0   : > { %3729 = vst [vmem:[%s5121_s8 + $0x230] sm:$0xf] %v3728_v14 }
  0xa1   : > { %3731 = vst [vmem:[%s5121_s8 + $0x23c] sm:$0xf] %v3730_v15 }
  0xa2   : > { %3733 = vst [vmem:[%s5121_s8 + $0x248] sm:$0xf] %v3732_v16 }
  0xa3   : > { %3735 = vst [vmem:[%s5121_s8 + $0x254] sm:$0xf] %v3734_v17 }
  0xa4   : > { %3737 = vst [vmem:[%s5121_s8 + $0x260] sm:$0xf] %v3736_v18 }
  0xa5   : > { %3739 = vst [vmem:[%s5121_s8 + $0x26c] sm:$0xf] %v3738_v19 }
  0xa6   : > { %3741 = vst [vmem:[%s5121_s8 + $0x278] sm:$0xf] %v3740_v20 }
  0xa7   : > { %3743 = vst [vmem:[%s5121_s8 + $0x284] sm:$0xf] %v3742_v21 }
  0xa8   : > { %3745 = vst [vmem:[%s5121_s8 + $0x290] sm:$0xf] %v3744_v22 }
  0xa9   : > { %3747 = vst [vmem:[%s5121_s8 + $0x29c] sm:$0xf] %v3746_v23 }
  0xaa   : > { %3749 = vst [vmem:[%s5121_s8 + $0x2a8] sm:$0xf] %v3748_v24 }
  0xab   : > { %3751 = vst [vmem:[%s5121_s8 + $0x2b4] sm:$0xf] %v3750_v25 }
  0xac   : > { %3753 = vst [vmem:[%s5121_s8 + $0x2c0] sm:$0xf] %v3752_v26 }
  0xad   : > { %3755 = vst [vmem:[%s5121_s8 + $0x2cc] sm:$0xf] %v3754_v27 }
  0xae   : > { %3757 = vst [vmem:[%s5121_s8 + $0x2d8] sm:$0xf] %v3756_v28 }
  0xaf   : > { %3759 = vst [vmem:[%s5121_s8 + $0x2e4] sm:$0xf] %v3758_v29 }
  0xb0   : > { %3761 = vst [vmem:[%s5121_s8 + $0x2f0] sm:$0xf] %v3760_v30 }
  0xb1   : > { %3763 = vst [vmem:[%s5121_s8 + $0x2fc] sm:$0xf] %v3762_v31 }
  0xb2   : > { %3765 = vst [vmem:[%s5121_s8 + $0x308] sm:$0xf] %v3764_v32 }
  0xb3   : > { %3767 = vst [vmem:[%s5121_s8 + $0x314] sm:$0xf] %v3766_v33 }
  0xb4   : > { %3769 = vst [vmem:[%s5121_s8 + $0x320] sm:$0xf] %v3768_v34 }
  0xb5   : > { %3771 = vst [vmem:[%s5121_s8 + $0x32c] sm:$0xf] %v3770_v35 }
  0xb6   : > { %3773 = vst [vmem:[%s5121_s8 + $0x338] sm:$0xf] %v3772_v36 }
  0xb7   : > { %3775 = vst [vmem:[%s5121_s8 + $0x344] sm:$0xf] %v3774_v37 }
  0xb8   : > { %3777 = vst [vmem:[%s5121_s8 + $0x350] sm:$0xf] %v3776_v38 }
  0xb9   : > { %3779 = vst [vmem:[%s5121_s8 + $0x35c] sm:$0xf] %v3778_v39 }
  0xba   : > { %3781 = vst [vmem:[%s5121_s8 + $0x368] sm:$0xf] %v3780_v40 }
  0xbb   : > { %3783 = vst [vmem:[%s5121_s8 + $0x374] sm:$0xf] %v3782_v41 }
  0xbc   : > { %3785 = vst [vmem:[%s5121_s8 + $0x380] sm:$0xf] %v3784_v42 }
  0xbd   : > { %3787 = vst [vmem:[%s5121_s8 + $0x38c] sm:$0xf] %v3786_v43 }
  0xbe   : > { %3789 = vst [vmem:[%s5121_s8 + $0x398] sm:$0xf] %v3788_v44 }
  0xbf   : > { %3791 = vst [vmem:[%s5121_s8 + $0x3a4] sm:$0xf] %v3790_v45 }
  0xc0   : > { %3793 = vst [vmem:[%s5121_s8 + $0x3b0] sm:$0xf] %v3792_v46 }
  0xc1   : > { %3795 = vst [vmem:[%s5121_s8 + $0x3bc] sm:$0xf] %v3794_v47 }
  0xc2   : > { %3797 = vst [vmem:[%s5121_s8 + $0x3c8] sm:$0xf] %v3796_v48 }
  0xc3   : > { %3799 = vst [vmem:[%s5121_s8 + $0x3d4] sm:$0xf] %v3798_v49 }
  0xc4   : > { %3801 = vst [vmem:[%s5121_s8 + $0x3e0] sm:$0xf] %v3800_v50 }
  0xc5   : > { %3803 = vst [vmem:[%s5121_s8 + $0x3ec] sm:$0xf] %v3802_v51 }
  0xc6   : > { %3805 = vst [vmem:[%s5121_s8 + $0x3f8] sm:$0xf] %v3804_v52 }
  0xc7   : > { %3807 = vst [vmem:[%s5121_s8 + $0x404] sm:$0xf] %v3806_v53 }
  0xc8   : > { %3809 = vst [vmem:[%s5121_s8 + $0x410] sm:$0xf] %v3808_v54 }
  0xc9   : > { %3811 = vst [vmem:[%s5121_s8 + $0x41c] sm:$0xf] %v3810_v55 }
  0xca   : > { %3813 = vst [vmem:[%s5121_s8 + $0x428] sm:$0xf] %v3812_v56 }
  0xcb   : > { %3815 = vst [vmem:[%s5121_s8 + $0x434] sm:$0xf] %v3814_v57 }
  0xcc   : > { %3817 = vst [vmem:[%s5121_s8 + $0x440] sm:$0xf] %v3816_v58 }
  0xcd   : > { %3819 = vst [vmem:[%s5121_s8 + $0x44c] sm:$0xf] %v3818_v59 }
  0xce   : > { %3821 = vst [vmem:[%s5121_s8 + $0x458] sm:$0xf] %v3820_v60 }
  0xcf   : > { %3823 = vst [vmem:[%s5121_s8 + $0x464] sm:$0xf] %v3822_v61 }
  0xd0   : > { %3825 = vst [vmem:[%s5121_s8 + $0x470] sm:$0xf] %v3824_v62 }
  0xd1   : > { %3827 = vst [vmem:[%s5121_s8 + $0x47c] sm:$0xf] %v3826_v63 }
  0xd2 PF: > { %597 = sbr.rel (!%p5104_p3) target bundleno = 247 (0xf7), region = 58  ;;  %s599_s9 = sand.u32 (%p5104_p3), 1, %s5023_s19  }
  0xd3   : > { %s4745_s10 = smul.u32 (%p5104_p3), 12, %s5027_s20 }
  0xd4   : > { %s4956_s11 = smul.u32 (%p5104_p3), 192, %s599_s9 }
  0xd5   : > { %s5511_s14 = scalar_lea.vmem (%p5104_p3), %s6814_s1, %s4745_s10 }
  0xd6   : > { %v619_v0 = vld [vmem:[%s5511_s14] sm:$0xff] (%p5104_p3)  ;;  %v623_v2 = vld [vmem:[%s5511_s14 + $0x48] sm:$0xff] (%p5104_p3)  ;;  %s5516_s15 = scalar_lea.vmem (%p5104_p3), [#allocation3], %s4956_s11  ;;  %v627_v4 = vld [vmem:[%s5511_s14 + $0x90] sm:$0xff] (%p5104_p3) }
  0xd7   : > { %v621_v1 = vld [vmem:[%s5511_s14 + $0x24] sm:$0xff]  ;;  %620 = vst [vmem:[%s5516_s15] sm:$0xff] %v619_v0  ;;  %v625_v3 = vld [vmem:[%s5511_s14 + $0x6c] sm:$0xff]  ;;  %v629_v5 = vld [vmem:[%s5511_s14 + $0xb4] sm:$0xff] }
  0xd8   : > { %622 = vst [vmem:[%s5516_s15 + $0xc] sm:$0xff] %v621_v1  ;;  %v631_v6 = vld [vmem:[%s5511_s14 + $0xd8] sm:$0xff]  ;;  %v635_v8 = vld [vmem:[%s5511_s14 + $0x120] sm:$0xff]  ;;  %v639_v10 = vld [vmem:[%s5511_s14 + $0x168] sm:$0xff] }
  0xd9   : > { %624 = vst [vmem:[%s5516_s15 + $0x18] sm:$0xff] %v623_v2  ;;  %v633_v7 = vld [vmem:[%s5511_s14 + $0xfc] sm:$0xff]  ;;  %v637_v9 = vld [vmem:[%s5511_s14 + $0x144] sm:$0xff]  ;;  %v641_v11 = vld [vmem:[%s5511_s14 + $0x18c] sm:$0xff] }
  0xda   : > { %626 = vst [vmem:[%s5516_s15 + $0x24] sm:$0xff] %v625_v3  ;;  %v643_v12 = vld [vmem:[%s5511_s14 + $0x1b0] sm:$0xff]  ;;  %v647_v14 = vld [vmem:[%s5511_s14 + $0x1f8] sm:$0xff]  ;;  %v3829_v16 = vld [vmem:[%s5511_s14 + $0x8] sm:$0xf] }
  0xdb   : > { %628 = vst [vmem:[%s5516_s15 + $0x30] sm:$0xff] %v627_v4  ;;  %v645_v13 = vld [vmem:[%s5511_s14 + $0x1d4] sm:$0xff]  ;;  %v649_v15 = vld [vmem:[%s5511_s14 + $0x21c] sm:$0xff]  ;;  %v3831_v17 = vld [vmem:[%s5511_s14 + $0x2c] sm:$0xf] }
  0xdc   : > { %630 = vst [vmem:[%s5516_s15 + $0x3c] sm:$0xff] %v629_v5  ;;  %v3833_v18 = vld [vmem:[%s5511_s14 + $0x50] sm:$0xf]  ;;  %v3835_v19 = vld [vmem:[%s5511_s14 + $0x74] sm:$0xf] }
  0xdd   : > { %632 = vst [vmem:[%s5516_s15 + $0x48] sm:$0xff] %v631_v6  ;;  %v3837_v20 = vld [vmem:[%s5511_s14 + $0x98] sm:$0xf]  ;;  %v3839_v21 = vld [vmem:[%s5511_s14 + $0xbc] sm:$0xf] }
  0xde   : > { %634 = vst [vmem:[%s5516_s15 + $0x54] sm:$0xff] %v633_v7  ;;  %v3841_v22 = vld [vmem:[%s5511_s14 + $0xe0] sm:$0xf]  ;;  %v3843_v23 = vld [vmem:[%s5511_s14 + $0x104] sm:$0xf] }
  0xdf   : > { %636 = vst [vmem:[%s5516_s15 + $0x60] sm:$0xff] %v635_v8  ;;  %v3845_v24 = vld [vmem:[%s5511_s14 + $0x128] sm:$0xf]  ;;  %v3847_v25 = vld [vmem:[%s5511_s14 + $0x14c] sm:$0xf] }
  0xe0   : > { %638 = vst [vmem:[%s5516_s15 + $0x6c] sm:$0xff] %v637_v9  ;;  %v3849_v26 = vld [vmem:[%s5511_s14 + $0x170] sm:$0xf]  ;;  %v3851_v27 = vld [vmem:[%s5511_s14 + $0x194] sm:$0xf] }
  0xe1   : > { %640 = vst [vmem:[%s5516_s15 + $0x78] sm:$0xff] %v639_v10  ;;  %v3853_v28 = vld [vmem:[%s5511_s14 + $0x1b8] sm:$0xf]  ;;  %v3855_v29 = vld [vmem:[%s5511_s14 + $0x1dc] sm:$0xf] }
  0xe2   : > { %642 = vst [vmem:[%s5516_s15 + $0x84] sm:$0xff] %v641_v11  ;;  %v3857_v30 = vld [vmem:[%s5511_s14 + $0x200] sm:$0xf]  ;;  %v3859_v31 = vld [vmem:[%s5511_s14 + $0x224] sm:$0xf] }
  0xe3   : > { %644 = vst [vmem:[%s5516_s15 + $0x90] sm:$0xff] %v643_v12 }
  0xe4   : > { %646 = vst [vmem:[%s5516_s15 + $0x9c] sm:$0xff] %v645_v13 }
  0xe5   : > { %648 = vst [vmem:[%s5516_s15 + $0xa8] sm:$0xff] %v647_v14 }
  0xe6   : > { %650 = vst [vmem:[%s5516_s15 + $0xb4] sm:$0xff] %v649_v15 }
  0xe7   : > { %3830 = vst [vmem:[%s5516_s15 + $0x8] sm:$0xf] %v3829_v16 }
  0xe8   : > { %3832 = vst [vmem:[%s5516_s15 + $0x14] sm:$0xf] %v3831_v17 }
  0xe9   : > { %3834 = vst [vmem:[%s5516_s15 + $0x20] sm:$0xf] %v3833_v18 }
  0xea   : > { %3836 = vst [vmem:[%s5516_s15 + $0x2c] sm:$0xf] %v3835_v19 }
  0xeb   : > { %3838 = vst [vmem:[%s5516_s15 + $0x38] sm:$0xf] %v3837_v20 }
  0xec   : > { %3840 = vst [vmem:[%s5516_s15 + $0x44] sm:$0xf] %v3839_v21 }
  0xed   : > { %3842 = vst [vmem:[%s5516_s15 + $0x50] sm:$0xf] %v3841_v22 }
  0xee   : > { %3844 = vst [vmem:[%s5516_s15 + $0x5c] sm:$0xf] %v3843_v23 }
  0xef   : > { %3846 = vst [vmem:[%s5516_s15 + $0x68] sm:$0xf] %v3845_v24 }
  0xf0   : > { %3848 = vst [vmem:[%s5516_s15 + $0x74] sm:$0xf] %v3847_v25 }
  0xf1   : > { %3850 = vst [vmem:[%s5516_s15 + $0x80] sm:$0xf] %v3849_v26 }
  0xf2   : > { %3852 = vst [vmem:[%s5516_s15 + $0x8c] sm:$0xf] %v3851_v27 }
  0xf3   : > { %3854 = vst [vmem:[%s5516_s15 + $0x98] sm:$0xf] %v3853_v28 }
  0xf4   : > { %3856 = vst [vmem:[%s5516_s15 + $0xa4] sm:$0xf] %v3855_v29 }
  0xf5   : > { %3858 = vst [vmem:[%s5516_s15 + $0xb0] sm:$0xf] %v3857_v30 }
  0xf6   : > { %3860 = vst [vmem:[%s5516_s15 + $0xbc] sm:$0xf] %v3859_v31 }
  0xf7 PF: > { %p3861_p5 = scmp.ge.s32.totalorder %s5027_s20, 1  ;;  %p695_p6 = scmp.lt.s32.totalorder %s5027_s20, 4 }
  0xf9   : > { %p696_p7 = pnand %p3861_p5, %p695_p6 }
  0xfb   : > { %699 = sbr.rel (%p696_p7) target bundleno = 1533 (0x5fd), region = 84 }
 0x100   : > { %s702_s16 = sand.u32 1, %s5019_s18   ;;  %p3862_p8 = scmp.ne.s32.totalorder %s6827_s21, 0 }
 0x101   : > { %s4957_s17 = smul.u32 1152, %s702_s16 }
 0x102   : > { %s4958_s23 = smul.u32 192, %s702_s16 }
 0x103   : > { %s5582_s24 = scalar_lea.vmem [#allocation2], %s4957_s17  ;;  %740 = sbr.rel (%p3862_p8) target bundleno = 271 (0x10f), region = 96 }
 0x104   : > { %s5584_s26 = scalar_lea.vmem [#allocation3], %s4958_s23 }
 0x108   : > { %v5029_v32 = vmov 0.0   ;;  %vm743_vm0 = vcmask 556032  }
 0x109   : > { %741 = vst [vmem:[%s6818_s5] sm:$0xff] %v5029_v32 }
 0x10a   : > { %742 = vst [vmem:[%s6818_s5 + $0x8] sm:$0xff] %v5029_v32 }
 0x10b   : > { %745 = vst [vmem:[%s6818_s5 + $0x18] sm:$0xff] %v5029_v32 }
 0x10c   : > { %746 = vst [vmem:[%s6818_s5 + $0x20] sm:$0xff] %v5029_v32 }
 0x10d   : > { %744 = vst.msk [vmem:[%s6818_s5 + $0x10] sm:$0xff] %vm743_vm0, %v5029_v32 }
 0x10e   : > { %747 = vst.msk [vmem:[%s6818_s5 + $0x28] sm:$0xff] %vm743_vm0, %v5029_v32 }
 0x10f PF: > { %v4045_v33 = vld [vmem:[%s5582_s24 + $0xa8] sm:$0xf]  ;;  %v4792_v34 = vld [vmem:[%s5582_s24 + $0xb0] sm:$0xf0]  ;;  %v4033_v38 = vld [vmem:[%s5582_s24 + $0x90] sm:$0xf] }
 0x110   : > { %v4141_v35 = vld [vmem:[%s5582_s24 + $0x168] sm:$0xf]  ;;  %v4046_v36 = vor.u32 %v4792_v34, %v4045_v33  ;;  %v4816_v37 = vld [vmem:[%s5582_s24 + $0x170] sm:$0xf0]  ;;  %v4789_v39 = vld [vmem:[%s5582_s24 + $0x98] sm:$0xf0] }
 0x111   : > { %v4142_v40 = vor.u32 %v4816_v37, %v4141_v35  ;;  %v4129_v41 = vld [vmem:[%s5582_s24 + $0x150] sm:$0xf]  ;;  %v4813_v42 = vld [vmem:[%s5582_s24 + $0x158] sm:$0xf0]  ;;  %v4034_v43 = vor.u32 %v4789_v39, %v4033_v38  ;;  %v4021_v45 = vld [vmem:[%s5582_s24 + $0x78] sm:$0xf] }
 0x112   : > { %4938 = vmatpush.bf16.msra.mxu2 %v4046_v36  ;;  %1388 = vmatpush.bf16.msra.mxu0 %v4046_v36  ;;  %v4130_v44 = vor.u32 %v4813_v42, %v4129_v41  ;;  %v4786_v46 = vld [vmem:[%s5582_s24 + $0x80] sm:$0xf0]  ;;  %v4117_v47 = vld [vmem:[%s5582_s24 + $0x138] sm:$0xf]  ;;  %v4009_v51 = vld [vmem:[%s5582_s24 + $0x60] sm:$0xf] }
 0x113   : > { %4946 = vmatpush.bf16.msra.mxu3 %v4142_v40  ;;  %1437 = vmatpush.bf16.msra.mxu1 %v4142_v40  ;;  %v4810_v48 = vld [vmem:[%s5582_s24 + $0x140] sm:$0xf0]  ;;  %v4022_v49 = vor.u32 %v4786_v46, %v4021_v45  ;;  %v4783_v52 = vld [vmem:[%s5582_s24 + $0x68] sm:$0xf0]  ;;  %v4105_v53 = vld [vmem:[%s5582_s24 + $0x120] sm:$0xf] }
 0x114   : > { %v4118_v50 = vor.u32 %v4810_v48, %v4117_v47  ;;  %v4807_v54 = vld [vmem:[%s5582_s24 + $0x128] sm:$0xf0]  ;;  %v4010_v55 = vor.u32 %v4783_v52, %v4009_v51  ;;  %v3997_v57 = vld [vmem:[%s5582_s24 + $0x48] sm:$0xf]  ;;  %v4780_v58 = vld [vmem:[%s5582_s24 + $0x50] sm:$0xf0] }
 0x115   : > { %v4106_v56 = vor.u32 %v4807_v54, %v4105_v53  ;;  %v4093_v59 = vld [vmem:[%s5582_s24 + $0x108] sm:$0xf]  ;;  %v4804_v60 = vld [vmem:[%s5582_s24 + $0x110] sm:$0xf0]  ;;  %v3998_v61 = vor.u32 %v4780_v58, %v3997_v57  ;;  %v3985_v63 = vld [vmem:[%s5582_s24 + $0x30] sm:$0xf] }
 0x116   : > { %4939 = vmatpush.bf16.msra.mxu2 %v4034_v43  ;;  %1389 = vmatpush.bf16.msra.mxu0 %v4034_v43  ;;  %v4094_v62 = vor.u32 %v4804_v60, %v4093_v59  ;;  %v4777_v0 = vld [vmem:[%s5582_s24 + $0x38] sm:$0xf0]  ;;  %v4081_v1 = vld [vmem:[%s5582_s24 + $0xf0] sm:$0xf]  ;;  %v3973_v5 = vld [vmem:[%s5582_s24 + $0x18] sm:$0xf] }
 0x117   : > { %4947 = vmatpush.bf16.msra.mxu3 %v4130_v44  ;;  %1438 = vmatpush.bf16.msra.mxu1 %v4130_v44  ;;  %v4801_v2 = vld [vmem:[%s5582_s24 + $0xf8] sm:$0xf0]  ;;  %v3986_v3 = vor.u32 %v4777_v0, %v3985_v63  ;;  %v4774_v6 = vld [vmem:[%s5582_s24 + $0x20] sm:$0xf0]  ;;  %v4069_v7 = vld [vmem:[%s5582_s24 + $0xd8] sm:$0xf] }
 0x118   : > { %v4082_v4 = vor.u32 %v4801_v2, %v4081_v1  ;;  %v4798_v8 = vld [vmem:[%s5582_s24 + $0xe0] sm:$0xf0]  ;;  %v3974_v9 = vor.u32 %v4774_v6, %v3973_v5  ;;  %v3961_v10 = vld [vmem:[%s5582_s24] sm:$0xf]  ;;  %v4771_v12 = vld [vmem:[%s5582_s24 + $0x8] sm:$0xf0] }
 0x119   : > { %v4070_v11 = vor.u32 %v4798_v8, %v4069_v7  ;;  %v4057_v13 = vld [vmem:[%s5582_s24 + $0xc0] sm:$0xf]  ;;  %v4795_v14 = vld [vmem:[%s5582_s24 + $0xc8] sm:$0xf0]  ;;  %v4237_v17 = vld [vmem:[%s5582_s24 + $0x228] sm:$0xf]  ;;  %v3962_v23 = vor.u32 %v4771_v12, %v3961_v10 }
 0x11a   : > { %4940 = vmatpush.bf16.msra.mxu2 %v4022_v49  ;;  %1390 = vmatpush.bf16.msra.mxu0 %v4022_v49  ;;  %v3913_v15 = vld [vmem:[%s5584_s26 + $0x60] sm:$0xf]  ;;  %v4759_v16 = vld [vmem:[%s5584_s26 + $0x68] sm:$0xf0]  ;;  %v4840_v18 = vld [vmem:[%s5582_s24 + $0x230] sm:$0xf0]  ;;  %v4058_v27 = vor.u32 %v4795_v14, %v4057_v13 }
 0x11b   : > { %4948 = vmatpush.bf16.msra.mxu3 %v4118_v50  ;;  %1439 = vmatpush.bf16.msra.mxu1 %v4118_v50  ;;  %v4758_v19 = vld [vmem:[%s5584_s26 + $0x64] sm:$0xf]  ;;  %v3915_v20 = vld [vmem:[%s5584_s26 + $0x6c] sm:$0xf0]  ;;  %v4791_v21 = vld [vmem:[%s5582_s24 + $0xac] sm:$0xf]  ;;  %v4238_v28 = vor.u32 %v4840_v18, %v4237_v17  ;;  %v5655_v36 = vor.u32 %v4759_v16, %v3913_v15 }
 0x11c   : > { %v4047_v22 = vld [vmem:[%s5582_s24 + $0xb4] sm:$0xf0]  ;;  %v3865_v24 = vld [vmem:[%s5584_s26] sm:$0xf]  ;;  %v4747_v25 = vld [vmem:[%s5584_s26 + $0x8] sm:$0xf0]  ;;  %v5662_v41 = vor.u32 %v4758_v19, %v3915_v20 }
 0x11d   : > { %v4746_v26 = vld [vmem:[%s5584_s26 + $0x4] sm:$0xf]  ;;  %v3867_v29 = vld [vmem:[%s5584_s26 + $0xc] sm:$0xf0]  ;;  %v4815_v30 = vld [vmem:[%s5582_s24 + $0x16c] sm:$0xf]  ;;  %v4050_v34 = vor.u32 %v4791_v21, %v4047_v22  ;;  %v5657_v37 = vor.u32 %v4747_v25, %v3865_v24 }
 0x11e   : > { %4941 = vmatpush.bf16.msra.mxu2 %v4010_v55  ;;  %1391 = vmatpush.bf16.msra.mxu0 %v4010_v55  ;;  %v4143_v31 = vld [vmem:[%s5582_s24 + $0x174] sm:$0xf0]  ;;  %v4225_v32 = vld [vmem:[%s5582_s24 + $0x210] sm:$0xf]  ;;  %v4837_v33 = vld [vmem:[%s5582_s24 + $0x218] sm:$0xf0]  ;;  %v5664_v43 = vor.u32 %v4746_v26, %v3867_v29 }
 0x11f   : > { %4949 = vmatpush.bf16.msra.mxu3 %v4106_v56  ;;  %1440 = vmatpush.bf16.msra.mxu1 %v4106_v56  ;;  %v4788_v35 = vld [vmem:[%s5582_s24 + $0x94] sm:$0xf]  ;;  %v4035_v38 = vld [vmem:[%s5582_s24 + $0x9c] sm:$0xf0]  ;;  %v4839_v39 = vld [vmem:[%s5582_s24 + $0x22c] sm:$0xf]  ;;  %v4146_v42 = vor.u32 %v4815_v30, %v4143_v31  ;;  %v4226_v44 = vor.u32 %v4837_v33, %v4225_v32 }
 0x120   : > { %v4239_v40 = vld [vmem:[%s5582_s24 + $0x234] sm:$0xf0]  ;;  %v4834_v46 = vld [vmem:[%s5582_s24 + $0x200] sm:$0xf0]  ;;  %v4038_v47 = vor.u32 %v4788_v35, %v4035_v38  ;;  %v4812_v49 = vld [vmem:[%s5582_s24 + $0x154] sm:$0xf] }
 0x121   : > { %v4213_v45 = vld [vmem:[%s5582_s24 + $0x1f8] sm:$0xf]  ;;  %v4242_v48 = vor.u32 %v4839_v39, %v4239_v40  ;;  %v4201_v51 = vld [vmem:[%s5582_s24 + $0x1e0] sm:$0xf]  ;;  %v4831_v52 = vld [vmem:[%s5582_s24 + $0x1e8] sm:$0xf0] }
 0x122   : > { %4942 = vmatpush.bf16.msra.mxu2 %v3998_v61  ;;  %1392 = vmatpush.bf16.msra.mxu0 %v3998_v61  ;;  %v4214_v50 = vor.u32 %v4834_v46, %v4213_v45  ;;  %v4131_v53 = vld [vmem:[%s5582_s24 + $0x15c] sm:$0xf0]  ;;  %v4785_v55 = vld [vmem:[%s5582_s24 + $0x7c] sm:$0xf]  ;;  %v4023_v56 = vld [vmem:[%s5582_s24 + $0x84] sm:$0xf0]  ;;  %v4202_v63 = vor.u32 %v4831_v52, %v4201_v51 }
 0x123   : > { %4950 = vmatpush.bf16.msra.mxu3 %v4094_v62  ;;  %1441 = vmatpush.bf16.msra.mxu1 %v4094_v62  ;;  %v4134_v54 = vor.u32 %v4812_v49, %v4131_v53  ;;  %v4836_v57 = vld [vmem:[%s5582_s24 + $0x214] sm:$0xf]  ;;  %v4026_v58 = vor.u32 %v4785_v55, %v4023_v56  ;;  %v4227_v59 = vld [vmem:[%s5582_s24 + $0x21c] sm:$0xf0]  ;;  %v4189_v60 = vld [vmem:[%s5582_s24 + $0x1c8] sm:$0xf] }
 0x124   : > { %v4230_v61 = vor.u32 %v4836_v57, %v4227_v59  ;;  %v4809_v62 = vld [vmem:[%s5582_s24 + $0x13c] sm:$0xf]  ;;  %v4119_v0 = vld [vmem:[%s5582_s24 + $0x144] sm:$0xf0]  ;;  %v4782_v1 = vld [vmem:[%s5582_s24 + $0x64] sm:$0xf] }
 0x125   : > { %v4011_v2 = vld [vmem:[%s5582_s24 + $0x6c] sm:$0xf0]  ;;  %v4833_v6 = vld [vmem:[%s5582_s24 + $0x1fc] sm:$0xf]  ;;  %v4215_v7 = vld [vmem:[%s5582_s24 + $0x204] sm:$0xf0] }
 0x126   : > { %4943 = vmatpush.bf16.msra.mxu2 %v3986_v3  ;;  %1393 = vmatpush.bf16.msra.mxu0 %v3986_v3  ;;  %v4828_v3 = vld [vmem:[%s5582_s24 + $0x1d0] sm:$0xf0]  ;;  %v4014_v5 = vor.u32 %v4782_v1, %v4011_v2  ;;  %v3925_v8 = vld [vmem:[%s5584_s26 + $0x78] sm:$0xf]  ;;  %v4762_v10 = vld [vmem:[%s5584_s26 + $0x80] sm:$0xf0] }
 0x127   : > { %4951 = vmatpush.bf16.msra.mxu3 %v4082_v4  ;;  %1442 = vmatpush.bf16.msra.mxu1 %v4082_v4  ;;  %v4122_v4 = vor.u32 %v4809_v62, %v4119_v0  ;;  %v4750_v12 = vld [vmem:[%s5584_s26 + $0x20] sm:$0xf0]  ;;  %v4761_v13 = vld [vmem:[%s5584_s26 + $0x7c] sm:$0xf]  ;;  %v3927_v14 = vld [vmem:[%s5584_s26 + $0x84] sm:$0xf0]  ;;  %v4190_v16 = vor.u32 %v4828_v3, %v4189_v60  ;;  %v5698_v20 = vor.u32 %v4762_v10, %v3925_v8 }
 0x128   : > { %v4749_v15 = vld [vmem:[%s5584_s26 + $0x1c] sm:$0xf]  ;;  %v3879_v17 = vld [vmem:[%s5584_s26 + $0x24] sm:$0xf0]  ;;  %v4177_v18 = vld [vmem:[%s5582_s24 + $0x1b0] sm:$0xf]  ;;  %v5702_v22 = vor.u32 %v4761_v13, %v3927_v14 }
 0x129   : > { %v4825_v19 = vld [vmem:[%s5582_s24 + $0x1b8] sm:$0xf0]  ;;  %v4779_v25 = vld [vmem:[%s5582_s24 + $0x4c] sm:$0xf]  ;;  %v3999_v26 = vld [vmem:[%s5582_s24 + $0x54] sm:$0xf0] }
 0x12a   : > { %4944 = vmatpush.bf16.msra.mxu2 %v3974_v9  ;;  %1394 = vmatpush.bf16.msra.mxu0 %v3974_v9  ;;  %v4218_v9 = vor.u32 %v4833_v6, %v4215_v7  ;;  %v4178_v24 = vor.u32 %v4825_v19, %v4177_v18  ;;  %v4822_v29 = vld [vmem:[%s5582_s24 + $0x1a0] sm:$0xf0]  ;;  %v4107_v32 = vld [vmem:[%s5582_s24 + $0x12c] sm:$0xf0]  ;;  %v4776_v33 = vld [vmem:[%s5582_s24 + $0x34] sm:$0xf] }
 0x12b   : > { %4952 = vmatpush.bf16.msra.mxu3 %v4070_v11  ;;  %1443 = vmatpush.bf16.msra.mxu1 %v4070_v11  ;;  %v3877_v11 = vld [vmem:[%s5584_s26 + $0x18] sm:$0xf]  ;;  %v4806_v30 = vld [vmem:[%s5582_s24 + $0x124] sm:$0xf]  ;;  %v4203_v40 = vld [vmem:[%s5582_s24 + $0x1ec] sm:$0xf0] }
 0x12c   : > { %v5700_v21 = vor.u32 %v4750_v12, %v3877_v11  ;;  %v4110_v35 = vor.u32 %v4806_v30, %v4107_v32  ;;  %v4830_v39 = vld [vmem:[%s5582_s24 + $0x1e4] sm:$0xf]  ;;  %v4095_v45 = vld [vmem:[%s5582_s24 + $0x114] sm:$0xf0]  ;;  %v4773_v49 = vld [vmem:[%s5582_s24 + $0x1c] sm:$0xf] }
 0x12d   : > { %v3937_v51 = vld [vmem:[%s5584_s26 + $0x90] sm:$0xf]  ;;  %v4765_v52 = vld [vmem:[%s5584_s26 + $0x98] sm:$0xf0]  ;;  %v4827_v56 = vld [vmem:[%s5582_s24 + $0x1cc] sm:$0xf] }
 0x12e   : > { %4945 = vmatpush.bf16.msra.mxu2 %v3962_v23  ;;  %1395 = vmatpush.bf16.msra.mxu0 %v3962_v23  ;;  %v5704_v23 = vor.u32 %v4749_v15, %v3879_v17  ;;  %v3889_v53 = vld [vmem:[%s5584_s26 + $0x30] sm:$0xf]  ;;  %v4191_v57 = vld [vmem:[%s5582_s24 + $0x1d4] sm:$0xf0]  ;;  %v4764_v59 = vld [vmem:[%s5584_s26 + $0x94] sm:$0xf]  ;;  %v5744_v11 = vor.u32 %v4765_v52, %v3937_v51 }
 0x12f   : > { %4953 = vmatpush.bf16.msra.mxu3 %v4058_v27  ;;  %1444 = vmatpush.bf16.msra.mxu1 %v4058_v27  ;;  %v4002_v27 = vor.u32 %v4779_v25, %v3999_v26  ;;  %v4194_v60 = vor.u32 %v4827_v56, %v4191_v57  ;;  %v4770_v62 = vld [vmem:[%s5582_s24 + $0x4] sm:$0xf]  ;;  %v4753_v0 = vld [vmem:[%s5584_s26 + $0x38] sm:$0xf0]  ;;  %v4824_v2 = vld [vmem:[%s5582_s24 + $0x1b4] sm:$0xf] }
 0x130   : > { %v4179_v3 = vld [vmem:[%s5582_s24 + $0x1bc] sm:$0xf0]  ;;  %v4797_v6 = vld [vmem:[%s5582_s24 + $0xdc] sm:$0xf]  ;;  %v4071_v7 = vld [vmem:[%s5582_s24 + $0xe4] sm:$0xf0]  ;;  %v5746_v12 = vor.u32 %v4753_v0, %v3889_v53 }
 0x131   : > { %1416 = vmatmul.bf16.vlgmr.msra.gmra.mxu2 %v5655_v36  ;;  %1396 = vmatmul.bf16.vlgmr.msra.gmra.mxu0 %v5657_v37  ;;  %v4752_v8 = vld [vmem:[%s5584_s26 + $0x34] sm:$0xf]  ;;  %v4074_v14 = vor.u32 %v4797_v6, %v4071_v7  ;;  %v4167_v17 = vld [vmem:[%s5582_s24 + $0x1a4] sm:$0xf0]  ;;  %v4053_v19 = vld [vmem:[%s5582_s24 + $0xb0] sm:$0xf] }
 0x132   : > { %1486 = vmatpush.bf16.msrb.mxu2 %v4238_v28  ;;  %1465 = vmatmul.bf16.vlgmr.msra.gmra.mxu3 %v5662_v41  ;;  %v4165_v28 = vld [vmem:[%s5582_s24 + $0x198] sm:$0xf]  ;;  %v4794_v25 = vld [vmem:[%s5582_s24 + $0xc4] sm:$0xf]  ;;  %v3949_v32 = vld [vmem:[%s5584_s26 + $0xa8] sm:$0xf] }
 0x133   : > { %1535 = vmatpush.bf16.msrb.mxu3 %v4050_v34  ;;  %1584 = vmatpush.bf16.msrb.mxu0 %v4146_v42  ;;  %v4166_v31 = vor.u32 %v4822_v29, %v4165_v28  ;;  %v3987_v34 = vld [vmem:[%s5582_s24 + $0x3c] sm:$0xf0]  ;;  %v4206_v42 = vor.u32 %v4830_v39, %v4203_v40  ;;  %v4818_v28 = vld [vmem:[%s5582_s24 + $0x184] sm:$0xf]  ;;  %v4155_v29 = vld [vmem:[%s5582_s24 + $0x18c] sm:$0xf0] }
 0x134   : > { %1445 = vmatmul.bf16.vlgmr.msra.gmra.mxu1 %v5664_v43  ;;  %v3990_v38 = vor.u32 %v4776_v33, %v3987_v34  ;;  %v4768_v33 = vld [vmem:[%s5584_s26 + $0xb0] sm:$0xf0]  ;;  %v3901_v34 = vld [vmem:[%s5584_s26 + $0x48] sm:$0xf]  ;;  %v3951_v39 = vld [vmem:[%s5584_s26 + $0xb4] sm:$0xf0] }
 0x135   : > { %1633 = vmatpush.bf16.msrb.mxu1 %v4242_v48  ;;  %v4819_v48 = vld [vmem:[%s5582_s24 + $0x188] sm:$0xf0]  ;;  %v4817_v52 = vld [vmem:[%s5582_s24 + $0x178] sm:$0xf0]  ;;  %v4245_v53 = vld [vmem:[%s5582_s24 + $0x230] sm:$0xf] }
 0x136   : > { %1487 = vmatpush.bf16.msrb.mxu2 %v4226_v44  ;;  %v4803_v44 = vld [vmem:[%s5582_s24 + $0x10c] sm:$0xf]  ;;  %v4525_v57 = vld [vmem:[%s5582_s24 + $0x2e8] sm:$0xf]  ;;  %s5030_s13 = smov 127   ;;  %s5031_s14 = smov 126  }
 0x137   : > { %1536 = vmatpush.bf16.msrb.mxu3 %v4038_v47  ;;  %1585 = vmatpush.bf16.msrb.mxu0 %v4134_v54  ;;  %v4098_v46 = vor.u32 %v4803_v44, %v4095_v45  ;;  %v4153_v47 = vld [vmem:[%s5582_s24 + $0x180] sm:$0xf]  ;;  %v4755_v40 = vld [vmem:[%s5584_s26 + $0x4c] sm:$0xf]  ;;  %v5772_v44 = vor.u32 %v4768_v33, %v3949_v32  ;;  %v4882_v32 = vld [vmem:[%s5582_s24 + $0x2c0] sm:$0xf0] }
 0x138   : > { %v4154_v54 = vor.u32 %v4819_v48, %v4153_v47  ;;  %v4041_v48 = vld [vmem:[%s5582_s24 + $0x98] sm:$0xf]  ;;  %v4787_v0 = vld [vmem:[%s5582_s24 + $0x88] sm:$0xf0]  ;;  %s5032_s15 = smov 125   ;;  %s5033_s16 = smov 110  }
 0x139   : > { %1634 = vmatpush.bf16.msrb.mxu1 %v4230_v61  ;;  %v4083_v61 = vld [vmem:[%s5582_s24 + $0xfc] sm:$0xf0]  ;;  %s5034_s17 = smov 109   ;;  %s5035_s23 = smov 108   ;;  %vm1844_vm1 = vcmask 1039360   ;;  %vm1862_vm2 = vcmask 1031168  }
 0x13a   : > { %1488 = vmatpush.bf16.msrb.mxu2 %v4214_v50  ;;  %v3975_v50 = vld [vmem:[%s5582_s24 + $0x24] sm:$0xf0]  ;;  %s5036_s27 = smov 107   ;;  %s5037_s28 = smov 92   ;;  %vm1880_vm3 = vcmask 1022976   ;;  %vm1898_vm4 = vcmask 900096  }
 0x13b   : > { %1537 = vmatpush.bf16.msrb.mxu3 %v4026_v58  ;;  %1586 = vmatpush.bf16.msrb.mxu0 %v4122_v4  ;;  %v3978_v55 = vor.u32 %v4773_v49, %v3975_v50  ;;  %v4800_v58 = vld [vmem:[%s5582_s24 + $0xf4] sm:$0xf]  ;;  %v3939_v4 = vld [vmem:[%s5584_s26 + $0x9c] sm:$0xf0]  ;;  %v4790_v49 = vld [vmem:[%s5582_s24 + $0xa0] sm:$0xf0] }
 0x13c   : > { %v4086_v1 = vor.u32 %v4800_v58, %v4083_v61  ;;  %v5748_v13 = vor.u32 %v4764_v59, %v3939_v4  ;;  %v4149_v50 = vld [vmem:[%s5582_s24 + $0x170] sm:$0xf]  ;;  %v4042_v51 = vor.u32 %v4790_v49, %v4041_v48  ;;  %v4888_v58 = vld [vmem:[%s5582_s24 + $0x2f0] sm:$0xf0]  ;;  %v4233_v4 = vld [vmem:[%s5582_s24 + $0x218] sm:$0xf] }
 0x13d   : > { %1635 = vmatpush.bf16.msrb.mxu1 %v4218_v9  ;;  %v3891_v9 = vld [vmem:[%s5584_s26 + $0x3c] sm:$0xf0]  ;;  %v4526_v59 = vor.u32 %v4888_v58, %v4525_v57  ;;  %v4748_v61 = vld [vmem:[%s5584_s26 + $0x10] sm:$0xf0]  ;;  %v4113_v48 = vld [vmem:[%s5582_s24 + $0x128] sm:$0xf] }
 0x13e   : > { %1489 = vmatpush.bf16.msrb.mxu2 %v4202_v63  ;;  %v3963_v63 = vld [vmem:[%s5582_s24 + $0xc] sm:$0xf0]  ;;  %v5750_v15 = vor.u32 %v4752_v8, %v3891_v9  ;;  %v4885_v9 = vld [vmem:[%s5582_s24 + $0x2d8] sm:$0xf0]  ;;  %v4808_v49 = vld [vmem:[%s5582_s24 + $0x130] sm:$0xf0] }
 0x13f   : > { %1538 = vmatpush.bf16.msrb.mxu3 %v4014_v5  ;;  %1587 = vmatpush.bf16.msrb.mxu0 %v4110_v35  ;;  %v4182_v5 = vor.u32 %v4824_v2, %v4179_v3  ;;  %v3966_v10 = vor.u32 %v4770_v62, %v3963_v63  ;;  %v4756_v35 = vld [vmem:[%s5584_s26 + $0x50] sm:$0xf0]  ;;  %v4029_v63 = vld [vmem:[%s5582_s24 + $0x80] sm:$0xf]  ;;  %v4814_v3 = vld [vmem:[%s5582_s24 + $0x160] sm:$0xf0] }
 0x140   : > { %v5774_v45 = vor.u32 %v4756_v35, %v3901_v34  ;;  %v4030_v2 = vor.u32 %v4787_v0, %v4029_v63  ;;  %v4513_v8 = vld [vmem:[%s5582_s24 + $0x2d0] sm:$0xf]  ;;  %v3897_v34 = vld [vmem:[%s5584_s26 + $0x38] sm:$0xf]  ;;  %v4754_v35 = vld [vmem:[%s5584_s26 + $0x40] sm:$0xf0] }
 0x141   : > { %1421 = vmatmul.bf16.gmra.mxu2 %v5698_v20  ;;  %1401 = vmatmul.bf16.gmra.mxu0 %v5700_v21  ;;  %v4879_v58 = vld [vmem:[%s5582_s24 + $0x2a8] sm:$0xf0]  ;;  %v4101_v0 = vld [vmem:[%s5582_s24 + $0x110] sm:$0xf]  ;;  %s5038_s29 = smov 91   ;;  %s5039_s30 = smov 90  }
 0x142   : > { %1490 = vmatpush.bf16.msrb.mxu2 %v4190_v16  ;;  %1470 = vmatmul.bf16.gmra.mxu3 %v5702_v22  ;;  %v4821_v16 = vld [vmem:[%s5582_s24 + $0x19c] sm:$0xf]  ;;  %s5040_s18 = smov 89   ;;  %s5041_s6 = smov 74   ;;  %vm1916_vm5 = vcmask 891904   ;;  %vm1934_vm6 = vcmask 883712  }
 0x143   : > { %1539 = vmatpush.bf16.msrb.mxu3 %v4002_v27  ;;  %1636 = vmatpush.bf16.msrb.mxu1 %v4206_v42  ;;  %v4170_v18 = vor.u32 %v4821_v16, %v4167_v17  ;;  %v4059_v27 = vld [vmem:[%s5582_s24 + $0xcc] sm:$0xf0]  ;;  %v3903_v42 = vld [vmem:[%s5584_s26 + $0x54] sm:$0xf0]  ;;  %v4751_v16 = vld [vmem:[%s5584_s26 + $0x28] sm:$0xf0] }
 0x144   : > { %1450 = vmatmul.bf16.gmra.mxu1 %v5704_v23  ;;  %1588 = vmatpush.bf16.msrb.mxu0 %v4098_v46  ;;  %v4062_v30 = vor.u32 %v4794_v25, %v4059_v27  ;;  %v5778_v47 = vor.u32 %v4755_v40, %v3903_v42  ;;  %v4221_v27 = vld [vmem:[%s5582_s24 + $0x200] sm:$0xf]  ;;  %v4781_v40 = vld [vmem:[%s5582_s24 + $0x58] sm:$0xf0]  ;;  %s5042_s7 = smov 73   ;;  %s5043_s8 = smov 72  }
 0x145   : > { %s5044_s9 = smov 71   ;;  %vm1952_vm7 = vcmask 875520   ;;  %vm1970_vm8 = vcmask 752640   ;;  %vm1988_vm9 = vcmask 744448   ;;  %vm2006_vm10 = vcmask 736256  }
 0x146   : > { %1491 = vmatpush.bf16.msrb.mxu2 %v4178_v24  ;;  %v4793_v24 = vld [vmem:[%s5582_s24 + $0xb8] sm:$0xf0]  ;;  %vm2024_vm11 = vcmask 728064   ;;  %vm2042_vm12 = vcmask 605184   ;;  %vm2060_vm13 = vcmask 596992   ;;  %vm2078_vm14 = vcmask 588800  }
 0x147   : > { %1540 = vmatpush.bf16.msrb.mxu3 %v3990_v38  ;;  %1637 = vmatpush.bf16.msrb.mxu1 %v4194_v60  ;;  %v4054_v26 = vor.u32 %v4793_v24, %v4053_v19  ;;  %v4767_v38 = vld [vmem:[%s5584_s26 + $0xac] sm:$0xf]  ;;  %v3873_v60 = vld [vmem:[%s5584_s26 + $0x8] sm:$0xf]  ;;  %v4784_v19 = vld [vmem:[%s5582_s24 + $0x70] sm:$0xf0] }
 0x148   : > { %1589 = vmatpush.bf16.msrb.mxu0 %v4086_v1  ;;  %v5776_v46 = vor.u32 %v4767_v38, %v3951_v39  ;;  %v5794_v62 = vor.u32 %v4748_v61, %v3873_v60  ;;  %v4137_v1 = vld [vmem:[%s5582_s24 + $0x158] sm:$0xf]  ;;  %v4125_v24 = vld [vmem:[%s5582_s24 + $0x140] sm:$0xf]  ;;  %v5826_v38 = vor.u32 %v4754_v35, %v3897_v34  ;;  %v4005_v39 = vld [vmem:[%s5582_s24 + $0x50] sm:$0xf] }
 0x149   : > { %v4138_v6 = vor.u32 %v4814_v3, %v4137_v1  ;;  %v4006_v42 = vor.u32 %v4781_v40, %v4005_v39  ;;  %v3993_v60 = vld [vmem:[%s5582_s24 + $0x38] sm:$0xf]  ;;  %v4778_v61 = vld [vmem:[%s5582_s24 + $0x40] sm:$0xf0]  ;;  %v4805_v1 = vld [vmem:[%s5582_s24 + $0x118] sm:$0xf0] }
 0x14a   : > { %1492 = vmatpush.bf16.msrb.mxu2 %v4166_v31  ;;  %v4158_v31 = vor.u32 %v4818_v28, %v4155_v29  ;;  %v4835_v28 = vld [vmem:[%s5582_s24 + $0x208] sm:$0xf0]  ;;  %v3994_v63 = vor.u32 %v4778_v61, %v3993_v60  ;;  %v3921_v3 = vld [vmem:[%s5584_s26 + $0x68] sm:$0xf]  ;;  %v3933_v35 = vld [vmem:[%s5584_s26 + $0x80] sm:$0xf] }
 0x14b   : > { %1541 = vmatpush.bf16.msrb.mxu3 %v3978_v55  ;;  %1638 = vmatpush.bf16.msrb.mxu1 %v4182_v5  ;;  %v4150_v55 = vor.u32 %v4817_v52, %v4149_v50  ;;  %v4838_v5 = vld [vmem:[%s5582_s24 + $0x220] sm:$0xf0]  ;;  %v4114_v50 = vor.u32 %v4808_v49, %v4113_v48  ;;  %v4757_v52 = vld [vmem:[%s5584_s26 + $0x58] sm:$0xf0]  ;;  %v4763_v39 = vld [vmem:[%s5584_s26 + $0x88] sm:$0xf0] }
 0x14c   : > { %1590 = vmatpush.bf16.msrb.mxu0 %v4074_v14  ;;  %v4234_v7 = vor.u32 %v4838_v5, %v4233_v4  ;;  %v3885_v14 = vld [vmem:[%s5584_s26 + $0x20] sm:$0xf]  ;;  %v4760_v4 = vld [vmem:[%s5584_s26 + $0x70] sm:$0xf0]  ;;  %v5878_v48 = vor.u32 %v4763_v39, %v3933_v35  ;;  %v4870_v35 = vld [vmem:[%s5582_s24 + $0x260] sm:$0xf0] }
 0x14d   : > { %v5810_v17 = vor.u32 %v4751_v16, %v3885_v14  ;;  %v5854_v5 = vor.u32 %v4760_v4, %v3921_v3  ;;  %v4876_v14 = vld [vmem:[%s5582_s24 + $0x290] sm:$0xf0]  ;;  %v4077_v3 = vld [vmem:[%s5582_s24 + $0xe0] sm:$0xf]  ;;  %v4799_v4 = vld [vmem:[%s5582_s24 + $0xe8] sm:$0xf0] }
 0x14e   : > { %1493 = vmatpush.bf16.msrb.mxu2 %v4154_v54  ;;  %v4841_v54 = vld [vmem:[%s5582_s24 + $0x238] sm:$0xf0]  ;;  %v4772_v60 = vld [vmem:[%s5582_s24 + $0x10] sm:$0xf0]  ;;  %vm2096_vm15 = vcmask 580608   ;;  %vm2107_vm0 = vcmask 556032  }
 0x14f   : > { %1542 = vmatpush.bf16.msrb.mxu3 %v3966_v10  ;;  %1639 = vmatpush.bf16.msrb.mxu1 %v4170_v18  ;;  %v4246_v56 = vor.u32 %v4841_v54, %v4245_v53  ;;  %v4514_v10 = vor.u32 %v4885_v9, %v4513_v8  ;;  %v4017_v18 = vld [vmem:[%s5582_s24 + $0x68] sm:$0xf]  ;;  %v4829_v8 = vld [vmem:[%s5582_s24 + $0x1d8] sm:$0xf0] }
 0x150   : > { %1591 = vmatpush.bf16.msrb.mxu0 %v4062_v30  ;;  %v4018_v25 = vor.u32 %v4784_v19, %v4017_v18  ;;  %v4222_v30 = vor.u32 %v4835_v28, %v4221_v27  ;;  %v4209_v54 = vld [vmem:[%s5582_s24 + $0x1e8] sm:$0xf] }
 0x151   : > { %1426 = vmatmul.bf16.gmra.mxu2 %v5744_v11  ;;  %1406 = vmatmul.bf16.gmra.mxu0 %v5746_v12  ;;  %v4477_v9 = vld [vmem:[%s5582_s24 + $0x288] sm:$0xf] }
 0x152   : > { %1475 = vmatmul.bf16.gmra.mxu3 %v5748_v13  ;;  %1682 = vmatpush.bf16.msra.mxu2 %v4054_v26  ;;  %v4811_v26 = vld [vmem:[%s5582_s24 + $0x148] sm:$0xf0]  ;;  %v4478_v18 = vor.u32 %v4876_v14, %v4477_v9  ;;  %v4766_v9 = vld [vmem:[%s5584_s26 + $0xa0] sm:$0xf0]  ;;  %v4065_v14 = vld [vmem:[%s5582_s24 + $0xc8] sm:$0xf] }
 0x153   : > { %1640 = vmatpush.bf16.msrb.mxu1 %v4158_v31  ;;  %1731 = vmatpush.bf16.msra.mxu3 %v4150_v55  ;;  %v4126_v29 = vor.u32 %v4811_v26, %v4125_v24  ;;  %v4501_v31 = vld [vmem:[%s5582_s24 + $0x2b8] sm:$0xf]  ;;  %v4832_v55 = vld [vmem:[%s5582_s24 + $0x1f0] sm:$0xf0]  ;;  %v3981_v24 = vld [vmem:[%s5582_s24 + $0x20] sm:$0xf] }
 0x154   : > { %1455 = vmatmul.bf16.gmra.mxu1 %v5750_v15  ;;  %1780 = vmatpush.bf16.msra.mxu0 %v4246_v56  ;;  %v4502_v33 = vor.u32 %v4882_v32, %v4501_v31  ;;  %v4489_v56 = vld [vmem:[%s5582_s24 + $0x2a0] sm:$0xf]  ;;  %v4210_v57 = vor.u32 %v4832_v55, %v4209_v54  ;;  %v4089_v31 = vld [vmem:[%s5582_s24 + $0xf8] sm:$0xf]  ;;  %v4802_v32 = vld [vmem:[%s5582_s24 + $0x100] sm:$0xf0] }
 0x155   : > { %v4465_v54 = vld [vmem:[%s5582_s24 + $0x270] sm:$0xf] }
 0x156   : > { %1683 = vmatpush.bf16.msra.mxu2 %v4042_v51  ;;  %v3909_v51 = vld [vmem:[%s5584_s26 + $0x50] sm:$0xf] }
 0x157   : > { %2750 = vmatpush.bf16.msra.mxu1 %v4526_v59  ;;  %1732 = vmatpush.bf16.msra.mxu3 %v4138_v6  ;;  %v5838_v53 = vor.u32 %v4757_v52, %v3909_v51  ;;  %v4490_v59 = vor.u32 %v4879_v58, %v4489_v56  ;;  %v4185_v51 = vld [vmem:[%s5582_s24 + $0x1b8] sm:$0xf]  ;;  %v4826_v52 = vld [vmem:[%s5582_s24 + $0x1c0] sm:$0xf0]  ;;  %v4873_v56 = vld [vmem:[%s5582_s24 + $0x278] sm:$0xf0] }
 0x158   : > { %1781 = vmatpush.bf16.msra.mxu0 %v4234_v7  ;;  %v4197_v7 = vld [vmem:[%s5582_s24 + $0x1d0] sm:$0xf]  ;;  %v4186_v55 = vor.u32 %v4826_v52, %v4185_v51  ;;  %v4466_v58 = vor.u32 %v4873_v56, %v4465_v54  ;;  %v4912_v51 = vld [vmem:[%s5582_s24 + $0x3b0] sm:$0xf0]  ;;  %v4161_v52 = vld [vmem:[%s5582_s24 + $0x188] sm:$0xf] }
 0x15a   : > { %1684 = vmatpush.bf16.msra.mxu2 %v4030_v2  ;;  %v4102_v2 = vor.u32 %v4805_v1, %v4101_v0 }
 0x15b   : > { %2751 = vmatpush.bf16.msra.mxu1 %v4514_v10  ;;  %1733 = vmatpush.bf16.msra.mxu3 %v4126_v29  ;;  %v4198_v10 = vor.u32 %v4829_v8, %v4197_v7  ;;  %v3945_v8 = vld [vmem:[%s5584_s26 + $0x98] sm:$0xf] }
 0x15c   : > { %1782 = vmatpush.bf16.msra.mxu0 %v4222_v30 }
 0x15e   : > { %1685 = vmatpush.bf16.msra.mxu2 %v4018_v25  ;;  %v4775_v25 = vld [vmem:[%s5582_s24 + $0x28] sm:$0xf0] }
 0x15f   : > { %2752 = vmatpush.bf16.msra.mxu1 %v4502_v33  ;;  %1734 = vmatpush.bf16.msra.mxu3 %v4114_v50  ;;  %v3982_v26 = vor.u32 %v4775_v25, %v3981_v24  ;;  %v4090_v33 = vor.u32 %v4802_v32, %v4089_v31  ;;  %v5908_v24 = vor.u32 %v4766_v9, %v3945_v8  ;;  %v4823_v31 = vld [vmem:[%s5582_s24 + $0x1a8] sm:$0xf0]  ;;  %v4453_v32 = vld [vmem:[%s5582_s24 + $0x258] sm:$0xf]  ;;  %v4769_v8 = vld [vmem:[%s5584_s26 + $0xb8] sm:$0xf0] }
 0x160   : > { %1783 = vmatpush.bf16.msra.mxu0 %v4210_v57 }
 0x161   : > { %1431 = vmatmul.bf16.gmra.mxu2 %v5772_v44  ;;  %1411 = vmatmul.bf16.gmra.mxu0 %v5774_v45 }
 0x162   : > { %1480 = vmatmul.bf16.gmra.mxu3 %v5776_v46  ;;  %1686 = vmatpush.bf16.msra.mxu2 %v4006_v42 }
 0x163   : > { %2753 = vmatpush.bf16.msra.mxu1 %v4490_v59  ;;  %1735 = vmatpush.bf16.msra.mxu3 %v4102_v2  ;;  %v3969_v59 = vld [vmem:[%s5582_s24 + $0x8] sm:$0xf] }
 0x164   : > { %1460 = vmatmul.bf16.gmra.mxu1 %v5778_v47  ;;  %1784 = vmatpush.bf16.msra.mxu0 %v4198_v10  ;;  %v3970_v61 = vor.u32 %v4772_v60, %v3969_v59  ;;  %v4441_v59 = vld [vmem:[%s5582_s24 + $0x240] sm:$0xf]  ;;  %v4867_v60 = vld [vmem:[%s5582_s24 + $0x248] sm:$0xf0] }
 0x166   : > { %1687 = vmatpush.bf16.msra.mxu2 %v3994_v63 }
 0x167   : > { %2754 = vmatpush.bf16.msra.mxu1 %v4478_v18  ;;  %1736 = vmatpush.bf16.msra.mxu3 %v4090_v33 }
 0x168   : > { %1785 = vmatpush.bf16.msra.mxu0 %v4186_v55  ;;  %v4820_v55 = vld [vmem:[%s5582_s24 + $0x190] sm:$0xf0] }
 0x16a   : > { %1688 = vmatpush.bf16.msra.mxu2 %v3982_v26 }
 0x16b   : > { %2755 = vmatpush.bf16.msra.mxu1 %v4466_v58  ;;  %v4162_v58 = vor.u32 %v4820_v55, %v4161_v52  ;;  %v4717_v52 = vld [vmem:[%s5582_s24 + $0x468] sm:$0xf] }
 0x16e   : > { %1689 = vmatpush.bf16.msra.mxu2 %v3970_v61 }
 0x171   : > { %1494 = vmatmul.bf16.vlgmr.msrb.gmra.mxu2 %v5794_v62  ;;  %1592 = vmatmul.bf16.vlgmr.msrb.gmra.mxu0 %v5664_v43 }
 0x172   : > { %1543 = vmatmul.bf16.vlgmr.msrb.gmra.mxu3 %v5657_v37 }
 0x174   : > { %1641 = vmatmul.bf16.vlgmr.msrb.gmra.mxu1 %v5794_v62 }
 0x181   : > { %1499 = vmatmul.bf16.gmra.mxu2 %v5810_v17  ;;  %1597 = vmatmul.bf16.gmra.mxu0 %v5704_v23 }
 0x182   : > { %1548 = vmatmul.bf16.gmra.mxu3 %v5700_v21 }
 0x184   : > { %1646 = vmatmul.bf16.gmra.mxu1 %v5810_v17 }
 0x191   : > { %1504 = vmatmul.bf16.gmra.mxu2 %v5826_v38  ;;  %1602 = vmatmul.bf16.gmra.mxu0 %v5750_v15 }
 0x192   : > { %1553 = vmatmul.bf16.gmra.mxu3 %v5746_v12 }
 0x194   : > { %1651 = vmatmul.bf16.gmra.mxu1 %v5826_v38 }
 0x1a1   : > { %1509 = vmatmul.bf16.gmra.mxu2 %v5838_v53  ;;  %1607 = vmatmul.bf16.gmra.mxu0 %v5778_v47 }
 0x1a2   : > { %1558 = vmatmul.bf16.gmra.mxu3 %v5774_v45 }
 0x1a4   : > { %1656 = vmatmul.bf16.gmra.mxu1 %v5838_v53 }
 0x1ae   : > { %v1397_v6 = vpop.f32.mrf.mxu0 }
 0x1b1   : > { %v1446_v16 = vpop.f32.mrf.mxu1  ;;  %1514 = vmatmul.bf16.gmra.mxu2 %v5854_v5  ;;  %1612 = vmatmul.bf16.gmra.mxu0 %v5662_v41 }
 0x1b2   : > { %v5861_v19 = vadd.f32 %v1446_v16, %v1397_v6  ;;  %1563 = vmatmul.bf16.gmra.mxu3 %v5655_v36  ;;  %v4078_v6 = vor.u32 %v4799_v4, %v4077_v3  ;;  %v4796_v16 = vld [vmem:[%s5582_s24 + $0xd0] sm:$0xf0] }
 0x1b3   : > { %v4066_v25 = vor.u32 %v4796_v16, %v4065_v14 }
 0x1b4   : > { %1661 = vmatmul.bf16.gmra.mxu1 %v5854_v5  ;;  %v1417_v27 = vpop.f32.mrf.mxu2  ;;  %1737 = vmatpush.bf16.msra.mxu3 %v4078_v6  ;;  %v3957_v6 = vld [vmem:[%s5584_s26 + $0xb0] sm:$0xf] }
 0x1b5   : > { %v1466_v28 = vpop.f32.mrf.mxu3  ;;  %v5938_v14 = vor.u32 %v4769_v8, %v3957_v6  ;;  %v4887_v6 = vld [vmem:[%s5582_s24 + $0x2ec] sm:$0xf]  ;;  %v4527_v8 = vld [vmem:[%s5582_s24 + $0x2f4] sm:$0xf0] }
 0x1b6   : > { %v5868_v29 = vadd.f32 %v1466_v28, %v1417_v27  ;;  %v5870_v30 = vpop.f32.mrf.mxu0  ;;  %v4173_v28 = vld [vmem:[%s5582_s24 + $0x1a0] sm:$0xf] }
 0x1b7   : > { %v4174_v33 = vor.u32 %v4823_v31, %v4173_v28  ;;  %v4609_v28 = vld [vmem:[%s5582_s24 + $0x390] sm:$0xf]  ;;  %v4909_v31 = vld [vmem:[%s5582_s24 + $0x398] sm:$0xf0] }
 0x1b8   : > { %1738 = vmatpush.bf16.msra.mxu3 %v4066_v25 }
 0x1b9   : > { %v5874_v34 = vpop.f32.mrf.mxu1  ;;  %1786 = vmatpush.bf16.msra.mxu0 %v4174_v33 }
 0x1bc   : > { %v1419_v40 = vpop.f32.mrf.mxu2 }
 0x1bd   : > { %v1468_v42 = vpop.f32.mrf.mxu3  ;;  %1787 = vmatpush.bf16.msra.mxu0 %v4162_v58  ;;  %v4345_v58 = vld [vmem:[%s5584_s26] sm:$0xf] }
 0x1be   : > { %v5880_v49 = vadd.f32 %v1468_v42, %v1419_v40  ;;  %v5882_v50 = vpop.f32.mrf.mxu0  ;;  %v4454_v40 = vor.u32 %v4870_v35, %v4453_v32  ;;  %v4621_v42 = vld [vmem:[%s5582_s24 + $0x3a8] sm:$0xf]  ;;  %v4610_v32 = vor.u32 %v4909_v31, %v4609_v28  ;;  %v4911_v31 = vld [vmem:[%s5582_s24 + $0x3ac] sm:$0xf] }
 0x1bf   : > { %v4622_v54 = vor.u32 %v4912_v51, %v4621_v42 }
 0x1c0   : > { %2756 = vmatpush.bf16.msra.mxu1 %v4454_v40 }
 0x1c1   : > { %v5888_v57 = vpop.f32.mrf.mxu1  ;;  %1519 = vmatmul.bf16.gmra.mxu2 %v5878_v48  ;;  %1617 = vmatmul.bf16.gmra.mxu0 %v5702_v22 }
 0x1c2   : > { %1568 = vmatmul.bf16.gmra.mxu3 %v5698_v20  ;;  %2799 = vmatpush.bf16.msrb.mxu2 %v4622_v54  ;;  %v4936_v54 = vld [vmem:[%s5582_s24 + $0x470] sm:$0xf0] }
 0x1c3   : > { %v4718_v55 = vor.u32 %v4936_v54, %v4717_v52  ;;  %v4906_v52 = vld [vmem:[%s5582_s24 + $0x380] sm:$0xf0] }
 0x1c4   : > { %1666 = vmatmul.bf16.gmra.mxu1 %v5878_v48  ;;  %v1422_v63 = vpop.f32.mrf.mxu2 }
 0x1c5   : > { %v1471_v0 = vpop.f32.mrf.mxu3  ;;  %2848 = vmatpush.bf16.msrb.mxu3 %v4718_v55 }
 0x1c6   : > { %v5896_v1 = vadd.f32 %v1471_v0, %v1422_v63  ;;  %v5898_v2 = vpop.f32.mrf.mxu0  ;;  %v4442_v63 = vor.u32 %v4867_v60, %v4441_v59  ;;  %2800 = vmatpush.bf16.msrb.mxu2 %v4610_v32  ;;  %v4843_v59 = vld [vmem:[%s5584_s26 + $0x8] sm:$0xf0]  ;;  %v4623_v32 = vld [vmem:[%s5582_s24 + $0x3b4] sm:$0xf0] }
 0x1c8   : > { %2757 = vmatpush.bf16.msra.mxu1 %v4442_v63 }
 0x1c9   : > { %v5902_v7 = vpop.f32.mrf.mxu1 }
 0x1cc   : > { %v1424_v10 = vpop.f32.mrf.mxu2 }
 0x1cd   : > { %v1473_v18 = vpop.f32.mrf.mxu3 }
 0x1ce   : > { %v5910_v26 = vadd.f32 %v1473_v18, %v1424_v10  ;;  %v5912_v27 = vpop.f32.mrf.mxu0 }
 0x1d1   : > { %v5918_v39 = vpop.f32.mrf.mxu1  ;;  %1524 = vmatmul.bf16.gmra.mxu2 %v5908_v24  ;;  %1622 = vmatmul.bf16.gmra.mxu0 %v5748_v13 }
 0x1d2   : > { %1573 = vmatmul.bf16.gmra.mxu3 %v5744_v11 }
 0x1d4   : > { %1671 = vmatmul.bf16.gmra.mxu1 %v5908_v24  ;;  %v1427_v56 = vpop.f32.mrf.mxu2 }
 0x1d5   : > { %v1476_v61 = vpop.f32.mrf.mxu3 }
 0x1d6   : > { %v5930_v0 = vadd.f32 %v1476_v61, %v1427_v56  ;;  %v5932_v3 = vpop.f32.mrf.mxu0 }
 0x1d9   : > { %v5934_v4 = vpop.f32.mrf.mxu1 }
 0x1dc   : > { %v1429_v9 = vpop.f32.mrf.mxu2 }
 0x1dd   : > { %v1478_v10 = vpop.f32.mrf.mxu3 }
 0x1de   : > { %v5940_v16 = vadd.f32 %v1478_v10, %v1429_v9  ;;  %v5942_v18 = vpop.f32.mrf.mxu0  ;;  %v5966_v9 = vor.u32 %v4843_v59, %v4345_v58  ;;  %v4530_v10 = vor.u32 %v4887_v6, %v4527_v8  ;;  %v4933_v6 = vld [vmem:[%s5582_s24 + $0x458] sm:$0xf0] }
 0x1e0   : > { %2897 = vmatpush.bf16.msrb.mxu0 %v4530_v10  ;;  %v1449_v10 = vadd.f32 %v5874_v34, %v5870_v30 }
 0x1e1   : > { %v5944_v25 = vpop.f32.mrf.mxu1  ;;  %1529 = vmatmul.bf16.gmra.mxu2 %v5938_v14  ;;  %1627 = vmatmul.bf16.gmra.mxu0 %v5776_v46 }
 0x1e2   : > { %1578 = vmatmul.bf16.gmra.mxu3 %v5772_v44 }
 0x1e4   : > { %1676 = vmatmul.bf16.gmra.mxu1 %v5938_v14  ;;  %v1432_v33 = vpop.f32.mrf.mxu2 }
 0x1e5   : > { %v1481_v35 = vpop.f32.mrf.mxu3 }
 0x1e6   : > { %v5952_v40 = vadd.f32 %v1481_v35, %v1432_v33  ;;  %v5954_v42 = vpop.f32.mrf.mxu0  ;;  %v4626_v33 = vor.u32 %v4911_v31, %v4623_v32  ;;  %v4597_v35 = vld [vmem:[%s5582_s24 + $0x378] sm:$0xf]  ;;  %v4846_v32 = vld [vmem:[%s5584_s26 + $0x20] sm:$0xf0] }
 0x1e7   : > { %v4598_v54 = vor.u32 %v4906_v52, %v4597_v35  ;;  %v4357_v31 = vld [vmem:[%s5584_s26 + $0x18] sm:$0xf]  ;;  %v4884_v52 = vld [vmem:[%s5582_s24 + $0x2d4] sm:$0xf] }
 0x1e8   : > { %2946 = vmatpush.bf16.msrb.mxu1 %v4626_v33 }
 0x1e9   : > { %v5956_v51 = vpop.f32.mrf.mxu1  ;;  %2801 = vmatpush.bf16.msrb.mxu2 %v4598_v54 }
 0x1ec   : > { %v1434_v56 = vpop.f32.mrf.mxu2 }
 0x1ed   : > { %v1483_v60 = vpop.f32.mrf.mxu3 }
 0x1ee   : > { %v5962_v61 = vadd.f32 %v1483_v60, %v1434_v56  ;;  %v1593_v63 = vpop.f32.mrf.mxu0  ;;  %v4705_v60 = vld [vmem:[%s5582_s24 + $0x450] sm:$0xf] }
 0x1ef   : > { %v4706_v8 = vor.u32 %v4933_v6, %v4705_v60  ;;  %v4585_v6 = vld [vmem:[%s5582_s24 + $0x360] sm:$0xf] }
 0x1f1   : > { %v1642_v28 = vpop.f32.mrf.mxu1  ;;  %1690 = vmatmul.bf16.vlgmr.msra.gmra.mxu2 %v5657_v37  ;;  %1788 = vmatmul.bf16.vlgmr.msra.gmra.mxu0 %v5794_v62 }
 0x1f2   : > { %1739 = vmatmul.bf16.vlgmr.msra.gmra.mxu3 %v5664_v43 }
 0x1f3   : > { %2849 = vmatpush.bf16.msrb.mxu3 %v4706_v8  ;;  %v4903_v8 = vld [vmem:[%s5582_s24 + $0x368] sm:$0xf0] }
 0x1f4   : > { %2758 = vmatmul.bf16.vlgmr.msra.gmra.mxu1 %v5966_v9  ;;  %v1495_v55 = vpop.f32.mrf.mxu2 }
 0x1f5   : > { %v5977_v56 = vadd.f32 %v1495_v55, %v5861_v19  ;;  %v1544_v37 = vpop.f32.mrf.mxu3  ;;  %v5990_v55 = vor.u32 %v4846_v32, %v4357_v31 }
 0x1f6   : > { %v1594_v62 = vadd.f32 %v1593_v63, %v1544_v37  ;;  %v1595_v43 = vpop.f32.mrf.mxu0  ;;  %v4908_v37 = vld [vmem:[%s5582_s24 + $0x394] sm:$0xf] }
 0x1f8   : > { %v5979_v58 = vadd.f32 %v1642_v28, %v1594_v62  ;;  %v4515_v28 = vld [vmem:[%s5582_s24 + $0x2dc] sm:$0xf0] }
 0x1f9   : > { %v1644_v59 = vpop.f32.mrf.mxu1  ;;  %v4518_v30 = vor.u32 %v4884_v52, %v4515_v28  ;;  %v4611_v62 = vld [vmem:[%s5582_s24 + $0x39c] sm:$0xf0]  ;;  %v1454_v52 = vadd.f32 %v5902_v7, %v5898_v2  ;;  %v4369_v28 = vld [vmem:[%s5584_s26 + $0x30] sm:$0xf] }
 0x1fa   : > { %v4614_v60 = vor.u32 %v4908_v37, %v4611_v62 }
 0x1fb   : > { %2898 = vmatpush.bf16.msrb.mxu0 %v4518_v30 }
 0x1fc   : > { %v1497_v19 = vpop.f32.mrf.mxu2  ;;  %2947 = vmatpush.bf16.msrb.mxu1 %v4614_v60  ;;  %v4881_v60 = vld [vmem:[%s5582_s24 + $0x2bc] sm:$0xf] }
 0x1fd   : > { %v1546_v33 = vpop.f32.mrf.mxu3  ;;  %v1498_v35 = vadd.f32 %v1497_v19, %v1449_v10  ;;  %v4586_v19 = vor.u32 %v4903_v8, %v4585_v6  ;;  %v4503_v6 = vld [vmem:[%s5582_s24 + $0x2c4] sm:$0xf0] }
 0x1fe   : > { %v1598_v63 = vpop.f32.mrf.mxu0  ;;  %v1596_v54 = vadd.f32 %v1595_v43, %v1546_v33  ;;  %v1452_v43 = vadd.f32 %v5888_v57, %v5882_v50  ;;  %v4930_v33 = vld [vmem:[%s5582_s24 + $0x440] sm:$0xf0]  ;;  %v4506_v2 = vor.u32 %v4881_v60, %v4503_v6  ;;  %v4491_v6 = vld [vmem:[%s5582_s24 + $0x2ac] sm:$0xf0] }
 0x1ff   : > { %1838 = vrot.lane.b32.xlu0 %v1498_v35, %s5030_s13  ;;  %2802 = vmatpush.bf16.msrb.mxu2 %v4586_v19  ;;  %v4599_v19 = vld [vmem:[%s5582_s24 + $0x384] sm:$0xf0]  ;;  %v4878_v60 = vld [vmem:[%s5582_s24 + $0x2a4] sm:$0xf] }
 0x200   : > { %v1645_v10 = vadd.f32 %v1644_v59, %v1596_v54  ;;  %v4693_v59 = vld [vmem:[%s5582_s24 + $0x438] sm:$0xf]  ;;  %v4849_v54 = vld [vmem:[%s5584_s26 + $0x38] sm:$0xf0]  ;;  %2899 = vmatpush.bf16.msrb.mxu0 %v4506_v2 }
 0x201   : > { %v1647_v34 = vpop.f32.mrf.mxu1  ;;  %1695 = vmatmul.bf16.gmra.mxu2 %v5700_v21  ;;  %1793 = vmatmul.bf16.gmra.mxu0 %v5810_v17  ;;  %v4694_v35 = vor.u32 %v4930_v33, %v4693_v59  ;;  %v6014_v8 = vor.u32 %v4849_v54, %v4369_v28  ;;  %v4927_v33 = vld [vmem:[%s5582_s24 + $0x428] sm:$0xf0]  ;;  %v4381_v28 = vld [vmem:[%s5584_s26 + $0x48] sm:$0xf]  ;;  %v4852_v54 = vld [vmem:[%s5584_s26 + $0x50] sm:$0xf0] }
 0x202   : > { %1744 = vmatmul.bf16.gmra.mxu3 %v5704_v23  ;;  %v6038_v2 = vor.u32 %v4852_v54, %v4381_v28  ;;  %v4875_v28 = vld [vmem:[%s5582_s24 + $0x28c] sm:$0xf]  ;;  %v4479_v54 = vld [vmem:[%s5582_s24 + $0x294] sm:$0xf0] }
 0x203   : > { %2850 = vmatpush.bf16.msrb.mxu3 %v4694_v35 }
 0x204   : > { %2763 = vmatmul.bf16.gmra.mxu1 %v5990_v55  ;;  %v1500_v31 = vpop.f32.mrf.mxu2 }
 0x205   : > { %v1501_v21 = vadd.f32 %v1500_v31, %v1452_v43  ;;  %v1549_v32 = vpop.f32.mrf.mxu3 }
 0x206   : > { %v1599_v23 = vadd.f32 %v1598_v63, %v1549_v32  ;;  %v1600_v17 = vpop.f32.mrf.mxu0  ;;  %v4900_v32 = vld [vmem:[%s5582_s24 + $0x350] sm:$0xf0] }
 0x207   : > { %1856 = vrot.lane.b32.xlu1 %v1501_v21, %s5031_s14  ;;  %1840 = vrot.lane.b32.xlu0 %v1645_v10, %s5030_s13  ;;  %v4905_v10 = vld [vmem:[%s5582_s24 + $0x37c] sm:$0xf]  ;;  %v4573_v21 = vld [vmem:[%s5582_s24 + $0x348] sm:$0xf] }
 0x208   : > { %v1648_v50 = vadd.f32 %v1647_v34, %v1599_v23  ;;  %v4602_v31 = vor.u32 %v4905_v10, %v4599_v19  ;;  %v1457_v23 = vadd.f32 %v5918_v39, %v5912_v27  ;;  %v4681_v39 = vld [vmem:[%s5582_s24 + $0x420] sm:$0xf]  ;;  %v4587_v10 = vld [vmem:[%s5582_s24 + $0x36c] sm:$0xf0] }
 0x209   : > { %v1649_v57 = vpop.f32.mrf.mxu1  ;;  %v4682_v35 = vor.u32 %v4927_v33, %v4681_v39  ;;  %v4855_v39 = vld [vmem:[%s5584_s26 + $0x68] sm:$0xf0] }
 0x20a   : > { %1858 = vrot.lane.b32.xlu2 %v1648_v50, %s5031_s14  ;;  %2948 = vmatpush.bf16.msrb.mxu1 %v4602_v31  ;;  %v4561_v31 = vld [vmem:[%s5582_s24 + $0x330] sm:$0xf] }
 0x20b   : > { %2851 = vmatpush.bf16.msrb.mxu3 %v4682_v35 }
 0x20c   : > { %v1502_v63 = vpop.f32.mrf.mxu2 }
 0x20d   : > { %v1503_v30 = vadd.f32 %v1502_v63, %v1454_v52  ;;  %v1551_v37 = vpop.f32.mrf.mxu3  ;;  %v1459_v52 = vadd.f32 %v5934_v4, %v5932_v3  ;;  %v4494_v3 = vor.u32 %v4878_v60, %v4491_v6  ;;  %v4549_v6 = vld [vmem:[%s5582_s24 + $0x318] sm:$0xf] }
 0x20e   : > { %v1601_v62 = vadd.f32 %v1600_v17, %v1551_v37  ;;  %v1603_v34 = vpop.f32.mrf.mxu0  ;;  %v4574_v17 = vor.u32 %v4900_v32, %v4573_v21  ;;  %v4897_v21 = vld [vmem:[%s5582_s24 + $0x338] sm:$0xf0]  ;;  %v1462_v32 = vadd.f32 %v5944_v25, %v5942_v18  ;;  %v4669_v25 = vld [vmem:[%s5582_s24 + $0x408] sm:$0xf] }
 0x20f   : > { %1874 = vrot.lane.b32.xlu0 %v1503_v30, %s5032_s15  ;;  %2900 = vmatpush.bf16.msrb.mxu0 %v4494_v3  ;;  %v4894_v3 = vld [vmem:[%s5582_s24 + $0x320] sm:$0xf0] }
 0x210   : > { %v1650_v7 = vadd.f32 %v1649_v57, %v1601_v62  ;;  %2803 = vmatpush.bf16.msrb.mxu2 %v4574_v17 }
 0x211   : > { %v1652_v43 = vpop.f32.mrf.mxu1  ;;  %1700 = vmatmul.bf16.gmra.mxu2 %v5746_v12  ;;  %1798 = vmatmul.bf16.gmra.mxu0 %v5826_v38 }
 0x212   : > { %1749 = vmatmul.bf16.gmra.mxu3 %v5750_v15  ;;  %1876 = vrot.lane.b32.xlu1 %v1650_v7, %s5032_s15 }
 0x214   : > { %2768 = vmatmul.bf16.gmra.mxu1 %v6014_v8  ;;  %v1505_v50 = vpop.f32.mrf.mxu2 }
 0x215   : > { %v1506_v12 = vadd.f32 %v1505_v50, %v1457_v23  ;;  %v1554_v38 = vpop.f32.mrf.mxu3  ;;  %v4562_v23 = vor.u32 %v4897_v21, %v4561_v31  ;;  %v4657_v31 = vld [vmem:[%s5582_s24 + $0x3f0] sm:$0xf]  ;;  %v4921_v21 = vld [vmem:[%s5582_s24 + $0x3f8] sm:$0xf0] }
 0x216   : > { %v1604_v15 = vadd.f32 %v1603_v34, %v1554_v38  ;;  %v1605_v57 = vpop.f32.mrf.mxu0  ;;  %v4924_v38 = vld [vmem:[%s5582_s24 + $0x410] sm:$0xf0] }
 0x217   : > { %1892 = vrot.lane.b32.xlu0 %v1506_v12, %s5033_s16  ;;  %2804 = vmatpush.bf16.msrb.mxu2 %v4562_v23  ;;  %v4405_v23 = vld [vmem:[%s5584_s26 + $0x78] sm:$0xf] }
 0x218   : > { %v1653_v59 = vadd.f32 %v1652_v43, %v1604_v15  ;;  %v4902_v43 = vld [vmem:[%s5582_s24 + $0x364] sm:$0xf]  ;;  %v4670_v15 = vor.u32 %v4924_v38, %v4669_v25 }
 0x219   : > { %v1654_v27 = vpop.f32.mrf.mxu1  ;;  %v4590_v19 = vor.u32 %v4902_v43, %v4587_v10 }
 0x21a   : > { %1894 = vrot.lane.b32.xlu1 %v1653_v59, %s5033_s16  ;;  %2852 = vmatpush.bf16.msrb.mxu3 %v4670_v15 }
 0x21b   : > { %2949 = vmatpush.bf16.msrb.mxu1 %v4590_v19 }
 0x21c   : > { %v1507_v63 = vpop.f32.mrf.mxu2 }
 0x21d   : > { %v1508_v30 = vadd.f32 %v1507_v63, %v1459_v52  ;;  %v1556_v37 = vpop.f32.mrf.mxu3 }
 0x21e   : > { %v1606_v62 = vadd.f32 %v1605_v57, %v1556_v37  ;;  %v1608_v34 = vpop.f32.mrf.mxu0  ;;  %v1464_v57 = vadd.f32 %v5956_v51, %v5954_v42  ;;  %v4482_v42 = vor.u32 %v4875_v28, %v4479_v54 }
 0x21f   : > { %1910 = vrot.lane.b32.xlu0 %v1508_v30, %s5034_s17 }
 0x220   : > { %v1655_v4 = vadd.f32 %v1654_v27, %v1606_v62  ;;  %v4393_v27 = vld [vmem:[%s5584_s26 + $0x60] sm:$0xf]  ;;  %v4899_v62 = vld [vmem:[%s5582_s24 + $0x34c] sm:$0xf]  ;;  %2901 = vmatpush.bf16.msrb.mxu0 %v4482_v42  ;;  %v4645_v42 = vld [vmem:[%s5582_s24 + $0x3d8] sm:$0xf] }
 0x221   : > { %v1657_v7 = vpop.f32.mrf.mxu1  ;;  %1705 = vmatmul.bf16.gmra.mxu2 %v5774_v45  ;;  %1803 = vmatmul.bf16.gmra.mxu0 %v5838_v53  ;;  %v6062_v30 = vor.u32 %v4855_v39, %v4393_v27  ;;  %v4563_v27 = vld [vmem:[%s5582_s24 + $0x33c] sm:$0xf0] }
 0x222   : > { %1754 = vmatmul.bf16.gmra.mxu3 %v5778_v47  ;;  %1912 = vrot.lane.b32.xlu1 %v1655_v4, %s5034_s17  ;;  %v4550_v4 = vor.u32 %v4894_v3, %v4549_v6  ;;  %v4537_v39 = vld [vmem:[%s5582_s24 + $0x300] sm:$0xf]  ;;  %v4915_v6 = vld [vmem:[%s5582_s24 + $0x3c8] sm:$0xf0] }
 0x223   : > { %6829 = vst [vmem:[#allocation4_spill] sm:$0xff] %v6062_v30 }
 0x224   : > { %2773 = vmatmul.bf16.gmra.mxu1 %v6038_v2  ;;  %v1510_v17 = vpop.f32.mrf.mxu2  ;;  %2805 = vmatpush.bf16.msrb.mxu2 %v4550_v4 }
 0x225   : > { %v1511_v45 = vadd.f32 %v1510_v17, %v1462_v32  ;;  %v1559_v53 = vpop.f32.mrf.mxu3  ;;  %v4658_v32 = vor.u32 %v4921_v21, %v4657_v31  ;;  %v4858_v17 = vld [vmem:[%s5584_s26 + $0x80] sm:$0xf0] }
 0x226   : > { %v1609_v47 = vadd.f32 %v1608_v34, %v1559_v53  ;;  %v1610_v50 = vpop.f32.mrf.mxu0  ;;  %v4575_v34 = vld [vmem:[%s5582_s24 + $0x354] sm:$0xf0]  ;;  %v6084_v25 = vor.u32 %v4858_v17, %v4405_v23  ;;  %v4935_v23 = vld [vmem:[%s5582_s24 + $0x46c] sm:$0xf] }
 0x227   : > { %1928 = vrot.lane.b32.xlu0 %v1511_v45, %s5035_s23  ;;  %v4578_v60 = vor.u32 %v4899_v62, %v4575_v34  ;;  %2853 = vmatpush.bf16.msrb.mxu3 %v4658_v32  ;;  %v4861_v34 = vld [vmem:[%s5584_s26 + $0x98] sm:$0xf0]  ;;  %v4551_v32 = vld [vmem:[%s5582_s24 + $0x324] sm:$0xf0]  ;;  %v4719_v17 = vld [vmem:[%s5582_s24 + $0x474] sm:$0xf0] }
 0x228   : > { %v1658_v12 = vadd.f32 %v1657_v7, %v1609_v47  ;;  %6830 = vst [vmem:[#allocation5_spill] sm:$0xff] %v6084_v25 }
 0x229   : > { %v1659_v18 = vpop.f32.mrf.mxu1  ;;  %2950 = vmatpush.bf16.msrb.mxu1 %v4578_v60  ;;  %v4633_v60 = vld [vmem:[%s5582_s24 + $0x3c0] sm:$0xf] }
 0x22a   : > { %1930 = vrot.lane.b32.xlu1 %v1658_v12, %s5035_s23  ;;  %v4872_v12 = vld [vmem:[%s5582_s24 + $0x274] sm:$0xf] }
 0x22c   : > { %v1512_v59 = vpop.f32.mrf.mxu2 }
 0x22d   : > { %v1513_v33 = vadd.f32 %v1512_v59, %v1464_v57  ;;  %v1561_v35 = vpop.f32.mrf.mxu3  ;;  %v4896_v59 = vld [vmem:[%s5582_s24 + $0x334] sm:$0xf] }
 0x22e   : > { %v1611_v52 = vadd.f32 %v1610_v50, %v1561_v35  ;;  %v1613_v63 = vpop.f32.mrf.mxu0 }
 0x22f   : > { %1946 = vrot.lane.b32.xlu0 %v1513_v33, %s5036_s27  ;;  %v4891_v33 = vld [vmem:[%s5582_s24 + $0x308] sm:$0xf0] }
 0x230   : > { %v1660_v51 = vadd.f32 %v1659_v18, %v1611_v52  ;;  %v4467_v18 = vld [vmem:[%s5582_s24 + $0x27c] sm:$0xf0]  ;;  %v4538_v35 = vor.u32 %v4891_v33, %v4537_v39  ;;  %v4429_v39 = vld [vmem:[%s5584_s26 + $0xa8] sm:$0xf]  ;;  %v4864_v33 = vld [vmem:[%s5584_s26 + $0xb0] sm:$0xf0] }
 0x231   : > { %v1662_v37 = vpop.f32.mrf.mxu1  ;;  %1710 = vmatmul.bf16.gmra.mxu2 %v5655_v36  ;;  %1808 = vmatmul.bf16.gmra.mxu0 %v5854_v5  ;;  %v4470_v38 = vor.u32 %v4872_v12, %v4467_v18  ;;  %v4539_v18 = vld [vmem:[%s5582_s24 + $0x30c] sm:$0xf0] }
 0x232   : > { %1759 = vmatmul.bf16.gmra.mxu3 %v5662_v41  ;;  %1948 = vrot.lane.b32.xlu1 %v1660_v51, %s5036_s27  ;;  %v4918_v51 = vld [vmem:[%s5582_s24 + $0x3e0] sm:$0xf0] }
 0x233   : > { %2902 = vmatpush.bf16.msrb.mxu0 %v4470_v38  ;;  %2806 = vmatpush.bf16.msrb.mxu2 %v4538_v35 }
 0x234   : > { %2778 = vmatmul.bf16.gmra.mxu1 %v6062_v30  ;;  %v1515_v7 = vpop.f32.mrf.mxu2 }
 0x235   : > { %v1516_v36 = vadd.f32 %v1515_v7, %v5868_v29  ;;  %v1564_v5 = vpop.f32.mrf.mxu3  ;;  %v4634_v7 = vor.u32 %v4915_v6, %v4633_v60  ;;  %v4842_v6 = vld [vmem:[%s5584_s26 + $0x4] sm:$0xf] }
 0x236   : > { %v1614_v43 = vadd.f32 %v1613_v63, %v1564_v5  ;;  %v1615_v41 = vpop.f32.mrf.mxu0 }
 0x237   : > { %1964 = vrot.lane.b32.xlu0 %v1516_v36, %s5037_s28 }
 0x238   : > { %v1663_v10 = vadd.f32 %v1662_v37, %v1614_v43  ;;  %v4646_v37 = vor.u32 %v4918_v51, %v4645_v42  ;;  %v4869_v43 = vld [vmem:[%s5582_s24 + $0x25c] sm:$0xf] }
 0x239   : > { %v1664_v19 = vpop.f32.mrf.mxu1 }
 0x23a   : > { %1966 = vrot.lane.b32.xlu1 %v1663_v10, %s5037_s28  ;;  %2854 = vmatpush.bf16.msrb.mxu3 %v4646_v37 }
 0x23c   : > { %v1517_v29 = vpop.f32.mrf.mxu2 }
 0x23d   : > { %v1518_v45 = vadd.f32 %v1517_v29, %v5880_v49  ;;  %v1566_v53 = vpop.f32.mrf.mxu3  ;;  %v4566_v49 = vor.u32 %v4896_v59, %v4563_v27 }
 0x23e   : > { %v1616_v47 = vadd.f32 %v1615_v41, %v1566_v53  ;;  %v1618_v50 = vpop.f32.mrf.mxu0  ;;  %v4455_v41 = vld [vmem:[%s5582_s24 + $0x264] sm:$0xf0]  ;;  %2855 = vmatpush.bf16.msrb.mxu3 %v4634_v7  ;;  %v4722_v53 = vor.u32 %v4935_v23, %v4719_v17  ;;  %v4725_v23 = vld [vmem:[%s5582_s24 + $0x470] sm:$0xf] }
 0x23f   : > { %1982 = vrot.lane.b32.xlu0 %v1518_v45, %s5038_s29  ;;  %2951 = vmatpush.bf16.msrb.mxu1 %v4566_v49  ;;  %v4866_v45 = vld [vmem:[%s5582_s24 + $0x244] sm:$0xf] }
 0x240   : > { %v1665_v15 = vadd.f32 %v1664_v19, %v1616_v47  ;;  %v4458_v19 = vor.u32 %v4869_v43, %v4455_v41  ;;  %v4443_v47 = vld [vmem:[%s5582_s24 + $0x24c] sm:$0xf0]  ;;  %2995 = vmatpush.bf16.msra.mxu2 %v4722_v53 }
 0x241   : > { %v1667_v57 = vpop.f32.mrf.mxu1  ;;  %1715 = vmatmul.bf16.gmra.mxu2 %v5698_v20  ;;  %1813 = vmatmul.bf16.gmra.mxu0 %v5878_v48  ;;  %v4446_v12 = vor.u32 %v4866_v45, %v4443_v47  ;;  %v4937_v45 = vld [vmem:[%s5582_s24 + $0x478] sm:$0xf0] }
 0x242   : > { %1764 = vmatmul.bf16.gmra.mxu3 %v5702_v22  ;;  %1984 = vrot.lane.b32.xlu1 %v1665_v15, %s5038_s29  ;;  %v4726_v53 = vor.u32 %v4937_v45, %v4725_v23  ;;  %v4929_v47 = vld [vmem:[%s5582_s24 + $0x43c] sm:$0xf] }
 0x243   : > { %2903 = vmatpush.bf16.msrb.mxu0 %v4458_v19 }
 0x244   : > { %2783 = vmatmul.bf16.gmra.mxu1 %v6084_v25  ;;  %v1520_v52 = vpop.f32.mrf.mxu2 }
 0x245   : > { %v1521_v20 = vadd.f32 %v1520_v52, %v5896_v1  ;;  %v1569_v48 = vpop.f32.mrf.mxu3  ;;  %v4417_v1 = vld [vmem:[%s5584_s26 + $0x90] sm:$0xf] }
 0x246   : > { %v1619_v22 = vadd.f32 %v1618_v50, %v1569_v48  ;;  %v1620_v63 = vpop.f32.mrf.mxu0  ;;  %v6108_v10 = vor.u32 %v4861_v34, %v4417_v1  ;;  %v6130_v48 = vor.u32 %v4864_v33, %v4429_v39  ;;  %v4889_v34 = vld [vmem:[%s5582_s24 + $0x2f8] sm:$0xf0] }
 0x247   : > { %2000 = vrot.lane.b32.xlu0 %v1521_v20, %s5039_s30  ;;  %2904 = vmatpush.bf16.msrb.mxu0 %v4446_v12 }
 0x248   : > { %v1668_v28 = vadd.f32 %v1667_v57, %v1619_v22 }
 0x249   : > { %v1669_v54 = vpop.f32.mrf.mxu1 }
 0x24a   : > { %2002 = vrot.lane.b32.xlu1 %v1668_v28, %s5039_s30  ;;  %v4707_v28 = vld [vmem:[%s5582_s24 + $0x45c] sm:$0xf0] }
 0x24c   : > { %v1522_v62 = vpop.f32.mrf.mxu2 }
 0x24d   : > { %v1523_v3 = vadd.f32 %v1522_v62, %v5910_v26  ;;  %v1571_v4 = vpop.f32.mrf.mxu3  ;;  %v4893_v26 = vld [vmem:[%s5582_s24 + $0x31c] sm:$0xf]  ;;  %v4533_v62 = vld [vmem:[%s5582_s24 + $0x2f0] sm:$0xf] }
 0x24e   : > { %v1621_v36 = vadd.f32 %v1620_v63, %v1571_v4  ;;  %v1623_v5 = vpop.f32.mrf.mxu0  ;;  %v4554_v29 = vor.u32 %v4893_v26, %v4551_v32  ;;  %v4534_v60 = vor.u32 %v4889_v34, %v4533_v62  ;;  %v4844_v4 = vld [vmem:[%s5584_s26 + $0x10] sm:$0xf0]  ;;  %v4629_v32 = vld [vmem:[%s5582_s24 + $0x3b0] sm:$0xf]  ;;  %v4617_v34 = vld [vmem:[%s5582_s24 + $0x398] sm:$0xf] }
 0x24f   : > { %2018 = vrot.lane.b32.xlu0 %v1523_v3, %s5040_s18  ;;  %v4347_v3 = vld [vmem:[%s5584_s26 + $0xc] sm:$0xf0] }
 0x250   : > { %v1670_v31 = vadd.f32 %v1669_v54, %v1621_v36  ;;  %2952 = vmatpush.bf16.msrb.mxu1 %v4554_v29  ;;  %3044 = vmatpush.bf16.msra.mxu3 %v4534_v60  ;;  %v6149_v43 = vor.u32 %v4842_v6, %v4347_v3  ;;  %v4913_v29 = vld [vmem:[%s5582_s24 + $0x3b8] sm:$0xf0]  ;;  %v4910_v60 = vld [vmem:[%s5582_s24 + $0x3a0] sm:$0xf0]  ;;  %v4713_v6 = vld [vmem:[%s5582_s24 + $0x458] sm:$0xf] }
 0x251   : > { %v1672_v21 = vpop.f32.mrf.mxu1  ;;  %1720 = vmatmul.bf16.gmra.mxu2 %v5744_v11  ;;  %1818 = vmatmul.bf16.gmra.mxu0 %v5908_v24  ;;  %v4890_v11 = vld [vmem:[%s5582_s24 + $0x304] sm:$0xf]  ;;  %v4630_v17 = vor.u32 %v4913_v29, %v4629_v32 }
 0x252   : > { %1769 = vmatmul.bf16.gmra.mxu3 %v5748_v13  ;;  %2020 = vrot.lane.b32.xlu1 %v1670_v31, %s5040_s18  ;;  %v4542_v38 = vor.u32 %v4890_v11, %v4539_v18 }
 0x253   : > { %3093 = vmatpush.bf16.msra.mxu0 %v4630_v17 }
 0x254   : > { %2788 = vmatmul.bf16.gmra.mxu1 %v6108_v10  ;;  %v1525_v50 = vpop.f32.mrf.mxu2 }
 0x255   : > { %v1526_v24 = vadd.f32 %v1525_v50, %v5930_v0  ;;  %v1574_v13 = vpop.f32.mrf.mxu3  ;;  %2953 = vmatpush.bf16.msrb.mxu1 %v4542_v38  ;;  %v4695_v50 = vld [vmem:[%s5582_s24 + $0x444] sm:$0xf0] }
 0x256   : > { %v1624_v15 = vadd.f32 %v1623_v5, %v1574_v13  ;;  %v1625_v57 = vpop.f32.mrf.mxu0  ;;  %v4698_v12 = vor.u32 %v4929_v47, %v4695_v50  ;;  %v4509_v47 = vld [vmem:[%s5582_s24 + $0x2c0] sm:$0xf]  ;;  %v4883_v50 = vld [vmem:[%s5582_s24 + $0x2c8] sm:$0xf0] }
 0x257   : > { %2036 = vrot.lane.b32.xlu0 %v1526_v24, %s5041_s6  ;;  %v1829_v24 = vld [vmem:[%s6818_s5] sm:$0xff] }
 0x258   : > { %v1673_v59 = vadd.f32 %v1672_v21, %v1624_v15  ;;  %v1832_v39 = vadd.f32 %v1829_v24, %v5977_v56  ;;  %v4371_v24 = vld [vmem:[%s5584_s26 + $0x3c] sm:$0xf0] }
 0x259   : > { %v1674_v27 = vpop.f32.mrf.mxu1  ;;  %3142 = vmatpush.bf16.msra.mxu1 %v4726_v53 }
 0x25a   : > { %2038 = vrot.lane.b32.xlu1 %v1673_v59, %s5041_s6 }
 0x25c   : > { %v1527_v49 = vpop.f32.mrf.mxu2 }
 0x25d   : > { %v1528_v0 = vadd.f32 %v1527_v49, %v5940_v16  ;;  %v1576_v35 = vpop.f32.mrf.mxu3  ;;  %v4932_v16 = vld [vmem:[%s5582_s24 + $0x454] sm:$0xf]  ;;  %v4886_v49 = vld [vmem:[%s5582_s24 + $0x2e0] sm:$0xf0] }
 0x25e   : > { %v1626_v52 = vadd.f32 %v1625_v57, %v1576_v35  ;;  %v1628_v20 = vpop.f32.mrf.mxu0  ;;  %v4710_v54 = vor.u32 %v4932_v16, %v4707_v28  ;;  %v4365_v16 = vld [vmem:[%s5584_s26 + $0x20] sm:$0xf]  ;;  %v4847_v28 = vld [vmem:[%s5584_s26 + $0x28] sm:$0xf0] }
 0x25f   : > { %2054 = vrot.lane.b32.xlu0 %v1528_v0, %s5042_s7 }
 0x260   : > { %v1675_v22 = vadd.f32 %v1674_v27, %v1626_v52  ;;  %2996 = vmatpush.bf16.msra.mxu2 %v4710_v54  ;;  %v4521_v27 = vld [vmem:[%s5582_s24 + $0x2d8] sm:$0xf] }
 0x261   : > { %v1677_v63 = vpop.f32.mrf.mxu1  ;;  %1725 = vmatmul.bf16.gmra.mxu2 %v5772_v44  ;;  %1823 = vmatmul.bf16.gmra.mxu0 %v5938_v14  ;;  %v4522_v35 = vor.u32 %v4886_v49, %v4521_v27 }
 0x262   : > { %1774 = vmatmul.bf16.gmra.mxu3 %v5776_v46  ;;  %2056 = vrot.lane.b32.xlu1 %v1675_v22, %s5042_s7  ;;  %v4359_v22 = vld [vmem:[%s5584_s26 + $0x24] sm:$0xf0] }
 0x263   : > { %3045 = vmatpush.bf16.msra.mxu3 %v4522_v35 }
 0x264   : > { %2793 = vmatmul.bf16.gmra.mxu1 %v6130_v48  ;;  %v1530_v42 = vpop.f32.mrf.mxu2  ;;  %2997 = vmatpush.bf16.msra.mxu2 %v4698_v12  ;;  %v6172_v57 = vpop.permute.xlu2 %1858 }
 0x265   : > { %v1531_v51 = vadd.f32 %v1530_v42, %v5952_v40  ;;  %v1579_v44 = vpop.f32.mrf.mxu3  ;;  %v4353_v40 = vld [vmem:[%s5584_s26 + $0x8] sm:$0xf] }
 0x266   : > { %v1629_v14 = vadd.f32 %v1628_v20, %v1579_v44  ;;  %v1630_v46 = vpop.f32.mrf.mxu0  ;;  %v6151_v19 = vor.u32 %v4844_v4, %v4353_v40  ;;  %v4845_v20 = vld [vmem:[%s5584_s26 + $0x1c] sm:$0xf]  ;;  %v4618_v40 = vor.u32 %v4910_v60, %v4617_v34  ;;  %v4934_v4 = vld [vmem:[%s5582_s24 + $0x460] sm:$0xf0]  ;;  %v4923_v34 = vld [vmem:[%s5582_s24 + $0x40c] sm:$0xf] }
 0x267   : > { %2072 = vrot.lane.b32.xlu0 %v1531_v51, %s5043_s8  ;;  %v6189_v51 = vor.u32 %v4845_v20, %v4359_v22  ;;  %v4671_v60 = vld [vmem:[%s5582_s24 + $0x414] sm:$0xf0] }
 0x268   : > { %v1678_v37 = vadd.f32 %v1677_v63, %v1629_v14  ;;  %3094 = vmatpush.bf16.msra.mxu0 %v4618_v40 }
 0x269   : > { %v1679_v1 = vpop.f32.mrf.mxu1 }
 0x26a   : > { %2074 = vrot.lane.b32.xlu1 %v1678_v37, %s5043_s8 }
 0x26c   : > { %v1532_v7 = vpop.f32.mrf.mxu2 }
 0x26d   : > { %v1533_v36 = vadd.f32 %v1532_v7, %v5962_v61  ;;  %v1581_v5 = vpop.f32.mrf.mxu3  ;;  %v4714_v7 = vor.u32 %v4934_v4, %v4713_v6  ;;  %v4674_v6 = vor.u32 %v4923_v34, %v4671_v60 }
 0x26e   : > { %v1631_v41 = vadd.f32 %v1630_v46, %v1581_v5  ;;  %v1789_v31 = vpop.f32.mrf.mxu0  ;;  %v6191_v46 = vor.u32 %v4847_v28, %v4365_v16  ;;  %v4683_v5 = vld [vmem:[%s5582_s24 + $0x42c] sm:$0xf0] }
 0x26f   : > { %2090 = vrot.lane.b32.xlu0 %v1533_v36, %s5044_s9  ;;  %v4926_v36 = vld [vmem:[%s5582_s24 + $0x424] sm:$0xf]  ;;  %3143 = vmatpush.bf16.msra.mxu1 %v4714_v7 }
 0x270   : > { %v1680_v21 = vadd.f32 %v1679_v1, %v1631_v41  ;;  %v4686_v41 = vor.u32 %v4926_v36, %v4683_v5 }
 0x271   : > { %v6154_v26 = vpop.f32.mrf.mxu1  ;;  %2807 = vmatmul.bf16.vlgmr.msrb.gmra.mxu2 %v6149_v43  ;;  %v1839_v61 = vpop.permute.xlu0 %1838  ;;  %2905 = vmatmul.bf16.vlgmr.msrb.gmra.mxu0 %v5966_v9 }
 0x272   : > { %2856 = vmatmul.bf16.vlgmr.msrb.gmra.mxu3 %v6151_v19  ;;  %2092 = vrot.lane.b32.xlu1 %v1680_v21, %s5044_s9 }
 0x273   : > { %2998 = vmatpush.bf16.msra.mxu2 %v4686_v41 }
 0x274   : > { %2954 = vmatmul.bf16.vlgmr.msrb.gmra.mxu1 %v6149_v43  ;;  %v1691_v11 = vpop.f32.mrf.mxu2 }
 0x275   : > { %v1740_v18 = vpop.f32.mrf.mxu3 }
 0x276   : > { %v1741_v13 = vadd.f32 %v1740_v18, %v1691_v11  ;;  %v1791_v38 = vpop.f32.mrf.mxu0  ;;  %v4510_v11 = vor.u32 %v4883_v50, %v4509_v47  ;;  %v4848_v18 = vld [vmem:[%s5584_s26 + $0x34] sm:$0xf]  ;;  %v4853_v47 = vld [vmem:[%s5584_s26 + $0x58] sm:$0xf0] }
 0x277   : > { %v6223_v35 = vor.u32 %v4848_v18, %v4371_v24  ;;  %2999 = vmatpush.bf16.msra.mxu2 %v4674_v6 }
 0x278   : > { %v6170_v15 = vadd.f32 %v1789_v31, %v1741_v13  ;;  %v4377_v13 = vld [vmem:[%s5584_s26 + $0x38] sm:$0xf]  ;;  %3046 = vmatpush.bf16.msra.mxu3 %v4510_v11 }
 0x279   : > { %v6174_v59 = vpop.f32.mrf.mxu1  ;;  %v1857_v33 = vpop.permute.xlu1 %1856 }
 0x27a   : > { %v6179_v0 = vpop.permute.xlu0 %1840  ;;  %v1863_v56 = vsel %vm1862_vm2, %v1857_v33, %v6172_v57 }
 0x27b   : > { %v1845_v52 = vsel %vm1844_vm1, %v1839_v61, %v6179_v0 }
 0x27c   : > { %v1850_v63 = vadd.f32 %v1845_v52, %v1832_v39  ;;  %v1693_v54 = vpop.f32.mrf.mxu2 }
 0x27d   : > { %v1742_v42 = vpop.f32.mrf.mxu3 }
 0x27e   : > { %v1868_v44 = vadd.f32 %v1863_v56, %v1850_v63  ;;  %v1743_v14 = vadd.f32 %v1742_v42, %v1693_v54  ;;  %v1794_v37 = vpop.f32.mrf.mxu0  ;;  %v4605_v56 = vld [vmem:[%s5582_s24 + $0x380] sm:$0xf]  ;;  %v4907_v54 = vld [vmem:[%s5582_s24 + $0x388] sm:$0xf0] }
 0x27f   : > { %v4701_v42 = vld [vmem:[%s5582_s24 + $0x440] sm:$0xf] }
 0x280   : > { %v1792_v1 = vadd.f32 %v1791_v38, %v1743_v14  ;;  %v4850_v38 = vld [vmem:[%s5584_s26 + $0x40] sm:$0xf0]  ;;  %v4606_v14 = vor.u32 %v4907_v54, %v4605_v56  ;;  %v4928_v54 = vld [vmem:[%s5582_s24 + $0x430] sm:$0xf0] }
 0x281   : > { %v6193_v62 = vpop.f32.mrf.mxu1  ;;  %2812 = vmatmul.bf16.gmra.mxu2 %v6189_v51  ;;  %2910 = vmatmul.bf16.gmra.mxu0 %v5990_v55  ;;  %v6227_v22 = vor.u32 %v4850_v38, %v4377_v13 }
 0x282   : > { %v1875_v3 = vpop.permute.xlu0 %1874  ;;  %2861 = vmatmul.bf16.gmra.mxu3 %v6191_v46  ;;  %1842 = vrot.lane.b32.xlu1 %v1792_v1, %s5030_s13 }
 0x283   : > { %3095 = vmatpush.bf16.msra.mxu0 %v4606_v14  ;;  %v4920_v14 = vld [vmem:[%s5582_s24 + $0x3f4] sm:$0xf] }
 0x284   : > { %2959 = vmatmul.bf16.gmra.mxu1 %v6189_v51  ;;  %v6206_v31 = vpop.permute.xlu1 %1876  ;;  %v1696_v21 = vpop.f32.mrf.mxu2 }
 0x285   : > { %v1881_v32 = vsel %vm1880_vm3, %v1875_v3, %v6206_v31  ;;  %v1745_v29 = vpop.f32.mrf.mxu3 }
 0x286   : > { %v1886_v23 = vadd.f32 %v1881_v32, %v1868_v44  ;;  %v1746_v61 = vadd.f32 %v1745_v29, %v1696_v21  ;;  %v1796_v17 = vpop.f32.mrf.mxu0  ;;  %v4497_v21 = vld [vmem:[%s5582_s24 + $0x2a8] sm:$0xf]  ;;  %v4880_v32 = vld [vmem:[%s5582_s24 + $0x2b0] sm:$0xf0] }
 0x288   : > { %v1795_v45 = vadd.f32 %v1794_v37, %v1746_v61  ;;  %v4931_v37 = vld [vmem:[%s5582_s24 + $0x448] sm:$0xf0] }
 0x289   : > { %v6210_v53 = vpop.f32.mrf.mxu1  ;;  %v4702_v1 = vor.u32 %v4931_v37, %v4701_v42  ;;  %v4851_v61 = vld [vmem:[%s5584_s26 + $0x4c] sm:$0xf]  ;;  %v4659_v37 = vld [vmem:[%s5582_s24 + $0x3fc] sm:$0xf0] }
 0x28a   : > { %v1893_v12 = vpop.permute.xlu0 %1892  ;;  %1860 = vrot.lane.b32.xlu2 %v1795_v45, %s5031_s14  ;;  %v4389_v45 = vld [vmem:[%s5584_s26 + $0x50] sm:$0xf] }
 0x28b   : > { %3144 = vmatpush.bf16.msra.mxu1 %v4702_v1  ;;  %v6261_v13 = vor.u32 %v4853_v47, %v4389_v45  ;;  %v4662_v1 = vor.u32 %v4920_v14, %v4659_v37  ;;  %v4401_v45 = vld [vmem:[%s5584_s26 + $0x68] sm:$0xf]  ;;  %v4856_v47 = vld [vmem:[%s5584_s26 + $0x70] sm:$0xf0]  ;;  %v4677_v14 = vld [vmem:[%s5582_s24 + $0x410] sm:$0xf] }
 0x28c   : > { %v6219_v27 = vpop.permute.xlu1 %1894  ;;  %v1698_v49 = vpop.f32.mrf.mxu2 }
 0x28d   : > { %v1899_v39 = vsel %vm1898_vm4, %v1893_v12, %v6219_v27  ;;  %v1747_v33 = vpop.f32.mrf.mxu3  ;;  %3000 = vmatpush.bf16.msra.mxu2 %v4662_v1 }
 0x28e   : > { %v6225_v52 = vadd.f32 %v1899_v39, %v1886_v23  ;;  %v1748_v20 = vadd.f32 %v1747_v33, %v1698_v49  ;;  %v1799_v63 = vpop.f32.mrf.mxu0  ;;  %v4498_v23 = vor.u32 %v4880_v32, %v4497_v21  ;;  %v4593_v33 = vld [vmem:[%s5582_s24 + $0x368] sm:$0xf]  ;;  %v4877_v21 = vld [vmem:[%s5582_s24 + $0x298] sm:$0xf0] }
 0x290   : > { %v1797_v16 = vadd.f32 %v1796_v17, %v1748_v20  ;;  %v4383_v17 = vld [vmem:[%s5584_s26 + $0x54] sm:$0xf0]  ;;  %3047 = vmatpush.bf16.msra.mxu3 %v4498_v23  ;;  %v4904_v20 = vld [vmem:[%s5582_s24 + $0x370] sm:$0xf0] }
 0x291   : > { %v6229_v28 = vpop.f32.mrf.mxu1  ;;  %2817 = vmatmul.bf16.gmra.mxu2 %v6223_v35  ;;  %2915 = vmatmul.bf16.gmra.mxu0 %v6014_v8  ;;  %v6259_v18 = vor.u32 %v4851_v61, %v4383_v17  ;;  %v4594_v56 = vor.u32 %v4904_v20, %v4593_v33  ;;  %v4854_v61 = vld [vmem:[%s5584_s26 + $0x64] sm:$0xf]  ;;  %v4395_v17 = vld [vmem:[%s5584_s26 + $0x6c] sm:$0xf0]  ;;  %v6295_v33 = vor.u32 %v4856_v47, %v4401_v45 }
 0x292   : > { %v6235_v44 = vpop.permute.xlu0 %1910  ;;  %2866 = vmatmul.bf16.gmra.mxu3 %v6227_v22  ;;  %1878 = vrot.lane.b32.xlu2 %v1797_v16, %s5032_s15 }
 0x293   : > { %3096 = vmatpush.bf16.msra.mxu0 %v4594_v56  ;;  %6832 = vst [vmem:[#allocation7_spill] sm:$0xff] %v6295_v33 }
 0x294   : > { %2964 = vmatmul.bf16.gmra.mxu1 %v6223_v35  ;;  %v6244_v3 = vpop.permute.xlu1 %1912  ;;  %v1701_v40 = vpop.f32.mrf.mxu2 }
 0x295   : > { %v1750_v4 = vpop.f32.mrf.mxu3 }
 0x296   : > { %v1751_v7 = vadd.f32 %v1750_v4, %v1701_v40  ;;  %v1801_v36 = vpop.f32.mrf.mxu0 }
 0x298   : > { %v1800_v5 = vadd.f32 %v1799_v63, %v1751_v7  ;;  %v4689_v63 = vld [vmem:[%s5582_s24 + $0x428] sm:$0xf] }
 0x299   : > { %v6246_v41 = vpop.f32.mrf.mxu1  ;;  %v4690_v42 = vor.u32 %v4928_v54, %v4689_v63  ;;  %v4581_v54 = vld [vmem:[%s5582_s24 + $0x350] sm:$0xf] }
 0x29a   : > { %v6250_v29 = vpop.permute.xlu0 %1928  ;;  %1896 = vrot.lane.b32.xlu2 %v1800_v5, %s5033_s16  ;;  %v4485_v5 = vld [vmem:[%s5582_s24 + $0x290] sm:$0xf] }
 0x29b   : > { %3145 = vmatpush.bf16.msra.mxu1 %v4690_v42  ;;  %v4486_v23 = vor.u32 %v4877_v21, %v4485_v5  ;;  %v4901_v42 = vld [vmem:[%s5582_s24 + $0x358] sm:$0xf0] }
 0x29c   : > { %v6257_v50 = vpop.permute.xlu1 %1930  ;;  %v1703_v12 = vpop.f32.mrf.mxu2  ;;  %v4582_v1 = vor.u32 %v4901_v42, %v4581_v54  ;;  %v4857_v54 = vld [vmem:[%s5584_s26 + $0x7c] sm:$0xf]  ;;  %v4407_v42 = vld [vmem:[%s5584_s26 + $0x84] sm:$0xf0] }
 0x29d   : > { %v1752_v11 = vpop.f32.mrf.mxu3  ;;  %3048 = vmatpush.bf16.msra.mxu3 %v4486_v23 }
 0x29e   : > { %v1753_v24 = vadd.f32 %v1752_v11, %v1703_v12  ;;  %v1804_v38 = vpop.f32.mrf.mxu0  ;;  %3097 = vmatpush.bf16.msra.mxu0 %v4582_v1  ;;  %v4859_v1 = vld [vmem:[%s5584_s26 + $0x88] sm:$0xf0] }
 0x2a0   : > { %v1802_v49 = vadd.f32 %v1801_v36, %v1753_v24 }
 0x2a1   : > { %v6263_v39 = vpop.f32.mrf.mxu1  ;;  %2822 = vmatmul.bf16.gmra.mxu2 %v6259_v18  ;;  %2920 = vmatmul.bf16.gmra.mxu0 %v6038_v2 }
 0x2a2   : > { %v6269_v16 = vpop.permute.xlu0 %1946  ;;  %2871 = vmatmul.bf16.gmra.mxu3 %v6261_v13  ;;  %1914 = vrot.lane.b32.xlu2 %v1802_v49, %s5034_s17 }
 0x2a4   : > { %2969 = vmatmul.bf16.gmra.mxu1 %v6259_v18  ;;  %v6278_v34 = vpop.permute.xlu1 %1948  ;;  %v1706_v60 = vpop.f32.mrf.mxu2 }
 0x2a5   : > { %v1755_v6 = vpop.f32.mrf.mxu3 }
 0x2a6   : > { %v1756_v40 = vadd.f32 %v1755_v6, %v1706_v60  ;;  %v1806_v4 = vpop.f32.mrf.mxu0  ;;  %v4925_v60 = vld [vmem:[%s5582_s24 + $0x418] sm:$0xf0] }
 0x2a7   : > { %v4678_v6 = vor.u32 %v4925_v60, %v4677_v14  ;;  %v4413_v14 = vld [vmem:[%s5584_s26 + $0x80] sm:$0xf] }
 0x2a8   : > { %v1805_v7 = vadd.f32 %v1804_v38, %v1756_v40  ;;  %v6293_v38 = vor.u32 %v4854_v61, %v4395_v17  ;;  %v4917_v40 = vld [vmem:[%s5582_s24 + $0x3dc] sm:$0xf] }
 0x2a9   : > { %v6280_v36 = vpop.f32.mrf.mxu1  ;;  %3146 = vmatpush.bf16.msra.mxu1 %v4678_v6 }
 0x2aa   : > { %v6284_v32 = vpop.permute.xlu0 %1964  ;;  %1932 = vrot.lane.b32.xlu2 %v1805_v7, %s5035_s23  ;;  %6831 = vst [vmem:[#allocation6_spill] sm:$0xff] %v6293_v38 }
 0x2ac   : > { %v6291_v12 = vpop.permute.xlu1 %1966  ;;  %v1708_v11 = vpop.f32.mrf.mxu2 }
 0x2ad   : > { %v1757_v24 = vpop.f32.mrf.mxu3 }
 0x2ae   : > { %v1758_v49 = vadd.f32 %v1757_v24, %v1708_v11  ;;  %v1809_v20 = vpop.f32.mrf.mxu0  ;;  %v4473_v11 = vld [vmem:[%s5582_s24 + $0x278] sm:$0xf]  ;;  %v4874_v24 = vld [vmem:[%s5582_s24 + $0x280] sm:$0xf0] }
 0x2b0   : > { %v1807_v63 = vadd.f32 %v1806_v4, %v1758_v49  ;;  %v4647_v4 = vld [vmem:[%s5582_s24 + $0x3e4] sm:$0xf0] }
 0x2b1   : > { %v6297_v56 = vpop.f32.mrf.mxu1  ;;  %2827 = vmatmul.bf16.gmra.mxu2 %v6293_v38  ;;  %2925 = vmatmul.bf16.gmra.mxu0 %v6062_v30  ;;  %v4650_v7 = vor.u32 %v4917_v40, %v4647_v4  ;;  %v6327_v40 = vor.u32 %v4857_v54, %v4407_v42  ;;  %v4922_v42 = vld [vmem:[%s5582_s24 + $0x400] sm:$0xf0]  ;;  %v4895_v30 = vld [vmem:[%s5582_s24 + $0x328] sm:$0xf0] }
 0x2b2   : > { %6833 = vst [vmem:[#allocation8_spill] sm:$0xff] %v6297_v56  ;;  %v6303_v37 = vpop.permute.xlu0 %1982  ;;  %2876 = vmatmul.bf16.gmra.mxu3 %v6295_v33  ;;  %1950 = vrot.lane.b32.xlu2 %v1807_v63, %s5036_s27  ;;  %v4474_v63 = vor.u32 %v4874_v24, %v4473_v11  ;;  %v4898_v11 = vld [vmem:[%s5582_s24 + $0x340] sm:$0xf0]  ;;  %v4665_v24 = vld [vmem:[%s5582_s24 + $0x3f8] sm:$0xf] }
 0x2b3   : > { %3001 = vmatpush.bf16.msra.mxu2 %v4650_v7  ;;  %6835 = vst [vmem:[#allocation10_spill] sm:$0xff] %v6327_v40  ;;  %v6329_v7 = vor.u32 %v4859_v1, %v4413_v14  ;;  %v4666_v14 = vor.u32 %v4922_v42, %v4665_v24  ;;  %v4635_v1 = vld [vmem:[%s5582_s24 + $0x3cc] sm:$0xf0]  ;;  %v4557_v56 = vld [vmem:[%s5582_s24 + $0x320] sm:$0xf] }
 0x2b4   : > { %2974 = vmatmul.bf16.gmra.mxu1 %v6293_v38  ;;  %v6312_v5 = vpop.permute.xlu1 %1984  ;;  %v1711_v21 = vpop.f32.mrf.mxu2  ;;  %3049 = vmatpush.bf16.msra.mxu3 %v4474_v63  ;;  %v4558_v38 = vor.u32 %v4895_v30, %v4557_v56  ;;  %v4545_v56 = vld [vmem:[%s5582_s24 + $0x308] sm:$0xf] }
 0x2b5   : > { %v1760_v23 = vpop.f32.mrf.mxu3  ;;  %6836 = vst [vmem:[#allocation11_spill] sm:$0xff] %v6329_v7  ;;  %3147 = vmatpush.bf16.msra.mxu1 %v4666_v14  ;;  %v4425_v14 = vld [vmem:[%s5584_s26 + $0x98] sm:$0xf] }
 0x2b6   : > { %v1761_v61 = vadd.f32 %v1760_v23, %v1711_v21  ;;  %v1811_v17 = vpop.f32.mrf.mxu0 }
 0x2b8   : > { %v1810_v45 = vadd.f32 %v1809_v20, %v1761_v61 }
 0x2b9   : > { %v6314_v47 = vpop.f32.mrf.mxu1 }
 0x2ba   : > { %6834 = vst [vmem:[#allocation9_spill] sm:$0xff] %v6314_v47  ;;  %v6318_v49 = vpop.permute.xlu0 %2000  ;;  %1968 = vrot.lane.b32.xlu2 %v1810_v45, %s5037_s28  ;;  %v4569_v45 = vld [vmem:[%s5582_s24 + $0x338] sm:$0xf] }
 0x2bb   : > { %v4570_v54 = vor.u32 %v4898_v11, %v4569_v45 }
 0x2bc   : > { %v6325_v60 = vpop.permute.xlu1 %2002  ;;  %v1713_v20 = vpop.f32.mrf.mxu2 }
 0x2bd   : > { %v1762_v6 = vpop.f32.mrf.mxu3  ;;  %3098 = vmatpush.bf16.msra.mxu0 %v4570_v54  ;;  %v4871_v54 = vld [vmem:[%s5582_s24 + $0x268] sm:$0xf0] }
 0x2be   : > { %v1763_v4 = vadd.f32 %v1762_v6, %v1713_v20  ;;  %v1814_v21 = vpop.f32.mrf.mxu0 }
 0x2c0   : > { %v1812_v23 = vadd.f32 %v1811_v17, %v1763_v4  ;;  %v4914_v17 = vld [vmem:[%s5582_s24 + $0x3c4] sm:$0xf] }
 0x2c1   : > { %v6331_v61 = vpop.f32.mrf.mxu1  ;;  %2832 = vmatmul.bf16.gmra.mxu2 %v6327_v40  ;;  %2930 = vmatmul.bf16.gmra.mxu0 %v6084_v25  ;;  %v4638_v20 = vor.u32 %v4914_v17, %v4635_v1  ;;  %v4860_v1 = vld [vmem:[%s5584_s26 + $0x94] sm:$0xf] }
 0x2c2   : > { %6837 = vst [vmem:[#allocation12_spill] sm:$0xff] %v6331_v61  ;;  %v6337_v63 = vpop.permute.xlu0 %2018  ;;  %2881 = vmatmul.bf16.gmra.mxu3 %v6329_v7  ;;  %1986 = vrot.lane.b32.xlu2 %v1812_v23, %s5038_s29  ;;  %v4461_v61 = vld [vmem:[%s5582_s24 + $0x260] sm:$0xf] }
 0x2c3   : > { %3002 = vmatpush.bf16.msra.mxu2 %v4638_v20  ;;  %v4462_v17 = vor.u32 %v4871_v54, %v4461_v61  ;;  %v4862_v20 = vld [vmem:[%s5584_s26 + $0xa0] sm:$0xf0]  ;;  %3099 = vmatpush.bf16.msra.mxu0 %v4558_v38 }
 0x2c4   : > { %2979 = vmatmul.bf16.gmra.mxu1 %v6327_v40  ;;  %v6346_v6 = vpop.permute.xlu1 %2020  ;;  %v1716_v4 = vpop.f32.mrf.mxu2  ;;  %v4419_v40 = vld [vmem:[%s5584_s26 + $0x9c] sm:$0xf0]  ;;  %v6365_v54 = vor.u32 %v4862_v20, %v4425_v14 }
 0x2c5   : > { %v1765_v45 = vpop.f32.mrf.mxu3  ;;  %3050 = vmatpush.bf16.msra.mxu3 %v4462_v17  ;;  %v6363_v7 = vor.u32 %v4860_v1, %v4419_v40  ;;  %v1917_v17 = vsel %vm1916_vm5, %v6235_v44, %v6244_v3  ;;  %v4653_v1 = vld [vmem:[%s5582_s24 + $0x3e0] sm:$0xf] }
 0x2c6   : > { %v1766_v23 = vadd.f32 %v1765_v45, %v1716_v4  ;;  %v1816_v11 = vpop.f32.mrf.mxu0  ;;  %v4449_v45 = vld [vmem:[%s5582_s24 + $0x248] sm:$0xf]  ;;  %v1922_v30 = vadd.f32 %v1917_v17, %v6225_v52 }
 0x2c8   : > { %v1815_v24 = vadd.f32 %v1814_v21, %v1766_v23  ;;  %v4868_v23 = vld [vmem:[%s5582_s24 + $0x250] sm:$0xf0] }
 0x2c9   : > { %v6348_v42 = vpop.f32.mrf.mxu1  ;;  %v4450_v61 = vor.u32 %v4868_v23, %v4449_v45  ;;  %v4919_v45 = vld [vmem:[%s5582_s24 + $0x3e8] sm:$0xf0] }
 0x2ca   : > { %6838 = vst [vmem:[#allocation13_spill] sm:$0xff] %v6348_v42  ;;  %v6352_v25 = vpop.permute.xlu0 %2036  ;;  %2004 = vrot.lane.b32.xlu2 %v1815_v24, %s5039_s30  ;;  %v4654_v44 = vor.u32 %v4919_v45, %v4653_v1 }
 0x2cb   : > { %3051 = vmatpush.bf16.msra.mxu3 %v4450_v61  ;;  %v4641_v61 = vld [vmem:[%s5582_s24 + $0x3c8] sm:$0xf] }
 0x2cc   : > { %v6359_v4 = vpop.permute.xlu1 %2038  ;;  %v1718_v21 = vpop.f32.mrf.mxu2  ;;  %3148 = vmatpush.bf16.msra.mxu1 %v4654_v44 }
 0x2cd   : > { %v1767_v42 = vpop.f32.mrf.mxu3 }
 0x2ce   : > { %v1768_v24 = vadd.f32 %v1767_v42, %v1718_v21  ;;  %v1819_v47 = vpop.f32.mrf.mxu0  ;;  %v1935_v42 = vsel %vm1934_vm6, %v6250_v29, %v6257_v50  ;;  %v1953_v29 = vsel %vm1952_vm7, %v6269_v16, %v6278_v34 }
 0x2cf   : > { %v1940_v21 = vadd.f32 %v1935_v42, %v1922_v30  ;;  %v1989_v42 = vsel %vm1988_vm9, %v6303_v37, %v6312_v5  ;;  %v2025_v37 = vsel %vm2024_vm11, %v6337_v63, %v6346_v6 }
 0x2d0   : > { %v1817_v33 = vadd.f32 %v1816_v11, %v1768_v24  ;;  %v4892_v11 = vld [vmem:[%s5582_s24 + $0x310] sm:$0xf0] }
 0x2d1   : > { %v6372_v40 = vpop.f32.mrf.mxu1  ;;  %2837 = vmatmul.bf16.gmra.mxu2 %v6363_v7  ;;  %2935 = vmatmul.bf16.gmra.mxu0 %v6108_v10  ;;  %v4546_v20 = vor.u32 %v4892_v11, %v4545_v56  ;;  %v4916_v24 = vld [vmem:[%s5582_s24 + $0x3d0] sm:$0xf0]  ;;  %v1958_v45 = vadd.f32 %v1953_v29, %v1940_v21  ;;  %v4863_v21 = vld [vmem:[%s5584_s26 + $0xac] sm:$0xf] }
 0x2d2   : > { %v2055_v14 = vpop.permute.xlu0 %2054  ;;  %2886 = vmatmul.bf16.gmra.mxu3 %v6365_v54  ;;  %2022 = vrot.lane.b32.xlu2 %v1817_v33, %s5040_s18  ;;  %v1971_v33 = vsel %vm1970_vm8, %v6284_v32, %v6291_v12  ;;  %v4642_v1 = vor.u32 %v4916_v24, %v4641_v61  ;;  %v2007_v32 = vsel %vm2006_vm10, %v6318_v49, %v6325_v60 }
 0x2d3   : > { %3100 = vmatpush.bf16.msra.mxu0 %v4546_v20  ;;  %v1976_v44 = vadd.f32 %v1971_v33, %v1958_v45  ;;  %v4437_v20 = vld [vmem:[%s5584_s26 + $0xb0] sm:$0xf]  ;;  %v2043_v49 = vsel %vm2042_vm12, %v6352_v25, %v6359_v4 }
 0x2d4   : > { %2984 = vmatmul.bf16.gmra.mxu1 %v6363_v7  ;;  %v6390_v23 = vpop.permute.xlu1 %2056  ;;  %v1721_v52 = vpop.f32.mrf.mxu2 }
 0x2d5   : > { %v1770_v17 = vpop.f32.mrf.mxu3  ;;  %3149 = vmatpush.bf16.msra.mxu1 %v4642_v1  ;;  %v1994_v29 = vadd.f32 %v1989_v42, %v1976_v44  ;;  %v2061_v44 = vsel %vm2060_vm13, %v2055_v14, %v6390_v23 }
 0x2d6   : > { %v1771_v16 = vadd.f32 %v1770_v17, %v1721_v52  ;;  %v1821_v38 = vpop.f32.mrf.mxu0  ;;  %v4431_v52 = vld [vmem:[%s5584_s26 + $0xb4] sm:$0xf0] }
 0x2d7   : > { %v2012_v61 = vadd.f32 %v2007_v32, %v1994_v29  ;;  %v6418_v1 = vor.u32 %v4863_v21, %v4431_v52 }
 0x2d8   : > { %v1820_v30 = vadd.f32 %v1819_v47, %v1771_v16  ;;  %v4865_v47 = vld [vmem:[%s5584_s26 + $0xb8] sm:$0xf0] }
 0x2d9   : > { %v6400_v56 = vpop.f32.mrf.mxu1  ;;  %v2030_v45 = vadd.f32 %v2025_v37, %v2012_v61  ;;  %v6420_v42 = vor.u32 %v4865_v47, %v4437_v20 }
 0x2da   : > { %6839 = vst [vmem:[#allocation14_spill] sm:$0xff] %v6400_v56  ;;  %v2073_v11 = vpop.permute.xlu0 %2072  ;;  %2040 = vrot.lane.b32.xlu2 %v1820_v30, %s5041_s6 }
 0x2db   : > { %v2048_v30 = vadd.f32 %v2043_v49, %v2030_v45 }
 0x2dc   : > { %v6413_v24 = vpop.permute.xlu1 %2074  ;;  %v1723_v33 = vpop.f32.mrf.mxu2 }
 0x2dd   : > { %v1772_v17 = vpop.f32.mrf.mxu3  ;;  %v2079_v56 = vsel %vm2078_vm14, %v2073_v11, %v6413_v24  ;;  %v2066_v25 = vadd.f32 %v2061_v44, %v2048_v30 }
 0x2de   : > { %v1773_v16 = vadd.f32 %v1772_v17, %v1723_v33  ;;  %v1824_v63 = vpop.f32.mrf.mxu0 }
 0x2df   : > { %v2084_v14 = vadd.f32 %v2079_v56, %v2066_v25 }
 0x2e0   : > { %v1822_v32 = vadd.f32 %v1821_v38, %v1773_v16 }
 0x2e1   : > { %v6424_v29 = vpop.f32.mrf.mxu1  ;;  %2842 = vmatmul.bf16.gmra.mxu2 %v6418_v1  ;;  %2940 = vmatmul.bf16.gmra.mxu0 %v6130_v48 }
 0x2e2   : > { %2891 = vmatmul.bf16.gmra.mxu3 %v6420_v42  ;;  %2058 = vrot.lane.b32.xlu2 %v1822_v32, %s5042_s7  ;;  %v2091_v21 = vpop.permute.xlu0 %2090  ;;  %v1831_v32 = vld [vmem:[%s6818_s5 + $0x10] sm:$0xff] }
 0x2e4   : > { %2989 = vmatmul.bf16.gmra.mxu1 %v6418_v1  ;;  %v1861_v38 = vpop.permute.xlu2 %1860  ;;  %v6433_v52 = vpop.permute.xlu1 %2092 }
 0x2e5   : > { %v2097_v11 = vsel %vm2096_vm15, %v2091_v21, %v6433_v52  ;;  %v1726_v37 = vpop.f32.mrf.mxu2  ;;  %v1775_v20 = vpop.f32.mrf.mxu3 }
 0x2e6   : > { %v2102_v47 = vadd.f32 %v2097_v11, %v2084_v14  ;;  %v1776_v61 = vadd.f32 %v1775_v20, %v1726_v37  ;;  %v1826_v33 = vpop.f32.mrf.mxu0  ;;  %v1830_v14 = vld [vmem:[%s6818_s5 + $0x8] sm:$0xff]  ;;  %v1834_v11 = vadd.f32 %v1831_v32, %v6170_v15 }
 0x2e7   : > { %v1833_v37 = vadd.f32 %v1830_v14, %v5979_v58 }
 0x2e8   : > { %2105 = vst [vmem:[%s6818_s5] sm:$0xff] %v2102_v47  ;;  %v1825_v49 = vadd.f32 %v1824_v63, %v1776_v61 }
 0x2e9   : > { %v6440_v17 = vpop.f32.mrf.mxu1 }
 0x2ea   : > { %2076 = vrot.lane.b32.xlu2 %v1825_v49, %s5043_s8 }
 0x2ec   : > { %v1879_v56 = vpop.permute.xlu2 %1878 }
 0x2ed   : > { %v1728_v45 = vpop.f32.mrf.mxu2  ;;  %v1777_v16 = vpop.f32.mrf.mxu3  ;;  %v1882_v32 = vsel %vm1880_vm3, %v6206_v31, %v1879_v56 }
 0x2ee   : > { %v1778_v44 = vadd.f32 %v1777_v16, %v1728_v45  ;;  %v2906_v30 = vpop.f32.mrf.mxu0 }
 0x2f0   : > { %v1827_v25 = vadd.f32 %v1826_v33, %v1778_v44  ;;  %v1864_v44 = vsel %vm1862_vm2, %v6172_v57, %v1861_v38 }
 0x2f1   : > { %v2955_v21 = vpop.f32.mrf.mxu1  ;;  %3003 = vmatmul.bf16.vlgmr.msra.gmra.mxu2 %v6151_v19  ;;  %3101 = vmatmul.bf16.vlgmr.msra.gmra.mxu0 %v6149_v43 }
 0x2f2   : > { %v6450_v63 = vadd.f32 %v2955_v21, %v2906_v30  ;;  %3052 = vmatmul.bf16.vlgmr.msra.gmra.mxu3 %v5966_v9  ;;  %2094 = vrot.lane.b32.xlu2 %v1827_v25, %s5044_s9 }
 0x2f4   : > { %3150 = vmatmul.bf16.vlgmr.msra.gmra.mxu1 %v6151_v19  ;;  %v1897_v20 = vpop.permute.xlu2 %1896  ;;  %v1843_v47 = vpop.permute.xlu1 %1842 }
 0x2f5   : > { %v1846_v61 = vsel %vm1844_vm1, %v6179_v0, %v1843_v47  ;;  %v1852_v33 = vadd.f32 %v1843_v47, %v1834_v11  ;;  %v2808_v49 = vpop.f32.mrf.mxu2  ;;  %v2857_v45 = vpop.f32.mrf.mxu3  ;;  %v1900_v14 = vsel %vm1898_vm4, %v6219_v27, %v1897_v20 }
 0x2f6   : > { %v1851_v16 = vadd.f32 %v1846_v61, %v1833_v37  ;;  %v2809_v43 = vadd.f32 %v2808_v49, %v6154_v26  ;;  %v2908_v9 = vpop.f32.mrf.mxu0 }
 0x2f7   : > { %v1870_v15 = vadd.f32 %v1861_v38, %v1852_v33 }
 0x2f8   : > { %v1869_v30 = vadd.f32 %v1864_v44, %v1851_v16  ;;  %v6463_v19 = vadd.f32 %v2857_v45, %v2809_v43 }
 0x2f9   : > { %v2957_v58 = vpop.f32.mrf.mxu1  ;;  %v1888_v25 = vadd.f32 %v1879_v56, %v1870_v15 }
 0x2fa   : > { %v6467_v0 = vadd.f32 %v2957_v58, %v2908_v9  ;;  %v1887_v21 = vadd.f32 %v1882_v32, %v1869_v30 }
 0x2fb   : > { %v6471_v26 = vadd.f32 %v1897_v20, %v1888_v25 }
 0x2fc   : > { %v6473_v11 = vpop.permute.xlu2 %1914  ;;  %v6475_v57 = vadd.f32 %v1900_v14, %v1887_v21 }
 0x2fd   : > { %v2810_v38 = vpop.f32.mrf.mxu2  ;;  %v2859_v37 = vpop.f32.mrf.mxu3 }
 0x2fe   : > { %v2811_v47 = vadd.f32 %v2810_v38, %v6174_v59  ;;  %v2911_v61 = vpop.f32.mrf.mxu0 }
 0x300   : > { %v2860_v33 = vadd.f32 %v2859_v37, %v2811_v47 }
 0x301   : > { %v2960_v31 = vpop.f32.mrf.mxu1  ;;  %3008 = vmatmul.bf16.gmra.mxu2 %v6191_v46  ;;  %3106 = vmatmul.bf16.gmra.mxu0 %v6189_v51 }
 0x302   : > { %v6479_v56 = vadd.f32 %v2960_v31, %v2911_v61  ;;  %3057 = vmatmul.bf16.gmra.mxu3 %v5990_v55  ;;  %3201 = vrot.lane.b32.xlu0 %v2860_v33, %s5030_s13 }
 0x304   : > { %3155 = vmatmul.bf16.gmra.mxu1 %v6191_v46  ;;  %v6485_v27 = vpop.permute.xlu2 %1932 }
 0x305   : > { %v2813_v20 = vpop.f32.mrf.mxu2  ;;  %v2862_v49 = vpop.f32.mrf.mxu3 }
 0x306   : > { %v2814_v59 = vadd.f32 %v2813_v20, %v6193_v62  ;;  %v2913_v45 = vpop.f32.mrf.mxu0 }
 0x308   : > { %v2863_v16 = vadd.f32 %v2862_v49, %v2814_v59 }
 0x309   : > { %v2962_v43 = vpop.f32.mrf.mxu1 }
 0x30a   : > { %v6488_v9 = vadd.f32 %v2962_v43, %v2913_v45  ;;  %3218 = vrot.lane.b32.xlu0 %v2863_v16, %s5031_s14 }
 0x30c   : > { %v6491_v51 = vpop.permute.xlu2 %1950 }
 0x30d   : > { %v2815_v55 = vpop.f32.mrf.mxu2  ;;  %v2864_v44 = vpop.f32.mrf.mxu3 }
 0x30e   : > { %v2816_v15 = vadd.f32 %v2815_v55, %v6210_v53  ;;  %v2916_v46 = vpop.f32.mrf.mxu0 }
 0x310   : > { %v2865_v30 = vadd.f32 %v2864_v44, %v2816_v15 }
 0x311   : > { %v2965_v58 = vpop.f32.mrf.mxu1  ;;  %3013 = vmatmul.bf16.gmra.mxu2 %v6227_v22  ;;  %3111 = vmatmul.bf16.gmra.mxu0 %v6223_v35 }
 0x312   : > { %v6495_v32 = vadd.f32 %v2965_v58, %v2916_v46  ;;  %3062 = vmatmul.bf16.gmra.mxu3 %v6014_v8  ;;  %3235 = vrot.lane.b32.xlu0 %v2865_v30, %s5032_s15 }
 0x314   : > { %3160 = vmatmul.bf16.gmra.mxu1 %v6227_v22  ;;  %v6501_v62 = vpop.permute.xlu2 %1968 }
 0x315   : > { %v2818_v25 = vpop.f32.mrf.mxu2  ;;  %v2867_v21 = vpop.f32.mrf.mxu3 }
 0x316   : > { %v2819_v53 = vadd.f32 %v2818_v25, %v6229_v28  ;;  %v2918_v14 = vpop.f32.mrf.mxu0  ;;  %v6840_v25 = vld [vmem:[#allocation7_spill] sm:$0xff] }
 0x318   : > { %v2868_v38 = vadd.f32 %v2867_v21, %v2819_v53  ;;  %v6842_v53 = vld [vmem:[#allocation4_spill] sm:$0xff] }
 0x319   : > { %v2967_v37 = vpop.f32.mrf.mxu1 }
 0x31a   : > { %v6504_v47 = vadd.f32 %v2967_v37, %v2918_v14  ;;  %3252 = vrot.lane.b32.xlu0 %v2868_v38, %s5033_s16 }
 0x31c   : > { %v6507_v35 = vpop.permute.xlu2 %1986 }
 0x31d   : > { %v2820_v8 = vpop.f32.mrf.mxu2  ;;  %v2869_v61 = vpop.f32.mrf.mxu3 }
 0x31e   : > { %v2821_v33 = vadd.f32 %v2820_v8, %v6246_v41  ;;  %v2921_v22 = vpop.f32.mrf.mxu0  ;;  %v6843_v8 = vld [vmem:[#allocation8_spill] sm:$0xff] }
 0x320   : > { %v2870_v31 = vadd.f32 %v2869_v61, %v2821_v33  ;;  %v1918_v33 = vsel %vm1916_vm5, %v6244_v3, %v6473_v11  ;;  %v1954_v3 = vsel %vm1952_vm7, %v6278_v34, %v6491_v51  ;;  %v1990_v34 = vsel %vm1988_vm9, %v6312_v5, %v6507_v35 }
 0x321   : > { %v2970_v20 = vpop.f32.mrf.mxu1  ;;  %3018 = vmatmul.bf16.gmra.mxu2 %v6261_v13  ;;  %3116 = vmatmul.bf16.gmra.mxu0 %v6259_v18 }
 0x322   : > { %v6511_v49 = vadd.f32 %v2970_v20, %v2921_v22  ;;  %3067 = vmatmul.bf16.gmra.mxu3 %v6038_v2  ;;  %3269 = vrot.lane.b32.xlu0 %v2870_v31, %s5034_s17  ;;  %v1924_v20 = vadd.f32 %v6473_v11, %v6471_v26 }
 0x324   : > { %3165 = vmatmul.bf16.gmra.mxu1 %v6261_v13  ;;  %v2005_v28 = vpop.permute.xlu2 %2004 }
 0x325   : > { %v2823_v59 = vpop.f32.mrf.mxu2  ;;  %v2872_v45 = vpop.f32.mrf.mxu3 }
 0x326   : > { %v2824_v41 = vadd.f32 %v2823_v59, %v6263_v39  ;;  %v2923_v16 = vpop.f32.mrf.mxu0  ;;  %v6841_v39 = vld [vmem:[#allocation6_spill] sm:$0xff]  ;;  %v1936_v59 = vsel %vm1934_vm6, %v6257_v50, %v6485_v27  ;;  %v1972_v50 = vsel %vm1970_vm8, %v6291_v12, %v6501_v62  ;;  %v2008_v12 = vsel %vm2006_vm10, %v6325_v60, %v2005_v28 }
 0x328   : > { %v2873_v43 = vadd.f32 %v2872_v45, %v2824_v41  ;;  %v1923_v41 = vadd.f32 %v1918_v33, %v6475_v57  ;;  %v6844_v57 = vld [vmem:[#allocation9_spill] sm:$0xff] }
 0x329   : > { %v2972_v55 = vpop.f32.mrf.mxu1 }
 0x32a   : > { %v6518_v44 = vadd.f32 %v2972_v55, %v2923_v16  ;;  %3286 = vrot.lane.b32.xlu0 %v2873_v43, %s5035_s23  ;;  %v1942_v16 = vadd.f32 %v6485_v27, %v1924_v20  ;;  %v1941_v43 = vadd.f32 %v1936_v59, %v1923_v41  ;;  %v6848_v20 = vld [vmem:[#allocation12_spill] sm:$0xff] }
 0x32c   : > { %v2023_v15 = vpop.permute.xlu2 %2022  ;;  %v1960_v26 = vadd.f32 %v6491_v51, %v1942_v16 }
 0x32d   : > { %v2825_v18 = vpop.f32.mrf.mxu2  ;;  %v2874_v46 = vpop.f32.mrf.mxu3 }
 0x32e   : > { %v2826_v2 = vadd.f32 %v2825_v18, %v6280_v36  ;;  %v2926_v30 = vpop.f32.mrf.mxu0  ;;  %v1978_v27 = vadd.f32 %v6501_v62, %v1960_v26  ;;  %v6847_v62 = vld [vmem:[#allocation5_spill] sm:$0xff] }
 0x330   : > { %v2875_v58 = vadd.f32 %v2874_v46, %v2826_v2  ;;  %v1959_v46 = vadd.f32 %v1954_v3, %v1941_v43  ;;  %v1996_v51 = vadd.f32 %v6507_v35, %v1978_v27 }
 0x331   : > { %v2975_v13 = vpop.f32.mrf.mxu1  ;;  %3023 = vmatmul.bf16.gmra.mxu2 %v6840_v25  ;;  %3121 = vmatmul.bf16.gmra.mxu0 %v6841_v39  ;;  %v6845_v39 = vld [vmem:[#allocation11_spill] sm:$0xff] }
 0x332   : > { %v6523_v21 = vadd.f32 %v2975_v13, %v2926_v30  ;;  %3072 = vmatmul.bf16.gmra.mxu3 %v6842_v53  ;;  %3303 = vrot.lane.b32.xlu0 %v2875_v58, %s5036_s27  ;;  %v1977_v58 = vadd.f32 %v1972_v50, %v1959_v46  ;;  %v2014_v5 = vadd.f32 %v2005_v28, %v1996_v51 }
 0x334   : > { %3170 = vmatmul.bf16.gmra.mxu1 %v6840_v25  ;;  %v2041_v14 = vpop.permute.xlu2 %2040  ;;  %v2032_v60 = vadd.f32 %v2023_v15, %v2014_v5 }
 0x335   : > { %v2828_v38 = vpop.f32.mrf.mxu2  ;;  %v2877_v37 = vpop.f32.mrf.mxu3 }
 0x336   : > { %v2829_v36 = vadd.f32 %v2828_v38, %v6843_v8  ;;  %v2928_v61 = vpop.f32.mrf.mxu0  ;;  %v6846_v38 = vld [vmem:[#allocation10_spill] sm:$0xff]  ;;  %v2026_v8 = vsel %vm2024_vm11, %v6346_v6, %v2023_v15  ;;  %v2050_v16 = vadd.f32 %v2041_v14, %v2032_v60 }
 0x338   : > { %v2878_v22 = vadd.f32 %v2877_v37, %v2829_v36  ;;  %v1995_v37 = vadd.f32 %v1990_v34, %v1977_v58 }
 0x339   : > { %v2977_v31 = vpop.f32.mrf.mxu1 }
 0x33a   : > { %v6538_v45 = vadd.f32 %v2977_v31, %v2928_v61  ;;  %3320 = vrot.lane.b32.xlu0 %v2878_v22, %s5037_s28  ;;  %v2013_v35 = vadd.f32 %v2008_v12, %v1995_v37  ;;  %v2044_v61 = vsel %vm2042_vm12, %v6359_v4, %v2041_v14 }
 0x33c   : > { %v2059_v55 = vpop.permute.xlu2 %2058  ;;  %v2031_v31 = vadd.f32 %v2026_v8, %v2013_v35 }
 0x33d   : > { %v2830_v11 = vpop.f32.mrf.mxu2  ;;  %v2879_v18 = vpop.f32.mrf.mxu3  ;;  %v2062_v28 = vsel %vm2060_vm13, %v6390_v23, %v2059_v55  ;;  %v2068_v26 = vadd.f32 %v2059_v55, %v2050_v16  ;;  %v6849_v55 = vld [vmem:[#allocation13_spill] sm:$0xff] }
 0x33e   : > { %v2831_v2 = vadd.f32 %v2830_v11, %v6844_v57  ;;  %v2931_v30 = vpop.f32.mrf.mxu0  ;;  %v2049_v3 = vadd.f32 %v2044_v61, %v2031_v31 }
 0x340   : > { %v2880_v13 = vadd.f32 %v2879_v18, %v2831_v2  ;;  %v2067_v4 = vadd.f32 %v2062_v28, %v2049_v3 }
 0x341   : > { %v2980_v25 = vpop.f32.mrf.mxu1  ;;  %3028 = vmatmul.bf16.gmra.mxu2 %v6845_v39  ;;  %3126 = vmatmul.bf16.gmra.mxu0 %v6846_v38 }
 0x342   : > { %v6559_v53 = vadd.f32 %v2980_v25, %v2931_v30  ;;  %3077 = vmatmul.bf16.gmra.mxu3 %v6847_v62  ;;  %3337 = vrot.lane.b32.xlu0 %v2880_v13, %s5038_s29 }
 0x344   : > { %3175 = vmatmul.bf16.gmra.mxu1 %v6845_v39  ;;  %v2077_v36 = vpop.permute.xlu2 %2076 }
 0x345   : > { %v2833_v33 = vpop.f32.mrf.mxu2  ;;  %v2882_v22 = vpop.f32.mrf.mxu3  ;;  %v2080_v15 = vsel %vm2078_vm14, %v6413_v24, %v2077_v36  ;;  %v2086_v11 = vadd.f32 %v2077_v36, %v2068_v26 }
 0x346   : > { %v2834_v59 = vadd.f32 %v2833_v33, %v6848_v20  ;;  %v2933_v41 = vpop.f32.mrf.mxu0  ;;  %v2085_v18 = vadd.f32 %v2080_v15, %v2067_v4 }
 0x348   : > { %v2883_v6 = vadd.f32 %v2882_v22, %v2834_v59 }
 0x349   : > { %v2982_v43 = vpop.f32.mrf.mxu1 }
 0x34a   : > { %v6574_v50 = vadd.f32 %v2982_v43, %v2933_v41  ;;  %3354 = vrot.lane.b32.xlu0 %v2883_v6, %s5039_s30 }
 0x34c   : > { %v2095_v46 = vpop.permute.xlu2 %2094 }
 0x34d   : > { %v2098_v14 = vsel %vm2096_vm15, %v6433_v52, %v2095_v46  ;;  %v2104_v23 = vadd.f32 %v2095_v46, %v2086_v11  ;;  %v2835_v57 = vpop.f32.mrf.mxu2  ;;  %v2884_v2 = vpop.f32.mrf.mxu3 }
 0x34e   : > { %v2103_v30 = vadd.f32 %v2098_v14, %v2085_v18  ;;  %v2836_v27 = vadd.f32 %v2835_v57, %v6849_v55  ;;  %v2936_v34 = vpop.f32.mrf.mxu0 }
 0x34f   : > { %2108 = vst.msk [vmem:[%s6818_s5 + $0x10] sm:$0xff] %vm2107_vm0, %v2104_v23 }
 0x350   : > { %2106 = vst [vmem:[%s6818_s5 + $0x8] sm:$0xff] %v2103_v30  ;;  %v2885_v24 = vadd.f32 %v2884_v2, %v2836_v27 }
 0x351   : > { %v2985_v58 = vpop.f32.mrf.mxu1  ;;  %3033 = vmatmul.bf16.gmra.mxu2 %v6365_v54  ;;  %3131 = vmatmul.bf16.gmra.mxu0 %v6363_v7  ;;  %v6850_v7 = vld [vmem:[#allocation14_spill] sm:$0xff] }
 0x352   : > { %v6588_v52 = vadd.f32 %v2985_v58, %v2936_v34  ;;  %3082 = vmatmul.bf16.gmra.mxu3 %v6108_v10  ;;  %3371 = vrot.lane.b32.xlu0 %v2885_v24, %s5040_s18 }
 0x354   : > { %3180 = vmatmul.bf16.gmra.mxu1 %v6365_v54 }
 0x355   : > { %v2838_v13 = vpop.f32.mrf.mxu2  ;;  %v2887_v25 = vpop.f32.mrf.mxu3 }
 0x356   : > { %v2839_v51 = vadd.f32 %v2838_v13, %v6372_v40  ;;  %v2938_v12 = vpop.f32.mrf.mxu0 }
 0x358   : > { %v2888_v39 = vadd.f32 %v2887_v25, %v2839_v51 }
 0x359   : > { %v2987_v38 = vpop.f32.mrf.mxu1 }
 0x35a   : > { %v6595_v37 = vadd.f32 %v2987_v38, %v2938_v12  ;;  %3388 = vrot.lane.b32.xlu0 %v2888_v39, %s5041_s6 }
 0x35d   : > { %v2840_v62 = vpop.f32.mrf.mxu2  ;;  %v2889_v5 = vpop.f32.mrf.mxu3 }
 0x35e   : > { %v2841_v8 = vadd.f32 %v2840_v62, %v6850_v7  ;;  %v2941_v10 = vpop.f32.mrf.mxu0 }
 0x360   : > { %v2890_v35 = vadd.f32 %v2889_v5, %v2841_v8 }
 0x361   : > { %v2990_v36 = vpop.f32.mrf.mxu1  ;;  %3038 = vmatmul.bf16.gmra.mxu2 %v6420_v42  ;;  %3136 = vmatmul.bf16.gmra.mxu0 %v6418_v1 }
 0x362   : > { %v6600_v54 = vadd.f32 %v2990_v36, %v2941_v10  ;;  %3087 = vmatmul.bf16.gmra.mxu3 %v6130_v48  ;;  %3405 = vrot.lane.b32.xlu0 %v2890_v35, %s5042_s7 }
 0x364   : > { %3185 = vmatmul.bf16.gmra.mxu1 %v6420_v42 }
 0x365   : > { %v2843_v40 = vpop.f32.mrf.mxu2  ;;  %v2892_v60 = vpop.f32.mrf.mxu3 }
 0x366   : > { %v2844_v61 = vadd.f32 %v2843_v40, %v6424_v29  ;;  %v2943_v33 = vpop.f32.mrf.mxu0 }
 0x368   : > { %v2893_v22 = vadd.f32 %v2892_v60, %v2844_v61 }
 0x369   : > { %v2992_v31 = vpop.f32.mrf.mxu1 }
 0x36a   : > { %v6607_v20 = vadd.f32 %v2992_v31, %v2943_v33  ;;  %3422 = vrot.lane.b32.xlu0 %v2893_v22, %s5043_s8 }
 0x36d   : > { %v2845_v59 = vpop.f32.mrf.mxu2  ;;  %v2894_v41 = vpop.f32.mrf.mxu3 }
 0x36e   : > { %v2846_v1 = vadd.f32 %v2845_v59, %v6440_v17  ;;  %v3102_v48 = vpop.f32.mrf.mxu0 }
 0x370   : > { %v2895_v16 = vadd.f32 %v2894_v41, %v2846_v1 }
 0x371   : > { %v3151_v28 = vpop.f32.mrf.mxu1 }
 0x372   : > { %3439 = vrot.lane.b32.xlu0 %v2895_v16, %s5044_s9 }
 0x375   : > { %v3004_v42 = vpop.f32.mrf.mxu2  ;;  %v3053_v3 = vpop.f32.mrf.mxu3 }
 0x376   : > { %v6613_v29 = vadd.f32 %v3004_v42, %v6450_v63  ;;  %v3103_v6 = vadd.f32 %v3102_v48, %v3053_v3  ;;  %v3104_v43 = vpop.f32.mrf.mxu0 }
 0x378   : > { %v6615_v26 = vadd.f32 %v3151_v28, %v3103_v6 }
 0x379   : > { %v3153_v15 = vpop.f32.mrf.mxu1 }
 0x37d   : > { %v3006_v4 = vpop.f32.mrf.mxu2  ;;  %v3055_v11 = vpop.f32.mrf.mxu3 }
 0x37e   : > { %v3007_v18 = vadd.f32 %v3006_v4, %v6467_v0  ;;  %v3105_v17 = vadd.f32 %v3104_v43, %v3055_v11  ;;  %v3107_v46 = vpop.f32.mrf.mxu0 }
 0x380   : > { %v3154_v14 = vadd.f32 %v3153_v15, %v3105_v17  ;;  %3203 = vrot.lane.b32.xlu1 %v3007_v18, %s5030_s13 }
 0x381   : > { %v3156_v23 = vpop.f32.mrf.mxu1 }
 0x382   : > { %3205 = vrot.lane.b32.xlu2 %v3154_v14, %s5030_s13 }
 0x385   : > { %v3009_v57 = vpop.f32.mrf.mxu2  ;;  %v3058_v63 = vpop.f32.mrf.mxu3 }
 0x386   : > { %v3010_v2 = vadd.f32 %v3009_v57, %v6479_v56  ;;  %v3108_v30 = vadd.f32 %v3107_v46, %v3058_v63  ;;  %v3109_v55 = vpop.f32.mrf.mxu0 }
 0x388   : > { %v3157_v27 = vadd.f32 %v3156_v23, %v3108_v30  ;;  %3220 = vrot.lane.b32.xlu1 %v3010_v2, %s5031_s14 }
 0x389   : > { %v3158_v34 = vpop.f32.mrf.mxu1 }
 0x38a   : > { %3222 = vrot.lane.b32.xlu2 %v3157_v27, %s5031_s14 }
 0x38d   : > { %v3011_v0 = vpop.f32.mrf.mxu2  ;;  %v3060_v24 = vpop.f32.mrf.mxu3 }
 0x38e   : > { %v3012_v58 = vadd.f32 %v3011_v0, %v6488_v9  ;;  %v3110_v13 = vadd.f32 %v3109_v55, %v3060_v24  ;;  %v3112_v25 = vpop.f32.mrf.mxu0 }
 0x390   : > { %v3159_v51 = vadd.f32 %v3158_v34, %v3110_v13  ;;  %3237 = vrot.lane.b32.xlu1 %v3012_v58, %s5032_s15 }
 0x391   : > { %v3161_v12 = vpop.f32.mrf.mxu1 }
 0x392   : > { %3239 = vrot.lane.b32.xlu2 %v3159_v51, %s5032_s15 }
 0x395   : > { %v3014_v56 = vpop.f32.mrf.mxu2  ;;  %v3063_v39 = vpop.f32.mrf.mxu3 }
 0x396   : > { %v3015_v38 = vadd.f32 %v3014_v56, %v6495_v32  ;;  %v3113_v62 = vadd.f32 %v3112_v25, %v3063_v39  ;;  %v3114_v5 = vpop.f32.mrf.mxu0 }
 0x398   : > { %v3162_v7 = vadd.f32 %v3161_v12, %v3113_v62  ;;  %3254 = vrot.lane.b32.xlu1 %v3015_v38, %s5033_s16  ;;  %v3202_v38 = vpop.permute.xlu0 %3201 }
 0x399   : > { %v3163_v8 = vpop.f32.mrf.mxu1 }
 0x39a   : > { %3256 = vrot.lane.b32.xlu2 %v3162_v7, %s5033_s16 }
 0x39d   : > { %v3016_v9 = vpop.f32.mrf.mxu2  ;;  %v3065_v10 = vpop.f32.mrf.mxu3 }
 0x39e   : > { %v3017_v35 = vadd.f32 %v3016_v9, %v6504_v47  ;;  %v3115_v36 = vadd.f32 %v3114_v5, %v3065_v10  ;;  %v3117_v40 = vpop.f32.mrf.mxu0 }
 0x3a0   : > { %v3164_v60 = vadd.f32 %v3163_v8, %v3115_v36  ;;  %3271 = vrot.lane.b32.xlu1 %v3017_v35, %s5034_s17  ;;  %v4729_v8 = vld [vmem:[%s6818_s5 + $0x28] sm:$0xff] }
 0x3a1   : > { %v3166_v61 = vpop.f32.mrf.mxu1  ;;  %v3197_v10 = vadd.f32 %v4729_v8, %v6615_v26 }
 0x3a2   : > { %3273 = vrot.lane.b32.xlu2 %v3164_v60, %s5034_s17 }
 0x3a5   : > { %v3019_v32 = vpop.f32.mrf.mxu2  ;;  %v3068_v33 = vpop.f32.mrf.mxu3 }
 0x3a6   : > { %v3020_v22 = vadd.f32 %v3019_v32, %v6511_v49  ;;  %v3118_v31 = vadd.f32 %v3117_v40, %v3068_v33  ;;  %v3119_v59 = vpop.f32.mrf.mxu0  ;;  %v3219_v32 = vpop.permute.xlu0 %3218 }
 0x3a8   : > { %v3167_v41 = vadd.f32 %v3166_v61, %v3118_v31  ;;  %3288 = vrot.lane.b32.xlu1 %v3020_v22, %s5035_s23 }
 0x3a9   : > { %v3168_v1 = vpop.f32.mrf.mxu1 }
 0x3aa   : > { %3290 = vrot.lane.b32.xlu2 %v3167_v41, %s5035_s23 }
 0x3ad   : > { %v3021_v47 = vpop.f32.mrf.mxu2  ;;  %v3070_v48 = vpop.f32.mrf.mxu3 }
 0x3ae   : > { %v3022_v16 = vadd.f32 %v3021_v47, %v6518_v44  ;;  %v3120_v28 = vadd.f32 %v3119_v59, %v3070_v48  ;;  %v3122_v42 = vpop.f32.mrf.mxu0 }
 0x3b0   : > { %v3169_v3 = vadd.f32 %v3168_v1, %v3120_v28  ;;  %3305 = vrot.lane.b32.xlu1 %v3022_v16, %s5036_s27 }
 0x3b1   : > { %v3171_v6 = vpop.f32.mrf.mxu1 }
 0x3b2   : > { %3307 = vrot.lane.b32.xlu2 %v3169_v3, %s5036_s27 }
 0x3b5   : > { %v3024_v49 = vpop.f32.mrf.mxu2  ;;  %v3073_v43 = vpop.f32.mrf.mxu3 }
 0x3b6   : > { %v3025_v15 = vadd.f32 %v3024_v49, %v6523_v21  ;;  %v3123_v4 = vadd.f32 %v3122_v42, %v3073_v43  ;;  %v3124_v11 = vpop.f32.mrf.mxu0 }
 0x3b8   : > { %v3172_v18 = vadd.f32 %v3171_v6, %v3123_v4  ;;  %3322 = vrot.lane.b32.xlu1 %v3025_v15, %s5037_s28 }
 0x3b9   : > { %v3173_v17 = vpop.f32.mrf.mxu1 }
 0x3ba   : > { %3324 = vrot.lane.b32.xlu2 %v3172_v18, %s5037_s28 }
 0x3bd   : > { %v3026_v44 = vpop.f32.mrf.mxu2  ;;  %v3075_v46 = vpop.f32.mrf.mxu3 }
 0x3be   : > { %v3027_v14 = vadd.f32 %v3026_v44, %v6538_v45  ;;  %v3125_v23 = vadd.f32 %v3124_v11, %v3075_v46  ;;  %v3127_v57 = vpop.f32.mrf.mxu0  ;;  %v4728_v11 = vld [vmem:[%s6818_s5 + $0x20] sm:$0xff] }
 0x3bf   : > { %v3196_v44 = vadd.f32 %v4728_v11, %v6613_v29 }
 0x3c0   : > { %v3174_v63 = vadd.f32 %v3173_v17, %v3125_v23  ;;  %3339 = vrot.lane.b32.xlu1 %v3027_v14, %s5038_s29 }
 0x3c1   : > { %v3176_v2 = vpop.f32.mrf.mxu1 }
 0x3c2   : > { %3341 = vrot.lane.b32.xlu2 %v3174_v63, %s5038_s29 }
 0x3c5   : > { %v3029_v21 = vpop.f32.mrf.mxu2  ;;  %v3078_v30 = vpop.f32.mrf.mxu3 }
 0x3c6   : > { %v3030_v55 = vadd.f32 %v3029_v21, %v6559_v53  ;;  %v3128_v27 = vadd.f32 %v3127_v57, %v3078_v30  ;;  %v3129_v34 = vpop.f32.mrf.mxu0 }
 0x3c8   : > { %v3177_v0 = vadd.f32 %v3176_v2, %v3128_v27  ;;  %3356 = vrot.lane.b32.xlu1 %v3030_v55, %s5039_s30 }
 0x3c9   : > { %v3178_v24 = vpop.f32.mrf.mxu1 }
 0x3ca   : > { %3358 = vrot.lane.b32.xlu2 %v3177_v0, %s5039_s30 }
 0x3cd   : > { %v3031_v45 = vpop.f32.mrf.mxu2  ;;  %v3080_v58 = vpop.f32.mrf.mxu3 }
 0x3ce   : > { %v3032_v13 = vadd.f32 %v3031_v45, %v6574_v50  ;;  %v3130_v25 = vadd.f32 %v3129_v34, %v3080_v58  ;;  %v3132_v51 = vpop.f32.mrf.mxu0 }
 0x3d0   : > { %v3179_v12 = vadd.f32 %v3178_v24, %v3130_v25  ;;  %3373 = vrot.lane.b32.xlu1 %v3032_v13, %s5040_s18 }
 0x3d1   : > { %v3181_v56 = vpop.f32.mrf.mxu1 }
 0x3d2   : > { %3375 = vrot.lane.b32.xlu2 %v3179_v12, %s5040_s18 }
 0x3d5   : > { %v3034_v53 = vpop.f32.mrf.mxu2  ;;  %v3083_v39 = vpop.f32.mrf.mxu3 }
 0x3d6   : > { %v3035_v62 = vadd.f32 %v3034_v53, %v6588_v52  ;;  %v3133_v5 = vadd.f32 %v3132_v51, %v3083_v39  ;;  %v3134_v7 = vpop.f32.mrf.mxu0 }
 0x3d8   : > { %v3182_v50 = vadd.f32 %v3181_v56, %v3133_v5  ;;  %3390 = vrot.lane.b32.xlu1 %v3035_v62, %s5041_s6 }
 0x3d9   : > { %v3183_v9 = vpop.f32.mrf.mxu1 }
 0x3da   : > { %3392 = vrot.lane.b32.xlu2 %v3182_v50, %s5041_s6 }
 0x3dc   : > { %v3206_v35 = vpop.permute.xlu2 %3205 }
 0x3dd   : > { %v3214_v36 = vadd.f32 %v3206_v35, %v3197_v10  ;;  %v3036_v40 = vpop.f32.mrf.mxu2  ;;  %v3085_v60 = vpop.f32.mrf.mxu3 }
 0x3de   : > { %v3037_v52 = vadd.f32 %v3036_v40, %v6595_v37  ;;  %v3135_v61 = vadd.f32 %v3134_v7, %v3085_v60  ;;  %v3137_v22 = vpop.f32.mrf.mxu0  ;;  %v3236_v37 = vpop.permute.xlu0 %3235 }
 0x3e0   : > { %v3184_v33 = vadd.f32 %v3183_v9, %v3135_v61  ;;  %3407 = vrot.lane.b32.xlu1 %v3037_v52, %s5042_s7 }
 0x3e1   : > { %v3186_v31 = vpop.f32.mrf.mxu1 }
 0x3e2   : > { %3409 = vrot.lane.b32.xlu2 %v3184_v33, %s5042_s7  ;;  %s6851_s7 = sadd.s32 4294967295, %s5027_s20  }
 0x3e3   : > { %p4733_p9 = scmp.ne.s32.totalorder %s6851_s7, 2 }
 0x3e4   : > { %v3223_v59 = vpop.permute.xlu2 %3222 }
 0x3e5   : > { %v3231_v41 = vadd.f32 %v3223_v59, %v3214_v36  ;;  %v3039_v1 = vpop.f32.mrf.mxu2  ;;  %v3088_v47 = vpop.f32.mrf.mxu3 }
 0x3e6   : > { %v3040_v26 = vadd.f32 %v3039_v1, %v6600_v54  ;;  %v3138_v48 = vadd.f32 %v3137_v22, %v3088_v47  ;;  %v3139_v28 = vpop.f32.mrf.mxu0  ;;  %v4727_v54 = vld [vmem:[%s6818_s5 + $0x18] sm:$0xff]  ;;  %v3253_v23 = vpop.permute.xlu0 %3252 }
 0x3e7   : > { %v3195_v17 = vadd.f32 %v4727_v54, %v6463_v19 }
 0x3e8   : > { %v3187_v16 = vadd.f32 %v3186_v31, %v3138_v48  ;;  %3424 = vrot.lane.b32.xlu1 %v3040_v26, %s5043_s8 }
 0x3e9   : > { %v3188_v3 = vpop.f32.mrf.mxu1 }
 0x3ea   : > { %3426 = vrot.lane.b32.xlu2 %v3187_v16, %s5043_s8 }
 0x3ec   : > { %v3240_v42 = vpop.permute.xlu2 %3239 }
 0x3ed   : > { %v3248_v6 = vadd.f32 %v3240_v42, %v3231_v41  ;;  %v3041_v49 = vpop.f32.mrf.mxu2  ;;  %v3090_v43 = vpop.f32.mrf.mxu3 }
 0x3ee   : > { %v3042_v15 = vadd.f32 %v3041_v49, %v6607_v20  ;;  %v3140_v4 = vadd.f32 %v3139_v28, %v3090_v43  ;;  %v3270_v0 = vpop.permute.xlu0 %3269 }
 0x3f0   : > { %v3189_v18 = vadd.f32 %v3188_v3, %v3140_v4  ;;  %3441 = vrot.lane.b32.xlu1 %v3042_v15, %s5044_s9 }
 0x3f2   : > { %3443 = vrot.lane.b32.xlu2 %v3189_v18, %s5044_s9  ;;  %v3204_v46 = vpop.permute.xlu1 %3203 }
 0x3f3   : > { %v3207_v20 = vsel %vm1844_vm1, %v3202_v38, %v3204_v46  ;;  %v3208_v14 = vsel %vm1844_vm1, %v3204_v46, %v3206_v35 }
 0x3f4   : > { %v3212_v57 = vadd.f32 %v3207_v20, %v3195_v17  ;;  %v3213_v63 = vadd.f32 %v3208_v14, %v3196_v44  ;;  %v3257_v2 = vpop.permute.xlu2 %3256 }
 0x3f5   : > { %v3265_v21 = vadd.f32 %v3257_v2, %v3248_v6 }
 0x3f6   : > { %v3287_v12 = vpop.permute.xlu0 %3286 }
 0x3fa   : > { %v3221_v30 = vpop.permute.xlu1 %3220 }
 0x3fb   : > { %v3224_v55 = vsel %vm1862_vm2, %v3219_v32, %v3221_v30  ;;  %v3225_v27 = vsel %vm1862_vm2, %v3221_v30, %v3223_v59 }
 0x3fc   : > { %v3229_v19 = vadd.f32 %v3224_v55, %v3212_v57  ;;  %v3230_v34 = vadd.f32 %v3225_v27, %v3213_v63  ;;  %v3274_v29 = vpop.permute.xlu2 %3273 }
 0x3fe   : > { %v3304_v7 = vpop.permute.xlu0 %3303 }
 0x402   : > { %v3238_v24 = vpop.permute.xlu1 %3237 }
 0x403   : > { %v3241_v45 = vsel %vm1880_vm3, %v3236_v37, %v3238_v24  ;;  %v3242_v58 = vsel %vm1880_vm3, %v3238_v24, %v3240_v42  ;;  %v3282_v37 = vadd.f32 %v3274_v29, %v3265_v21 }
 0x404   : > { %v3246_v13 = vadd.f32 %v3241_v45, %v3229_v19  ;;  %v3247_v25 = vadd.f32 %v3242_v58, %v3230_v34  ;;  %v3291_v51 = vpop.permute.xlu2 %3290 }
 0x405   : > { %v3299_v3 = vadd.f32 %v3291_v51, %v3282_v37 }
 0x406   : > { %v3321_v40 = vpop.permute.xlu0 %3320 }
 0x40a   : > { %v3255_v56 = vpop.permute.xlu1 %3254 }
 0x40b   : > { %v3258_v53 = vsel %vm1898_vm4, %v3253_v23, %v3255_v56  ;;  %v3259_v39 = vsel %vm1898_vm4, %v3255_v56, %v3257_v2 }
 0x40c   : > { %v3263_v38 = vadd.f32 %v3258_v53, %v3246_v13  ;;  %v3264_v62 = vadd.f32 %v3259_v39, %v3247_v25  ;;  %v3308_v5 = vpop.permute.xlu2 %3307 }
 0x40d   : > { %v3316_v49 = vadd.f32 %v3308_v5, %v3299_v3 }
 0x40e   : > { %v3338_v31 = vpop.permute.xlu0 %3337 }
 0x412   : > { %v3272_v8 = vpop.permute.xlu1 %3271 }
 0x413   : > { %v3276_v50 = vsel %vm1916_vm5, %v3272_v8, %v3274_v29  ;;  %v3275_v57 = vsel %vm1916_vm5, %v3270_v0, %v3272_v8 }
 0x414   : > { %v3281_v9 = vadd.f32 %v3276_v50, %v3264_v62  ;;  %v3325_v10 = vpop.permute.xlu2 %3324  ;;  %v3280_v30 = vadd.f32 %v3275_v57, %v3263_v38 }
 0x415   : > { %v3333_v43 = vadd.f32 %v3325_v10, %v3316_v49 }
 0x416   : > { %v3355_v26 = vpop.permute.xlu0 %3354 }
 0x41a   : > { %v3289_v35 = vpop.permute.xlu1 %3288 }
 0x41b   : > { %v3293_v36 = vsel %vm1934_vm6, %v3289_v35, %v3291_v51  ;;  %v3292_v21 = vsel %vm1934_vm6, %v3287_v12, %v3289_v35 }
 0x41c   : > { %v3298_v60 = vadd.f32 %v3293_v36, %v3281_v9  ;;  %v3342_v52 = vpop.permute.xlu2 %3341  ;;  %v3297_v27 = vadd.f32 %v3292_v21, %v3280_v30 }
 0x41d   : > { %v3350_v15 = vadd.f32 %v3342_v52, %v3333_v43 }
 0x41e   : > { %v3372_v28 = vpop.permute.xlu0 %3371 }
 0x422   : > { %v3306_v61 = vpop.permute.xlu1 %3305 }
 0x423   : > { %v3310_v32 = vsel %vm1952_vm7, %v3306_v61, %v3308_v5  ;;  %v3309_v55 = vsel %vm1952_vm7, %v3304_v7, %v3306_v61 }
 0x424   : > { %v3315_v33 = vadd.f32 %v3310_v32, %v3298_v60  ;;  %v3359_v22 = vpop.permute.xlu2 %3358  ;;  %v3314_v29 = vadd.f32 %v3309_v55, %v3297_v27 }
 0x425   : > { %v3367_v54 = vadd.f32 %v3359_v22, %v3350_v15 }
 0x426   : > { %v3389_v11 = vpop.permute.xlu0 %3388 }
 0x42a   : > { %v3323_v59 = vpop.permute.xlu1 %3322 }
 0x42b   : > { %v3327_v41 = vsel %vm1970_vm8, %v3323_v59, %v3325_v10  ;;  %v3326_v34 = vsel %vm1970_vm8, %v3321_v40, %v3323_v59 }
 0x42c   : > { %v3332_v1 = vadd.f32 %v3327_v41, %v3315_v33  ;;  %v3376_v47 = vpop.permute.xlu2 %3375  ;;  %v3331_v45 = vadd.f32 %v3326_v34, %v3314_v29 }
 0x42d   : > { %v3384_v17 = vadd.f32 %v3376_v47, %v3367_v54 }
 0x42e   : > { %v3406_v2 = vpop.permute.xlu0 %3405 }
 0x432   : > { %v3340_v48 = vpop.permute.xlu1 %3339 }
 0x433   : > { %v3343_v24 = vsel %vm1988_vm9, %v3338_v31, %v3340_v48  ;;  %v3344_v0 = vsel %vm1988_vm9, %v3340_v48, %v3342_v52 }
 0x434   : > { %v3393_v16 = vpop.permute.xlu2 %3392  ;;  %v3348_v51 = vadd.f32 %v3343_v24, %v3331_v45  ;;  %v3349_v12 = vadd.f32 %v3344_v0, %v3332_v1 }
 0x435   : > { %v3401_v44 = vadd.f32 %v3393_v16, %v3384_v17 }
 0x436   : > { %v3423_v25 = vpop.permute.xlu0 %3422 }
 0x43a   : > { %v3357_v42 = vpop.permute.xlu1 %3356 }
 0x43b   : > { %v3360_v58 = vsel %vm2006_vm10, %v3355_v26, %v3357_v42  ;;  %v3361_v13 = vsel %vm2006_vm10, %v3357_v42, %v3359_v22 }
 0x43c   : > { %v3410_v6 = vpop.permute.xlu2 %3409  ;;  %v3365_v39 = vadd.f32 %v3360_v58, %v3348_v51  ;;  %v3366_v38 = vadd.f32 %v3361_v13, %v3349_v12 }
 0x43d   : > { %v3418_v46 = vadd.f32 %v3410_v6, %v3401_v44 }
 0x43e   : > { %v3440_v32 = vpop.permute.xlu0 %3439 }
 0x442   : > { %v3374_v4 = vpop.permute.xlu1 %3373 }
 0x443   : > { %v3377_v56 = vsel %vm2024_vm11, %v3372_v28, %v3374_v4  ;;  %v3378_v53 = vsel %vm2024_vm11, %v3374_v4, %v3376_v47 }
 0x444   : > { %v3427_v18 = vpop.permute.xlu2 %3426  ;;  %v3382_v8 = vadd.f32 %v3377_v56, %v3365_v39  ;;  %v3383_v50 = vadd.f32 %v3378_v53, %v3366_v38 }
 0x445   : > { %v3435_v14 = vadd.f32 %v3427_v18, %v3418_v46 }
 0x44a   : > { %v3391_v20 = vpop.permute.xlu1 %3390 }
 0x44b   : > { %v3394_v5 = vsel %vm2042_vm12, %v3389_v11, %v3391_v20  ;;  %v3395_v7 = vsel %vm2042_vm12, %v3391_v20, %v3393_v16 }
 0x44c   : > { %v3444_v23 = vpop.permute.xlu2 %3443  ;;  %v3399_v35 = vadd.f32 %v3394_v5, %v3382_v8  ;;  %v3400_v36 = vadd.f32 %v3395_v7, %v3383_v50 }
 0x44d   : > { %v3452_v63 = vadd.f32 %v3444_v23, %v3435_v14 }
 0x44f   : > { %4732 = vst.msk [vmem:[%s6818_s5 + $0x28] sm:$0xff] %vm2107_vm0, %v3452_v63 }
 0x452   : > { %v3408_v19 = vpop.permute.xlu1 %3407 }
 0x453   : > { %v3411_v9 = vsel %vm2060_vm13, %v3406_v2, %v3408_v19  ;;  %v3412_v10 = vsel %vm2060_vm13, %v3408_v19, %v3410_v6 }
 0x454   : > { %v3416_v52 = vadd.f32 %v3411_v9, %v3399_v35  ;;  %v3417_v61 = vadd.f32 %v3412_v10, %v3400_v36 }
 0x45a   : > { %v3425_v62 = vpop.permute.xlu1 %3424 }
 0x45b   : > { %v3428_v40 = vsel %vm2078_vm14, %v3423_v25, %v3425_v62  ;;  %v3429_v60 = vsel %vm2078_vm14, %v3425_v62, %v3427_v18 }
 0x45c   : > { %v3433_v33 = vadd.f32 %v3428_v40, %v3416_v52  ;;  %v3434_v22 = vadd.f32 %v3429_v60, %v3417_v61 }
 0x462   : > { %v3442_v31 = vpop.permute.xlu1 %3441 }
 0x463   : > { %v3445_v59 = vsel %vm2096_vm15, %v3440_v32, %v3442_v31  ;;  %v3446_v41 = vsel %vm2096_vm15, %v3442_v31, %v3444_v23  ;;  %3459 = sbr.rel (%p4733_p9) target bundleno = 1533 (0x5fd), region = 100 }
 0x464   : > { %v3450_v1 = vadd.f32 %v3445_v59, %v3433_v33  ;;  %v3451_v47 = vadd.f32 %v3446_v41, %v3434_v22 }
 0x466   : > { %4730 = vst [vmem:[%s6818_s5 + $0x18] sm:$0xff] %v3450_v1 }
 0x467   : > { %4731 = vst [vmem:[%s6818_s5 + $0x20] sm:$0xff] %v3451_v47 }
 0x468   : > { %v3460_v26 = vld [vmem:[%s6815_s2] sm:$0xff]  ;;  %v3461_v48 = vld [vmem:[%s6815_s2 + $0x8] sm:$0xff]  ;;  %v3462_v16 = vld [vmem:[%s6815_s2 + $0x10] sm:$0xff]  ;;  %v5045_v10 = vmov 0  }
 0x469   : > { %v6728_v37 = vld [vmem:[%s6818_s5] sm:$0xff]  ;;  %v6733_v28 = vld [vmem:[%s6818_s5 + $0x8] sm:$0xff]  ;;  %v6738_v42 = vld [vmem:[%s6818_s5 + $0x10] sm:$0xff]  ;;  %5001 = vset.pattern.permute.xlu2 %v5045_v10  ;;  %5002 = vset.pattern.permute.xlu0 %v5045_v10 }
 0x46a   : > { %v3466_v3 = vmul.f32 %v6728_v37, %v3460_v26  ;;  %v3467_v6 = vmul.f32 %v6733_v28, %v3461_v48  ;;  %v3468_v49 = vmul.f32 %v6738_v42, %v3462_v16  ;;  %v6756_v4 = vld [vmem:[%s6818_s5 + $0x28] sm:$0xff]  ;;  %v3530_v41 = vld [vmem:[%s6816_s3] sm:$0xff] }
 0x46b   : > { %v3480_v44 = vmul.f32 %v6756_v4, %v3462_v16 }
 0x46c   : > { %v3469_v54 = vadd.f32 %v3467_v6, %v3466_v3  ;;  %v3470_v11 = vsel %vm2107_vm0, %v3468_v49, 0.0 }
 0x46d   : > { %v6746_v43 = vld [vmem:[%s6818_s5 + $0x18] sm:$0xff]  ;;  %v3482_v14 = vsel %vm2107_vm0, %v3480_v44, 0.0 }
 0x46e   : > { %v6751_v15 = vld [vmem:[%s6818_s5 + $0x20] sm:$0xff]  ;;  %v3478_v18 = vmul.f32 %v6746_v43, %v3460_v26  ;;  %v3471_v46 = vadd.f32 %v3470_v11, %v3469_v54 }
 0x46f   : > { %v3479_v17 = vmul.f32 %v6751_v15, %v3461_v48 }
 0x470   : > { %3472 = vadd.xlane.f32.xlu0 %v3471_v46 }
 0x471   : > { %v3481_v20 = vadd.f32 %v3479_v17, %v3478_v18 }
 0x473   : > { %v3483_v23 = vadd.f32 %v3482_v14, %v3481_v20 }
 0x478   : > { %3484 = vadd.xlane.f32.xlu0 %v3483_v23 }
 0x4e3   : > { %v3473_v57 = vpop.xlane.xlu0 %3472 }
 0x4eb   : > { %v3485_v63 = vpop.xlane.xlu0 %3484 }
 0x4ec   : > { %v3486_v2 = vadd.f32 %v3485_v63, %v3473_v57 }
 0x4ee   : > { %v3487_v21 = vmul.f32 0.0022222223, %v3486_v2 }
 0x4f0   : > { %v3488_v30 = vsub.f32 %v6728_v37, %v3487_v21  ;;  %v3489_v55 = vsub.f32 %v6733_v28, %v3487_v21  ;;  %v3490_v27 = vsub.f32 %v6738_v42, %v3487_v21  ;;  %v3503_v19 = vsub.f32 %v6746_v43, %v3487_v21 }
 0x4f1   : > { %v3504_v34 = vsub.f32 %v6751_v15, %v3487_v21  ;;  %v3505_v29 = vsub.f32 %v6756_v4, %v3487_v21 }
 0x4f2   : > { %v3491_v24 = vmul.f32 %v3488_v30, %v3460_v26  ;;  %v3492_v0 = vmul.f32 %v3489_v55, %v3461_v48  ;;  %v3493_v45 = vmul.f32 %v3490_v27, %v3462_v16  ;;  %v3506_v58 = vmul.f32 %v3503_v19, %v3460_v26 }
 0x4f3   : > { %v3507_v12 = vmul.f32 %v3504_v34, %v3461_v48  ;;  %v3508_v56 = vmul.f32 %v3505_v29, %v3462_v16  ;;  %v3532_v48 = vld [vmem:[%s6817_s4] sm:$0xff] }
 0x4f4   : > { %v3494_v13 = vmul.f32 %v3491_v24, %v3491_v24  ;;  %v3495_v25 = vmul.f32 %v3492_v0, %v3492_v0  ;;  %v3496_v51 = vmul.f32 %v3493_v45, %v3493_v45  ;;  %v3509_v62 = vmul.f32 %v3506_v58, %v3506_v58 }
 0x4f5   : > { %v3510_v5 = vmul.f32 %v3507_v12, %v3507_v12  ;;  %v3511_v7 = vmul.f32 %v3508_v56, %v3508_v56 }
 0x4f6   : > { %v3497_v53 = vadd.f32 %v3495_v25, %v3494_v13  ;;  %v3498_v39 = vsel %vm2107_vm0, %v3496_v51, 0.0 }
 0x4f7   : > { %v3512_v8 = vadd.f32 %v3510_v5, %v3509_v62  ;;  %v3513_v50 = vsel %vm2107_vm0, %v3511_v7, 0.0 }
 0x4f8   : > { %v3499_v38 = vadd.f32 %v3498_v39, %v3497_v53 }
 0x4f9   : > { %v3514_v9 = vadd.f32 %v3513_v50, %v3512_v8 }
 0x4fa   : > { %3500 = vadd.xlane.f32.xlu1 %v3499_v38 }
 0x502   : > { %3515 = vadd.xlane.f32.xlu1 %v3514_v9 }
 0x56d   : > { %v3501_v35 = vpop.xlane.xlu1 %3500 }
 0x575   : > { %v3516_v36 = vpop.xlane.xlu1 %3515 }
 0x576   : > { %v3517_v40 = vadd.f32 %v3516_v36, %v3501_v35 }
 0x578   : > { %v3518_v60 = vmul.f32 0.0022222223, %v3517_v40 }
 0x57a   : > { %v3519_v52 = vadd.f32 1e-05, %v3518_v60 }
 0x57c   : > { %5003 = vrsqrt.f32 %v3519_v52  ;;  %vm3526_vm2 = vweird.f32 %v3519_v52 }
 0x582   : > { %v5004_v61 = vpop.eup %5003 }
 0x583   : > { %v3521_v32 = vmul.f32 %v5004_v61, %v3519_v52  ;;  %vm3527_vm1 = vweird.f32 %v5004_v61 }
 0x584   : > { %vm3528_vm3 = vmor %vm3526_vm2, %vm3527_vm1 }
 0x585   : > { %v3522_v33 = vmul.f32 %v5004_v61, %v3521_v32 }
 0x587   : > { %v3523_v22 = vmul.f32 0.5, %v3522_v33 }
 0x589   : > { %v3524_v31 = vsub.f32 1.5, %v3523_v22 }
 0x58b   : > { %v3525_v59 = vmul.f32 %v5004_v61, %v3524_v31 }
 0x58d   : > { %v3529_v1 = vsel %vm3528_vm3, %v5004_v61, %v3525_v59 }
 0x58e   : > { %v3531_v47 = vmul.f32 %v3530_v41, %v3529_v1 }
 0x590   : > { %3537 = vperm.xlu2 %5001, %v3531_v47   ;;  %v3533_v26 = vmul.f32 %v3531_v47, %v3487_v21 }
 0x592   : > { %v3534_v16 = vsub.f32 %v3532_v48, %v3533_v26 }
 0x598   : > { %3545 = vperm.xlu2 %5001, %v3534_v16  }
 0x5ea   : > { %v3538_v3 = vpop.permute.xlu2 %3537 }
 0x5eb   : > { %v3540_v6 = vmul.f32 %v3538_v3, %v6728_v37  ;;  %v3541_v49 = vmul.f32 %v3538_v3, %v6733_v28  ;;  %v3542_v54 = vmul.f32 %v3538_v3, %v6738_v42  ;;  %v3560_v11 = vmul.f32 %v6746_v43, %v3538_v3 }
 0x5ec   : > { %v3561_v18 = vmul.f32 %v6751_v15, %v3538_v3  ;;  %v3562_v17 = vmul.f32 %v6756_v4, %v3538_v3 }
 0x5f2   : > { %v3546_v44 = vpop.permute.xlu2 %3545 }
 0x5f3   : > { %v3548_v46 = vadd.f32 %v3546_v44, %v3540_v6  ;;  %v3549_v20 = vadd.f32 %v3546_v44, %v3541_v49  ;;  %v3550_v14 = vadd.f32 %v3546_v44, %v3542_v54  ;;  %v3563_v23 = vadd.f32 %v3560_v11, %v3546_v44 }
 0x5f4   : > { %v3564_v57 = vadd.f32 %v3561_v18, %v3546_v44  ;;  %v3565_v63 = vadd.f32 %v3562_v17, %v3546_v44 }
 0x5f5   : > { %v3551_v2 = vmax.f32 %v3548_v46, 0.0  ;;  %v3552_v21 = vmax.f32 %v3549_v20, 0.0  ;;  %v3553_v37 = vmax.f32 %v3550_v14, 0.0  ;;  %v3566_v30 = vmax.f32 %v3563_v23, 0.0 }
 0x5f6   : > { %v3567_v28 = vmax.f32 %v3564_v57, 0.0  ;;  %v3568_v42 = vmax.f32 %v3565_v63, 0.0 }
 0x5f7   : > { %3554 = vst [vmem:[%s6818_s5] sm:$0xff] %v3551_v2 }
 0x5f8   : > { %3555 = vst [vmem:[%s6818_s5 + $0x8] sm:$0xff] %v3552_v21 }
 0x5f9   : > { %3556 = vst.msk [vmem:[%s6818_s5 + $0x10] sm:$0xff] %vm2107_vm0, %v3553_v37 }
 0x5fa   : > { %4740 = vst [vmem:[%s6818_s5 + $0x18] sm:$0xff] %v3566_v30 }
 0x5fb   : > { %4741 = vst [vmem:[%s6818_s5 + $0x20] sm:$0xff] %v3567_v28 }
 0x5fc   : > { %4742 = vst.msk [vmem:[%s6818_s5 + $0x28] sm:$0xff] %vm2107_vm0, %v3568_v42 }
 0x5fd PF: > { %p12_p10 = scmp.ge.s32.totalorder %s5093_s22, 5   ;;  %s6852_s18 = smov %s5023_s19 }
 0x5fe   : > { %s6853_s19 = smov %s5102_s25  ;;  %s6854_s20 = smov %s5093_s22 }
 0x5ff   :  { %14 = sbr.rel (!%p12_p10) target bundleno = 2 (0x2), region = 153 }

</bundles_post_ra>
